<compile_context>
chip_gen: v7x
topology: tpu7x:2x2x1
jax: 0.10.0
libtpu: 0.0.40
codegen_flags: <defaults>
</compile_context>

<pallas_src>
import functools
import math

import jax
import jax.numpy as jnp
from jax.experimental import pallas as pl
from jax.experimental.pallas import tpu as pltpu


# dtype of matmul operands / stored activations; accumulation, softmax stats and LN stay f32.
MXU_DTYPE = jnp.bfloat16
NEG_INF = -1e10


# ----------------------------------------------------------------------------
# In-kernel helpers (operate on values, not refs)
# ----------------------------------------------------------------------------

def _layer_norm(y, gamma, beta, eps):
    mu = jnp.mean(y, axis=-1, keepdims=True)
    var = jnp.mean((y - mu) ** 2, axis=-1, keepdims=True)
    return (y - mu) * jax.lax.rsqrt(var + eps) * gamma + beta


def _mha_core(q, k, v, bias, wo, *, n_heads, scale, causal, exact_softmax, a_ref=None):
    """Multi-head attention core + accumulated output projection (no bias).

    q: [Bb, Lq, D] f32, k/v: [Bb, Lk, D] f32, bias: [Bb, 1, Lk] f32 additive pad bias,
    wo: [D, D] bf16.  Returns o = concat_h(softmax(QK^T/s + bias) V_h) @ Wo  as [Bb, Lq, D]
    f32 WITHOUT ever materializing the lane-axis concat (per-head accumulation into o).
    Optionally writes per-head attention probs into a_ref[:, h, :, :].
    """
    Bb, Lq, D = q.shape
    Lk = k.shape[1]
    Dh = D // n_heads
    inv_scale = jnp.float32(1.0 / scale)

    if causal:
        row = jax.lax.broadcasted_iota(jnp.int32, (Lq, Lk), 0)
        col = jax.lax.broadcasted_iota(jnp.int32, (Lq, Lk), 1)
        causal_bias = jnp.where(row >= col, 0.0, NEG_INF).astype(jnp.float32)[None]
        bias = bias + causal_bias                                   # [Bb, Lq, Lk]

    o = jnp.zeros((Bb * Lq, D), jnp.float32)
    for h in range(n_heads):
        sl = slice(h * Dh, (h + 1) * Dh)
        qh = q[..., sl].astype(MXU_DTYPE)
        kh = k[..., sl].astype(MXU_DTYPE)
        vh = v[..., sl].astype(MXU_DTYPE)

        e = jnp.einsum("bqd,bkd->bqk", qh, kh,
                       preferred_element_type=jnp.float32) * inv_scale
        e = e + bias
        e = e - jnp.max(e, axis=-1, keepdims=True)
        p = jnp.exp(e)
        s = jnp.sum(p, axis=-1, keepdims=True)
        if exact_softmax:
            p = p / s                                     # exact (user-visible output)
        else:
            p = p * pl.reciprocal(s, approx=True)         # EUP slot, not user-visible
        if a_ref is not None:
            a_ref[:, h, :, :] = p.astype(a_ref.dtype)

        ctx = jnp.einsum("bqk,bkd->bqd", p.astype(MXU_DTYPE), vh,
                         preferred_element_type=jnp.float32)        # [Bb, Lq, Dh]
        # Accumulate output projection per head (removes lane-axis concat entirely).
        o = o + jnp.dot(ctx.reshape(Bb * Lq, Dh).astype(MXU_DTYPE), wo[sl, :],
                        preferred_element_type=jnp.float32)
    return o.reshape(Bb, Lq, D)


# ----------------------------------------------------------------------------
# Fused per-stack Pallas kernels (grid = (batch_blocks, n_layers))
# ----------------------------------------------------------------------------

def _encoder_layers_kernel(x0_ref, keep_ref,
                           wqkv_ref, bqkv_ref, wo_ref, bo_ref, g1_ref, be1_ref,
                           w1_ref, fb1_ref, w2_ref, fb2_ref, g2_ref, be2_ref,
                           y_ref, x_sc, *, n_heads, eps):
    layer = pl.program_id(1)

    @pl.when(layer == 0)
    def _():
        x_sc[...] = x0_ref[...].astype(jnp.float32)

    x = x_sc[...]                                                   # [Bb, L, D] f32
    Bb, L, D = x.shape
    Dh = D // n_heads
    scale = math.sqrt(Dh)

    bias = jnp.where(keep_ref[...] > 0.0, 0.0, NEG_INF).astype(jnp.float32)  # [Bb,1,L]

    # --- self-attention (packed QKV projection, one matmul) ---
    x2d = x.reshape(Bb * L, D).astype(MXU_DTYPE)
    qkv = jnp.dot(x2d, wqkv_ref[...], preferred_element_type=jnp.float32) + bqkv_ref[...]
    qkv = qkv.reshape(Bb, L, 3 * D)
    o = _mha_core(qkv[..., :D], qkv[..., D:2 * D], qkv[..., 2 * D:], bias,
                  wo_ref[...], n_heads=n_heads, scale=scale,
                  causal=False, exact_softmax=False)
    x = _layer_norm(o + bo_ref[...] + x, g1_ref[...], be1_ref[...], eps)

    # --- position-wise FFN ---
    x2d = x.reshape(Bb * L, D).astype(MXU_DTYPE)
    h = jnp.dot(x2d, w1_ref[...], preferred_element_type=jnp.float32) + fb1_ref[...]
    h = jnp.maximum(h, 0.0)
    y = (jnp.dot(h.astype(MXU_DTYPE), w2_ref[...],
                 preferred_element_type=jnp.float32) + fb2_ref[...]).reshape(Bb, L, D)
    x = _layer_norm(y + x, g2_ref[...], be2_ref[...], eps)

    x_sc[...] = x

    @pl.when(layer == pl.num_programs(1) - 1)
    def _():
        y_ref[...] = x.astype(y_ref.dtype)


def _decoder_layers_kernel(x0_ref, enc_ref, tkeep_ref, skeep_ref,
                           s_wqkv_ref, s_bqkv_ref, s_wo_ref, s_bo_ref, g1_ref, be1_ref,
                           c_wq_ref, c_bq_ref, c_wkv_ref, c_bkv_ref, c_wo_ref, c_bo_ref,
                           g2_ref, be2_ref,
                           w1_ref, fb1_ref, w2_ref, fb2_ref, g3_ref, be3_ref,
                           y_ref, a_ref, x_sc, *, n_heads, eps):
    layer = pl.program_id(1)

    @pl.when(layer == 0)
    def _():
        x_sc[...] = x0_ref[...].astype(jnp.float32)

    x = x_sc[...]                                                   # [Bb, Lt, D] f32
    Bb, Lt, D = x.shape
    Dh = D // n_heads
    scale = math.sqrt(Dh)

    t_bias = jnp.where(tkeep_ref[...] > 0.0, 0.0, NEG_INF).astype(jnp.float32)  # [Bb,1,Lt]
    s_bias = jnp.where(skeep_ref[...] > 0.0, 0.0, NEG_INF).astype(jnp.float32)  # [Bb,1,Ls]

    # --- masked (causal + pad) self-attention ---
    x2d = x.reshape(Bb * Lt, D).astype(MXU_DTYPE)
    qkv = jnp.dot(x2d, s_wqkv_ref[...], preferred_element_type=jnp.float32) + s_bqkv_ref[...]
    qkv = qkv.reshape(Bb, Lt, 3 * D)
    o = _mha_core(qkv[..., :D], qkv[..., D:2 * D], qkv[..., 2 * D:], t_bias,
                  s_wo_ref[...], n_heads=n_heads, scale=scale,
                  causal=True, exact_softmax=False)
    x = _layer_norm(o + s_bo_ref[...] + x, g1_ref[...], be1_ref[...], eps)

    # --- cross-attention (probs written into the attention output buffer; since the
    #     output block index is constant over the layer axis, the buffer stays VMEM-resident
    #     and the value written back to HBM is the LAST layer's map, matching the module). ---
    x2d = x.reshape(Bb * Lt, D).astype(MXU_DTYPE)
    q = (jnp.dot(x2d, c_wq_ref[...], preferred_element_type=jnp.float32)
         + c_bq_ref[...]).reshape(Bb, Lt, D)
    enc = enc_ref[...]                                              # [Bb, Ls, D] bf16
    Ls = enc.shape[1]
    kv = (jnp.dot(enc.reshape(Bb * Ls, D), c_wkv_ref[...],
                  preferred_element_type=jnp.float32) + c_bkv_ref[...]).reshape(Bb, Ls, 2 * D)
    o = _mha_core(q, kv[..., :D], kv[..., D:], s_bias, c_wo_ref[...],
                  n_heads=n_heads, scale=scale, causal=False,
                  exact_softmax=True, a_ref=a_ref)
    x = _layer_norm(o + c_bo_ref[...] + x, g2_ref[...], be2_ref[...], eps)

    # --- position-wise FFN ---
    x2d = x.reshape(Bb * Lt, D).astype(MXU_DTYPE)
    h = jnp.dot(x2d, w1_ref[...], preferred_element_type=jnp.float32) + fb1_ref[...]
    h = jnp.maximum(h, 0.0)
    y = (jnp.dot(h.astype(MXU_DTYPE), w2_ref[...],
                 preferred_element_type=jnp.float32) + fb2_ref[...]).reshape(Bb, Lt, D)
    x = _layer_norm(y + x, g3_ref[...], be3_ref[...], eps)

    x_sc[...] = x

    @pl.when(layer == pl.num_programs(1) - 1)
    def _():
        y_ref[...] = x.astype(y_ref.dtype)


def _proj_kernel(x_ref, w_ref, b_ref, o_ref):
    """Final vocabulary projection: o = x @ W + b (bf16 operands, f32 accumulate/output)."""
    Bb, L, D = x_ref.shape
    o = jnp.dot(x_ref[...].reshape(Bb * L, D), w_ref[...],
                preferred_element_type=jnp.float32) + b_ref[...]
    o_ref[...] = o.reshape(Bb, L, -1).astype(o_ref.dtype)


# ----------------------------------------------------------------------------
# Pallas wrappers
# ----------------------------------------------------------------------------

def _pick_batch_block(batch, seq_len, target_rows=256):
    """Largest divisor of `batch` such that block_rows = bblk*seq_len <= target_rows."""
    best = 1
    for d in range(1, batch + 1):
        if batch % d == 0 and d * seq_len <= max(target_rows, seq_len):
            best = d
    return best


def encoder_forward(src, src_keep, p, *, n_heads):
    B, Ls = src.shape
    D = p["tok_emb"].shape[1]
    F = p["w1"].shape[2]
    nl = p["wqkv"].shape[0]

    # TODO(synk): embedding gather stays in plain JAX (no clean tiled Pallas gather at this
    # scale); dropout omitted (eval-mode identity).
    x0 = (p["tok_emb"][src] * jnp.float32(math.sqrt(D))
          + p["pos_emb"][:Ls][None, :, :]).astype(MXU_DTYPE)

    bblk = _pick_batch_block(B, Ls)
    xmap = lambda b, l: (b, 0, 0)
    wmap = lambda b, l: (l, 0, 0)

    return pl.pallas_call(
        functools.partial(_encoder_layers_kernel, n_heads=n_heads, eps=1e-5),
        out_shape=jax.ShapeDtypeStruct((B, Ls, D), MXU_DTYPE),
        grid=(B // bblk, nl),
        in_specs=[
            pl.BlockSpec((bblk, Ls, D), xmap),            # x0 (constant over layer axis)
            pl.BlockSpec((bblk, 1, Ls), xmap),            # pad-keep
            pl.BlockSpec((None, D, 3 * D), wmap),         # packed QKV weight, streamed per layer
            pl.BlockSpec((None, 1, 3 * D), wmap),
            pl.BlockSpec((None, D, D), wmap),             # Wo
            pl.BlockSpec((None, 1, D), wmap),
            pl.BlockSpec((None, 1, D), wmap),             # ln1 gamma / beta
            pl.BlockSpec((None, 1, D), wmap),
            pl.BlockSpec((None, D, F), wmap),             # W1
            pl.BlockSpec((None, 1, F), wmap),
            pl.BlockSpec((None, F, D), wmap),             # W2
            pl.BlockSpec((None, 1, D), wmap),
            pl.BlockSpec((None, 1, D), wmap),             # ln2 gamma / beta
            pl.BlockSpec((None, 1, D), wmap),
        ],
        out_specs=pl.BlockSpec((bblk, Ls, D), xmap),
        scratch_shapes=[pltpu.VMEM((bblk, Ls, D), jnp.float32)],   # f32 activation carry
        compiler_params=pltpu.CompilerParams(
            dimension_semantics=("parallel", "arbitrary")),
    )(x0, src_keep, p["wqkv"], p["bqkv"], p["wo"], p["bo"],
      p["ln1_g"], p["ln1_b"], p["w1"], p["b1"], p["w2"], p["b2"],
      p["ln2_g"], p["ln2_b"])


def decoder_forward(trg, enc_src, trg_keep, src_keep, p, *, n_heads):
    B, Lt = trg.shape
    Ls = enc_src.shape[1]
    D = p["tok_emb"].shape[1]
    F = p["w1"].shape[2]
    nl = p["s_wqkv"].shape[0]

    x0 = (p["tok_emb"][trg] * jnp.float32(math.sqrt(D))
          + p["pos_emb"][:Lt][None, :, :]).astype(MXU_DTYPE)

    bblk = _pick_batch_block(B, max(Lt, Ls))
    xmap = lambda b, l: (b, 0, 0)
    amap = lambda b, l: (b, 0, 0, 0)
    wmap = lambda b, l: (l, 0, 0)

    x_dec, attention = pl.pallas_call(
        functools.partial(_decoder_layers_kernel, n_heads=n_heads, eps=1e-5),
        out_shape=(jax.ShapeDtypeStruct((B, Lt, D), MXU_DTYPE),
                   jax.ShapeDtypeStruct((B, n_heads, Lt, Ls), jnp.float32)),
        grid=(B // bblk, nl),
        in_specs=[
            pl.BlockSpec((bblk, Lt, D), xmap),            # embedded trg
            pl.BlockSpec((bblk, Ls, D), xmap),            # encoder output (bf16)
            pl.BlockSpec((bblk, 1, Lt), xmap),            # trg pad-keep
            pl.BlockSpec((bblk, 1, Ls), xmap),            # src pad-keep
            # self-attention (packed QKV)
            pl.BlockSpec((None, D, 3 * D), wmap), pl.BlockSpec((None, 1, 3 * D), wmap),
            pl.BlockSpec((None, D, D), wmap), pl.BlockSpec((None, 1, D), wmap),
            pl.BlockSpec((None, 1, D), wmap), pl.BlockSpec((None, 1, D), wmap),
            # cross-attention (Wq + packed KV)
            pl.BlockSpec((None, D, D), wmap), pl.BlockSpec((None, 1, D), wmap),
            pl.BlockSpec((None, D, 2 * D), wmap), pl.BlockSpec((None, 1, 2 * D), wmap),
            pl.BlockSpec((None, D, D), wmap), pl.BlockSpec((None, 1, D), wmap),
            pl.BlockSpec((None, 1, D), wmap), pl.BlockSpec((None, 1, D), wmap),
            # FFN
            pl.BlockSpec((None, D, F), wmap), pl.BlockSpec((None, 1, F), wmap),
            pl.BlockSpec((None, F, D), wmap), pl.BlockSpec((None, 1, D), wmap),
            pl.BlockSpec((None, 1, D), wmap), pl.BlockSpec((None, 1, D), wmap),
        ],
        out_specs=(pl.BlockSpec((bblk, Lt, D), xmap),
                   pl.BlockSpec((bblk, n_heads, Lt, Ls), amap)),
        scratch_shapes=[pltpu.VMEM((bblk, Lt, D), jnp.float32)],   # f32 activation carry
        compiler_params=pltpu.CompilerParams(
            dimension_semantics=("parallel", "arbitrary")),
    )(x0, enc_src, trg_keep, src_keep,
      p["s_wqkv"], p["s_bqkv"], p["s_wo"], p["s_bo"], p["ln1_g"], p["ln1_b"],
      p["c_wq"], p["c_bq"], p["c_wkv"], p["c_bkv"], p["c_wo"], p["c_bo"],
      p["ln2_g"], p["ln2_b"],
      p["w1"], p["b1"], p["w2"], p["b2"], p["ln3_g"], p["ln3_b"])

    out = output_projection(x_dec, p["w_out"], p["b_out"])
    return out, attention


def output_projection(x, w, b):
    """x: [B, L, D] bf16 -> logits [B, L, V] f32."""
    B, L, D = x.shape
    V = w.shape[1]
    bblk = _pick_batch_block(B, L)
    # TODO(synk): for production vocab sizes (30K+), tile V (grid axis, tv multiple of 128)
    # instead of keeping the full (D, V) weight resident — required to fit v7x's 64 MiB VMEM.
    return pl.pallas_call(
        _proj_kernel,
        out_shape=jax.ShapeDtypeStruct((B, L, V), jnp.float32),
        grid=(B // bblk,),
        in_specs=[
            pl.BlockSpec((bblk, L, D), lambda b: (b, 0, 0)),
            pl.BlockSpec((D, V), lambda b: (0, 0)),
            pl.BlockSpec((1, V), lambda b: (0, 0)),
        ],
        out_specs=pl.BlockSpec((bblk, L, V), lambda b: (b, 0, 0)),
        compiler_params=pltpu.CompilerParams(dimension_semantics=("parallel",)),
    )(x, w, b)


# ----------------------------------------------------------------------------
# Seq2SeqTransformer.forward
# ----------------------------------------------------------------------------

def seq2seq_forward(src, trg, enc_params, dec_params, *, src_pad_idx, trg_pad_idx, n_heads):
    # Only pad-keep vectors are materialized ([B,1,L]); the causal mask is built in-kernel.
    src_keep = (src != src_pad_idx).astype(jnp.float32)[:, None, :]   # [B, 1, Ls]
    trg_keep = (trg != trg_pad_idx).astype(jnp.float32)[:, None, :]   # [B, 1, Lt]

    enc_src = encoder_forward(src, src_keep, enc_params, n_heads=n_heads)
    output, attention = decoder_forward(trg, enc_src, trg_keep, src_keep,
                                        dec_params, n_heads=n_heads)
    return output, attention


# ----------------------------------------------------------------------------
# Deterministic parameter init (weights stacked per layer for the fused kernels)
# ----------------------------------------------------------------------------

def _nrm(k, shape):
    return (0.02 * jax.random.normal(k, shape)).astype(jnp.float32)


def init_encoder_params(key, *, input_dim, hid_dim, pf_dim, n_layers, max_length):
    D, F, nl = hid_dim, pf_dim, n_layers
    ks = iter(jax.random.split(key, 8))
    return {
        "tok_emb": _nrm(next(ks), (input_dim, D)),
        "pos_emb": _nrm(next(ks), (max_length, D)),
        "wqkv": _nrm(next(ks), (nl, D, 3 * D)).astype(MXU_DTYPE),   # packed Q|K|V
        "bqkv": jnp.zeros((nl, 1, 3 * D), jnp.float32),
        "wo": _nrm(next(ks), (nl, D, D)).astype(MXU_DTYPE),
        "bo": jnp.zeros((nl, 1, D), jnp.float32),
        "ln1_g": jnp.ones((nl, 1, D), jnp.float32),
        "ln1_b": jnp.zeros((nl, 1, D), jnp.float32),
        "w1": _nrm(next(ks), (nl, D, F)).astype(MXU_DTYPE),
        "b1": jnp.zeros((nl, 1, F), jnp.float32),
        "w2": _nrm(next(ks), (nl, F, D)).astype(MXU_DTYPE),
        "b2": jnp.zeros((nl, 1, D), jnp.float32),
        "ln2_g": jnp.ones((nl, 1, D), jnp.float32),
        "ln2_b": jnp.zeros((nl, 1, D), jnp.float32),
    }


def init_decoder_params(key, *, output_dim, hid_dim, pf_dim, n_layers, max_length):
    D, F, nl = hid_dim, pf_dim, n_layers
    ks = iter(jax.random.split(key, 12))
    return {
        "tok_emb": _nrm(next(ks), (output_dim, D)),
        "pos_emb": _nrm(next(ks), (max_length, D)),
        # masked self-attention (packed QKV)
        "s_wqkv": _nrm(next(ks), (nl, D, 3 * D)).astype(MXU_DTYPE),
        "s_bqkv": jnp.zeros((nl, 1, 3 * D), jnp.float32),
        "s_wo": _nrm(next(ks), (nl, D, D)).astype(MXU_DTYPE),
        "s_bo": jnp.zeros((nl, 1, D), jnp.float32),
        "ln1_g": jnp.ones((nl, 1, D), jnp.float32),
        "ln1_b": jnp.zeros((nl, 1, D), jnp.float32),
        # cross-attention (separate Q, packed K|V)
        "c_wq": _nrm(next(ks), (nl, D, D)).astype(MXU_DTYPE),
        "c_bq": jnp.zeros((nl, 1, D), jnp.float32),
        "c_wkv": _nrm(next(ks), (nl, D, 2 * D)).astype(MXU_DTYPE),
        "c_bkv": jnp.zeros((nl, 1, 2 * D), jnp.float32),
        "c_wo": _nrm(next(ks), (nl, D, D)).astype(MXU_DTYPE),
        "c_bo": jnp.zeros((nl, 1, D), jnp.float32),
        "ln2_g": jnp.ones((nl, 1, D), jnp.float32),
        "ln2_b": jnp.zeros((nl, 1, D), jnp.float32),
        # FFN
        "w1": _nrm(next(ks), (nl, D, F)).astype(MXU_DTYPE),
        "b1": jnp.zeros((nl, 1, F), jnp.float32),
        "w2": _nrm(next(ks), (nl, F, D)).astype(MXU_DTYPE),
        "b2": jnp.zeros((nl, 1, D), jnp.float32),
        "ln3_g": jnp.ones((nl, 1, D), jnp.float32),
        "ln3_b": jnp.zeros((nl, 1, D), jnp.float32),
        # output projection
        "w_out": _nrm(next(ks), (D, output_dim)).astype(MXU_DTYPE),
        "b_out": jnp.zeros((1, output_dim), jnp.float32),
    }


# ----------------------------------------------------------------------------
# Main
# ----------------------------------------------------------------------------

if __name__ == "__main__":
    B = 2
    SRC_LEN = 8
    TRG_LEN = 8
    HID = 32
    N_HEADS = 2
    PF_DIM = 64
    N_LAYERS = 2
    SRC_VOCAB = 16
    TRG_VOCAB = 16
    MAX_LEN = 16
    SRC_PAD = 0
    TRG_PAD = 0

    key = jax.random.PRNGKey(0)
    k_enc, k_dec, k_src, k_trg = jax.random.split(key, 4)

    enc_params = init_encoder_params(
        k_enc, input_dim=SRC_VOCAB, hid_dim=HID, pf_dim=PF_DIM,
        n_layers=N_LAYERS, max_length=MAX_LEN)
    dec_params = init_decoder_params(
        k_dec, output_dim=TRG_VOCAB, hid_dim=HID, pf_dim=PF_DIM,
        n_layers=N_LAYERS, max_length=MAX_LEN)

    # token ids in [1, vocab), with trailing pad tokens to exercise the masks
    src = jax.random.randint(k_src, (B, SRC_LEN), 1, SRC_VOCAB, dtype=jnp.int32)
    trg = jax.random.randint(k_trg, (B, TRG_LEN), 1, TRG_VOCAB, dtype=jnp.int32)
    src = src.at[:, -2:].set(SRC_PAD)
    trg = trg.at[:, -1:].set(TRG_PAD)

    fwd = jax.jit(functools.partial(
        seq2seq_forward, src_pad_idx=SRC_PAD, trg_pad_idx=TRG_PAD, n_heads=N_HEADS))

    output, attention = fwd(src, trg, enc_params, dec_params)
    jax.block_until_ready((output, attention))

    assert output.shape == (B, TRG_LEN, TRG_VOCAB), output.shape
    assert attention.shape == (B, N_HEADS, TRG_LEN, SRC_LEN), attention.shape
    assert bool(jnp.all(jnp.isfinite(output))) and bool(jnp.all(jnp.isfinite(attention)))
    # returned attention rows (non-pad queries) must sum to ~1 (exact softmax division)
    row_sums = jnp.sum(attention, axis=-1)
    assert bool(jnp.all(jnp.abs(row_sums - 1.0) < 1e-3)), row_sums

    print("KERNEL_OK")
</pallas_src>

<mosaic_0001>
module attributes {stable_mosaic.version = 11 : i64} {
  func.func @_encoder_layers_kernel(%arg0: i32, %arg1: i32, %arg2: memref<2x8x32xbf16, #tpu.memory_space<vmem>>, %arg3: memref<2x1x8xf32, #tpu.memory_space<vmem>>, %arg4: memref<1x32x96xbf16, #tpu.memory_space<vmem>>, %arg5: memref<1x1x96xf32, #tpu.memory_space<vmem>>, %arg6: memref<1x32x32xbf16, #tpu.memory_space<vmem>>, %arg7: memref<1x1x32xf32, #tpu.memory_space<vmem>>, %arg8: memref<1x1x32xf32, #tpu.memory_space<vmem>>, %arg9: memref<1x1x32xf32, #tpu.memory_space<vmem>>, %arg10: memref<1x32x64xbf16, #tpu.memory_space<vmem>>, %arg11: memref<1x1x64xf32, #tpu.memory_space<vmem>>, %arg12: memref<1x64x32xbf16, #tpu.memory_space<vmem>>, %arg13: memref<1x1x32xf32, #tpu.memory_space<vmem>>, %arg14: memref<1x1x32xf32, #tpu.memory_space<vmem>>, %arg15: memref<1x1x32xf32, #tpu.memory_space<vmem>>, %arg16: memref<2x8x32xbf16, #tpu.memory_space<vmem>>, %arg17: memref<2x8x32xf32, #tpu.memory_space<vmem>>) attributes {dimension_semantics = [#tpu.dimension_semantics<parallel>, #tpu.dimension_semantics<arbitrary>], iteration_bounds = array<i64: 1, 2>, scalar_prefetch = 0 : i64, scratch_operands = 1 : i64, tpu.core_type = #tpu.core_type<tc>, window_params = [{transform_indices = @transform_0, window_bounds = array<i64: 2, 8, 32>}, {transform_indices = @transform_1, window_bounds = array<i64: 2, 1, 8>}, {transform_indices = @transform_2, window_bounds = array<i64: 1, 32, 96>}, {transform_indices = @transform_3, window_bounds = array<i64: 1, 1, 96>}, {transform_indices = @transform_4, window_bounds = array<i64: 1, 32, 32>}, {transform_indices = @transform_5, window_bounds = array<i64: 1, 1, 32>}, {transform_indices = @transform_6, window_bounds = array<i64: 1, 1, 32>}, {transform_indices = @transform_7, window_bounds = array<i64: 1, 1, 32>}, {transform_indices = @transform_8, window_bounds = array<i64: 1, 32, 64>}, {transform_indices = @transform_9, window_bounds = array<i64: 1, 1, 64>}, {transform_indices = @transform_10, window_bounds = array<i64: 1, 64, 32>}, {transform_indices = @transform_11, window_bounds = array<i64: 1, 1, 32>}, {transform_indices = @transform_12, window_bounds = array<i64: 1, 1, 32>}, {transform_indices = @transform_13, window_bounds = array<i64: 1, 1, 32>}, {transform_indices = @transform_14, window_bounds = array<i64: 2, 8, 32>}]} {
    %c0_i32 = arith.constant 0 : i32
    %0 = arith.cmpi eq, %arg1, %c0_i32 : i32
    %1 = arith.extui %0 : i1 to i32
    %c0_i32_0 = arith.constant 0 : i32
    %2 = arith.cmpi ne, %1, %c0_i32_0 : i32
    scf.if %2 {
      %c0_75 = arith.constant 0 : index
      %c0_76 = arith.constant 0 : index
      %c0_77 = arith.constant 0 : index
      %170 = vector.load %arg2[%c0_75, %c0_76, %c0_77] : memref<2x8x32xbf16, #tpu.memory_space<vmem>>, vector<2x8x32xbf16>
      %171 = arith.extf %170 : vector<2x8x32xbf16> to vector<2x8x32xf32>
      %c0_78 = arith.constant 0 : index
      %c0_79 = arith.constant 0 : index
      %c0_80 = arith.constant 0 : index
      %172 = vector.load %arg17[%c0_78, %c0_79, %c0_80] : memref<2x8x32xf32, #tpu.memory_space<vmem>>, vector<2x8x32xf32>
      tpu.vector_store %arg17[%c0_78, %c0_79, %c0_80], %171 {strides = array<i32>} : memref<2x8x32xf32, #tpu.memory_space<vmem>>, vector<2x8x32xf32>,
    } else {
    }
    %c0 = arith.constant 0 : index
    %c0_1 = arith.constant 0 : index
    %c0_2 = arith.constant 0 : index
    %3 = vector.load %arg17[%c0, %c0_1, %c0_2] : memref<2x8x32xf32, #tpu.memory_space<vmem>>, vector<2x8x32xf32>
    %c0_3 = arith.constant 0 : index
    %c0_4 = arith.constant 0 : index
    %c0_5 = arith.constant 0 : index
    %4 = vector.load %arg3[%c0_3, %c0_4, %c0_5] : memref<2x1x8xf32, #tpu.memory_space<vmem>>, vector<2x1x8xf32>
    %cst = arith.constant 0.000000e+00 : f32
    %5 = vector.broadcast %cst : f32 to vector<2x1x8xf32>
    %6 = arith.cmpf ogt, %4, %5 : vector<2x1x8xf32>
    %cst_6 = arith.constant 0.000000e+00 : f32
    %cst_7 = arith.constant -1.000000e+10 : f32
    %7 = vector.broadcast %cst_6 : f32 to vector<2x1x8xf32>
    %8 = vector.broadcast %cst_7 : f32 to vector<2x1x8xf32>
    %9 = arith.select %6, %7, %8 : vector<2x1x8xi1>, vector<2x1x8xf32>
    %10 = vector.shape_cast %3 : vector<2x8x32xf32> to vector<16x32xf32>
    %11 = arith.truncf %10 : vector<16x32xf32> to vector<16x32xbf16>
    %c0_8 = arith.constant 0 : index
    %c0_9 = arith.constant 0 : index
    %c0_10 = arith.constant 0 : index
    %12 = vector.load %arg4[%c0_8, %c0_9, %c0_10] : memref<1x32x96xbf16, #tpu.memory_space<vmem>>, vector<1x32x96xbf16>
    %13 = vector.shape_cast %12 : vector<1x32x96xbf16> to vector<32x96xbf16>
    %cst_11 = arith.constant dense<0.000000e+00> : vector<16x96xf32>
    %14 = tpu.matmul %11, %13, %cst_11 {dimension_numbers = #tpu.dot_dimension_numbers<[1], [0], [0], [1], [0, 0, 1, 1], [], []>} : vector<16x32xbf16>, vector<32x96xbf16>, vector<16x96xf32> -> vector<16x96xf32>
    %c0_12 = arith.constant 0 : index
    %c0_13 = arith.constant 0 : index
    %c0_14 = arith.constant 0 : index
    %15 = vector.load %arg5[%c0_12, %c0_13, %c0_14] : memref<1x1x96xf32, #tpu.memory_space<vmem>>, vector<1x1x96xf32>
    %16 = vector.shape_cast %15 : vector<1x1x96xf32> to vector<1x96xf32>
    %17 = vector.broadcast %16 : vector<1x96xf32> to vector<16x96xf32>
    %18 = arith.addf %14, %17 : vector<16x96xf32>
    %19 = vector.shape_cast %18 : vector<16x96xf32> to vector<2x8x96xf32>
    %20 = vector.extract_strided_slice %19 {offsets = [0, 0, 0], sizes = [2, 8, 32], strides = [1, 1, 1]} : vector<2x8x96xf32> to vector<2x8x32xf32>
    %21 = vector.extract_strided_slice %19 {offsets = [0, 0, 32], sizes = [2, 8, 32], strides = [1, 1, 1]} : vector<2x8x96xf32> to vector<2x8x32xf32>
    %22 = vector.extract_strided_slice %19 {offsets = [0, 0, 64], sizes = [2, 8, 32], strides = [1, 1, 1]} : vector<2x8x96xf32> to vector<2x8x32xf32>
    %c0_15 = arith.constant 0 : index
    %c0_16 = arith.constant 0 : index
    %c0_17 = arith.constant 0 : index
    %23 = vector.load %arg6[%c0_15, %c0_16, %c0_17] : memref<1x32x32xbf16, #tpu.memory_space<vmem>>, vector<1x32x32xbf16>
    %24 = vector.shape_cast %23 : vector<1x32x32xbf16> to vector<32x32xbf16>
    %cst_18 = arith.constant 0.000000e+00 : f32
    %25 = vector.broadcast %cst_18 : f32 to vector<16x32xf32>
    %26 = vector.extract_strided_slice %20 {offsets = [0, 0, 0], sizes = [2, 8, 16], strides = [1, 1, 1]} : vector<2x8x32xf32> to vector<2x8x16xf32>
    %27 = arith.truncf %26 : vector<2x8x16xf32> to vector<2x8x16xbf16>
    %28 = vector.extract_strided_slice %21 {offsets = [0, 0, 0], sizes = [2, 8, 16], strides = [1, 1, 1]} : vector<2x8x32xf32> to vector<2x8x16xf32>
    %29 = arith.truncf %28 : vector<2x8x16xf32> to vector<2x8x16xbf16>
    %30 = vector.extract_strided_slice %22 {offsets = [0, 0, 0], sizes = [2, 8, 16], strides = [1, 1, 1]} : vector<2x8x32xf32> to vector<2x8x16xf32>
    %31 = arith.truncf %30 : vector<2x8x16xf32> to vector<2x8x16xbf16>
    "tpu.trace_start"() <{level = 10 : i32, message = "bqd,bkd->bqk"}> : () -> ()
    %cst_19 = arith.constant dense<0.000000e+00> : vector<2x8x8xf32>
    %32 = tpu.matmul %27, %29, %cst_19 {dimension_numbers = #tpu.dot_dimension_numbers<[2], [2], [1], [1], [0, 0, 0, 1, 1, 1], [0], [0]>} : vector<2x8x16xbf16>, vector<2x8x16xbf16>, vector<2x8x8xf32> -> vector<2x8x8xf32>
    "tpu.trace_stop"() : () -> ()
    %cst_20 = arith.constant 2.500000e-01 : f32
    %33 = vector.broadcast %cst_20 : f32 to vector<2x8x8xf32>
    %34 = arith.mulf %32, %33 : vector<2x8x8xf32>
    %35 = vector.broadcast %9 : vector<2x1x8xf32> to vector<2x8x8xf32>
    %36 = arith.addf %34, %35 : vector<2x8x8xf32>
    %cst_21 = arith.constant dense<0xFF800000> : vector<2x8xf32>
    %37 = vector.multi_reduction <maximumf>, %36, %cst_21 [2] : vector<2x8x8xf32> to vector<2x8xf32>
    %38 = vector.shape_cast %37 : vector<2x8xf32> to vector<2x8x1xf32>
    %39 = vector.broadcast %38 : vector<2x8x1xf32> to vector<2x8x8xf32>
    %40 = arith.subf %36, %39 : vector<2x8x8xf32>
    %41 = math.exp %40 : vector<2x8x8xf32>
    %cst_22 = arith.constant dense<0.000000e+00> : vector<2x8xf32>
    %42 = vector.multi_reduction <add>, %41, %cst_22 [2] : vector<2x8x8xf32> to vector<2x8xf32>
    %43 = vector.shape_cast %42 : vector<2x8xf32> to vector<2x8x1xf32>
    %44 = tpu.reciprocal %43 {approx = true} : vector<2x8x1xf32> -> vector<2x8x1xf32>
    %45 = vector.broadcast %44 : vector<2x8x1xf32> to vector<2x8x8xf32>
    %46 = arith.mulf %41, %45 : vector<2x8x8xf32>
    %47 = arith.truncf %46 : vector<2x8x8xf32> to vector<2x8x8xbf16>
    "tpu.trace_start"() <{level = 10 : i32, message = "bqk,bkd->bqd"}> : () -> ()
    %cst_23 = arith.constant dense<0.000000e+00> : vector<2x8x16xf32>
    %48 = tpu.matmul %47, %31, %cst_23 {dimension_numbers = #tpu.dot_dimension_numbers<[2], [1], [1], [2], [0, 0, 0, 1, 1, 2], [0], [0]>} : vector<2x8x8xbf16>, vector<2x8x16xbf16>, vector<2x8x16xf32> -> vector<2x8x16xf32>
    "tpu.trace_stop"() : () -> ()
    %49 = vector.shape_cast %48 : vector<2x8x16xf32> to vector<16x16xf32>
    %50 = arith.truncf %49 : vector<16x16xf32> to vector<16x16xbf16>
    %51 = vector.extract_strided_slice %24 {offsets = [0, 0], sizes = [16, 32], strides = [1, 1]} : vector<32x32xbf16> to vector<16x32xbf16>
    %cst_24 = arith.constant dense<0.000000e+00> : vector<16x32xf32>
    %52 = tpu.matmul %50, %51, %cst_24 {dimension_numbers = #tpu.dot_dimension_numbers<[1], [0], [0], [1], [0, 0, 1, 1], [], []>} : vector<16x16xbf16>, vector<16x32xbf16>, vector<16x32xf32> -> vector<16x32xf32>
    %53 = arith.addf %25, %52 : vector<16x32xf32>
    %54 = vector.extract_strided_slice %20 {offsets = [0, 0, 16], sizes = [2, 8, 16], strides = [1, 1, 1]} : vector<2x8x32xf32> to vector<2x8x16xf32>
    %55 = arith.truncf %54 : vector<2x8x16xf32> to vector<2x8x16xbf16>
    %56 = vector.extract_strided_slice %21 {offsets = [0, 0, 16], sizes = [2, 8, 16], strides = [1, 1, 1]} : vector<2x8x32xf32> to vector<2x8x16xf32>
    %57 = arith.truncf %56 : vector<2x8x16xf32> to vector<2x8x16xbf16>
    %58 = vector.extract_strided_slice %22 {offsets = [0, 0, 16], sizes = [2, 8, 16], strides = [1, 1, 1]} : vector<2x8x32xf32> to vector<2x8x16xf32>
    %59 = arith.truncf %58 : vector<2x8x16xf32> to vector<2x8x16xbf16>
    "tpu.trace_start"() <{level = 10 : i32, message = "bqd,bkd->bqk"}> : () -> ()
    %cst_25 = arith.constant dense<0.000000e+00> : vector<2x8x8xf32>
    %60 = tpu.matmul %55, %57, %cst_25 {dimension_numbers = #tpu.dot_dimension_numbers<[2], [2], [1], [1], [0, 0, 0, 1, 1, 1], [0], [0]>} : vector<2x8x16xbf16>, vector<2x8x16xbf16>, vector<2x8x8xf32> -> vector<2x8x8xf32>
    "tpu.trace_stop"() : () -> ()
    %cst_26 = arith.constant 2.500000e-01 : f32
    %61 = vector.broadcast %cst_26 : f32 to vector<2x8x8xf32>
    %62 = arith.mulf %60, %61 : vector<2x8x8xf32>
    %63 = vector.broadcast %9 : vector<2x1x8xf32> to vector<2x8x8xf32>
    %64 = arith.addf %62, %63 : vector<2x8x8xf32>
    %cst_27 = arith.constant dense<0xFF800000> : vector<2x8xf32>
    %65 = vector.multi_reduction <maximumf>, %64, %cst_27 [2] : vector<2x8x8xf32> to vector<2x8xf32>
    %66 = vector.shape_cast %65 : vector<2x8xf32> to vector<2x8x1xf32>
    %67 = vector.broadcast %66 : vector<2x8x1xf32> to vector<2x8x8xf32>
    %68 = arith.subf %64, %67 : vector<2x8x8xf32>
    %69 = math.exp %68 : vector<2x8x8xf32>
    %cst_28 = arith.constant dense<0.000000e+00> : vector<2x8xf32>
    %70 = vector.multi_reduction <add>, %69, %cst_28 [2] : vector<2x8x8xf32> to vector<2x8xf32>
    %71 = vector.shape_cast %70 : vector<2x8xf32> to vector<2x8x1xf32>
    %72 = tpu.reciprocal %71 {approx = true} : vector<2x8x1xf32> -> vector<2x8x1xf32>
    %73 = vector.broadcast %72 : vector<2x8x1xf32> to vector<2x8x8xf32>
    %74 = arith.mulf %69, %73 : vector<2x8x8xf32>
    %75 = arith.truncf %74 : vector<2x8x8xf32> to vector<2x8x8xbf16>
    "tpu.trace_start"() <{level = 10 : i32, message = "bqk,bkd->bqd"}> : () -> ()
    %cst_29 = arith.constant dense<0.000000e+00> : vector<2x8x16xf32>
    %76 = tpu.matmul %75, %59, %cst_29 {dimension_numbers = #tpu.dot_dimension_numbers<[2], [1], [1], [2], [0, 0, 0, 1, 1, 2], [0], [0]>} : vector<2x8x8xbf16>, vector<2x8x16xbf16>, vector<2x8x16xf32> -> vector<2x8x16xf32>
    "tpu.trace_stop"() : () -> ()
    %77 = vector.shape_cast %76 : vector<2x8x16xf32> to vector<16x16xf32>
    %78 = arith.truncf %77 : vector<16x16xf32> to vector<16x16xbf16>
    %79 = vector.extract_strided_slice %24 {offsets = [16, 0], sizes = [16, 32], strides = [1, 1]} : vector<32x32xbf16> to vector<16x32xbf16>
    %cst_30 = arith.constant dense<0.000000e+00> : vector<16x32xf32>
    %80 = tpu.matmul %78, %79, %cst_30 {dimension_numbers = #tpu.dot_dimension_numbers<[1], [0], [0], [1], [0, 0, 1, 1], [], []>} : vector<16x16xbf16>, vector<16x32xbf16>, vector<16x32xf32> -> vector<16x32xf32>
    %81 = arith.addf %53, %80 : vector<16x32xf32>
    %82 = vector.shape_cast %81 : vector<16x32xf32> to vector<2x8x32xf32>
    %c0_31 = arith.constant 0 : index
    %c0_32 = arith.constant 0 : index
    %c0_33 = arith.constant 0 : index
    %83 = vector.load %arg7[%c0_31, %c0_32, %c0_33] : memref<1x1x32xf32, #tpu.memory_space<vmem>>, vector<1x1x32xf32>
    %84 = vector.shape_cast %83 : vector<1x1x32xf32> to vector<1x32xf32>
    %85 = vector.shape_cast %84 : vector<1x32xf32> to vector<1x1x32xf32>
    %86 = vector.broadcast %85 : vector<1x1x32xf32> to vector<2x8x32xf32>
    %87 = arith.addf %82, %86 : vector<2x8x32xf32>
    %88 = arith.addf %87, %3 : vector<2x8x32xf32>
    %c0_34 = arith.constant 0 : index
    %c0_35 = arith.constant 0 : index
    %c0_36 = arith.constant 0 : index
    %89 = vector.load %arg8[%c0_34, %c0_35, %c0_36] : memref<1x1x32xf32, #tpu.memory_space<vmem>>, vector<1x1x32xf32>
    %90 = vector.shape_cast %89 : vector<1x1x32xf32> to vector<1x32xf32>
    %c0_37 = arith.constant 0 : index
    %c0_38 = arith.constant 0 : index
    %c0_39 = arith.constant 0 : index
    %91 = vector.load %arg9[%c0_37, %c0_38, %c0_39] : memref<1x1x32xf32, #tpu.memory_space<vmem>>, vector<1x1x32xf32>
    %92 = vector.shape_cast %91 : vector<1x1x32xf32> to vector<1x32xf32>
    %cst_40 = arith.constant dense<0.000000e+00> : vector<2x8xf32>
    %93 = vector.multi_reduction <add>, %88, %cst_40 [2] : vector<2x8x32xf32> to vector<2x8xf32>
    %94 = vector.shape_cast %93 : vector<2x8xf32> to vector<2x8x1xf32>
    %cst_41 = arith.constant 3.200000e+01 : f32
    %95 = vector.broadcast %cst_41 : f32 to vector<2x8x1xf32>
    %96 = arith.divf %94, %95 : vector<2x8x1xf32>
    %97 = vector.broadcast %96 : vector<2x8x1xf32> to vector<2x8x32xf32>
    %98 = arith.subf %88, %97 : vector<2x8x32xf32>
    %99 = arith.mulf %98, %98 : vector<2x8x32xf32>
    %cst_42 = arith.constant dense<0.000000e+00> : vector<2x8xf32>
    %100 = vector.multi_reduction <add>, %99, %cst_42 [2] : vector<2x8x32xf32> to vector<2x8xf32>
    %101 = vector.shape_cast %100 : vector<2x8xf32> to vector<2x8x1xf32>
    %cst_43 = arith.constant 3.200000e+01 : f32
    %102 = vector.broadcast %cst_43 : f32 to vector<2x8x1xf32>
    %103 = arith.divf %101, %102 : vector<2x8x1xf32>
    %104 = vector.broadcast %96 : vector<2x8x1xf32> to vector<2x8x32xf32>
    %105 = arith.subf %88, %104 : vector<2x8x32xf32>
    %cst_44 = arith.constant 9.99999974E-6 : f32
    %106 = vector.broadcast %cst_44 : f32 to vector<2x8x1xf32>
    %107 = arith.addf %103, %106 : vector<2x8x1xf32>
    %108 = math.rsqrt %107 : vector<2x8x1xf32>
    %109 = vector.broadcast %108 : vector<2x8x1xf32> to vector<2x8x32xf32>
    %110 = arith.mulf %105, %109 : vector<2x8x32xf32>
    %111 = vector.shape_cast %90 : vector<1x32xf32> to vector<1x1x32xf32>
    %112 = vector.broadcast %111 : vector<1x1x32xf32> to vector<2x8x32xf32>
    %113 = arith.mulf %110, %112 : vector<2x8x32xf32>
    %114 = vector.shape_cast %92 : vector<1x32xf32> to vector<1x1x32xf32>
    %115 = vector.broadcast %114 : vector<1x1x32xf32> to vector<2x8x32xf32>
    %116 = arith.addf %113, %115 : vector<2x8x32xf32>
    %117 = vector.shape_cast %116 : vector<2x8x32xf32> to vector<16x32xf32>
    %118 = arith.truncf %117 : vector<16x32xf32> to vector<16x32xbf16>
    %c0_45 = arith.constant 0 : index
    %c0_46 = arith.constant 0 : index
    %c0_47 = arith.constant 0 : index
    %119 = vector.load %arg10[%c0_45, %c0_46, %c0_47] : memref<1x32x64xbf16, #tpu.memory_space<vmem>>, vector<1x32x64xbf16>
    %120 = vector.shape_cast %119 : vector<1x32x64xbf16> to vector<32x64xbf16>
    %cst_48 = arith.constant dense<0.000000e+00> : vector<16x64xf32>
    %121 = tpu.matmul %118, %120, %cst_48 {dimension_numbers = #tpu.dot_dimension_numbers<[1], [0], [0], [1], [0, 0, 1, 1], [], []>} : vector<16x32xbf16>, vector<32x64xbf16>, vector<16x64xf32> -> vector<16x64xf32>
    %c0_49 = arith.constant 0 : index
    %c0_50 = arith.constant 0 : index
    %c0_51 = arith.constant 0 : index
    %122 = vector.load %arg11[%c0_49, %c0_50, %c0_51] : memref<1x1x64xf32, #tpu.memory_space<vmem>>, vector<1x1x64xf32>
    %123 = vector.shape_cast %122 : vector<1x1x64xf32> to vector<1x64xf32>
    %124 = vector.broadcast %123 : vector<1x64xf32> to vector<16x64xf32>
    %125 = arith.addf %121, %124 : vector<16x64xf32>
    %cst_52 = arith.constant 0.000000e+00 : f32
    %126 = vector.broadcast %cst_52 : f32 to vector<16x64xf32>
    %127 = arith.maximumf %125, %126 : vector<16x64xf32>
    %128 = arith.truncf %127 : vector<16x64xf32> to vector<16x64xbf16>
    %c0_53 = arith.constant 0 : index
    %c0_54 = arith.constant 0 : index
    %c0_55 = arith.constant 0 : index
    %129 = vector.load %arg12[%c0_53, %c0_54, %c0_55] : memref<1x64x32xbf16, #tpu.memory_space<vmem>>, vector<1x64x32xbf16>
    %130 = vector.shape_cast %129 : vector<1x64x32xbf16> to vector<64x32xbf16>
    %cst_56 = arith.constant dense<0.000000e+00> : vector<16x32xf32>
    %131 = tpu.matmul %128, %130, %cst_56 {dimension_numbers = #tpu.dot_dimension_numbers<[1], [0], [0], [1], [0, 0, 1, 1], [], []>} : vector<16x64xbf16>, vector<64x32xbf16>, vector<16x32xf32> -> vector<16x32xf32>
    %c0_57 = arith.constant 0 : index
    %c0_58 = arith.constant 0 : index
    %c0_59 = arith.constant 0 : index
    %132 = vector.load %arg13[%c0_57, %c0_58, %c0_59] : memref<1x1x32xf32, #tpu.memory_space<vmem>>, vector<1x1x32xf32>
    %133 = vector.shape_cast %132 : vector<1x1x32xf32> to vector<1x32xf32>
    %134 = vector.broadcast %133 : vector<1x32xf32> to vector<16x32xf32>
    %135 = arith.addf %131, %134 : vector<16x32xf32>
    %136 = vector.shape_cast %135 : vector<16x32xf32> to vector<2x8x32xf32>
    %137 = arith.addf %136, %116 : vector<2x8x32xf32>
    %c0_60 = arith.constant 0 : index
    %c0_61 = arith.constant 0 : index
    %c0_62 = arith.constant 0 : index
    %138 = vector.load %arg14[%c0_60, %c0_61, %c0_62] : memref<1x1x32xf32, #tpu.memory_space<vmem>>, vector<1x1x32xf32>
    %139 = vector.shape_cast %138 : vector<1x1x32xf32> to vector<1x32xf32>
    %c0_63 = arith.constant 0 : index
    %c0_64 = arith.constant 0 : index
    %c0_65 = arith.constant 0 : index
    %140 = vector.load %arg15[%c0_63, %c0_64, %c0_65] : memref<1x1x32xf32, #tpu.memory_space<vmem>>, vector<1x1x32xf32>
    %141 = vector.shape_cast %140 : vector<1x1x32xf32> to vector<1x32xf32>
    %cst_66 = arith.constant dense<0.000000e+00> : vector<2x8xf32>
    %142 = vector.multi_reduction <add>, %137, %cst_66 [2] : vector<2x8x32xf32> to vector<2x8xf32>
    %143 = vector.shape_cast %142 : vector<2x8xf32> to vector<2x8x1xf32>
    %cst_67 = arith.constant 3.200000e+01 : f32
    %144 = vector.broadcast %cst_67 : f32 to vector<2x8x1xf32>
    %145 = arith.divf %143, %144 : vector<2x8x1xf32>
    %146 = vector.broadcast %145 : vector<2x8x1xf32> to vector<2x8x32xf32>
    %147 = arith.subf %137, %146 : vector<2x8x32xf32>
    %148 = arith.mulf %147, %147 : vector<2x8x32xf32>
    %cst_68 = arith.constant dense<0.000000e+00> : vector<2x8xf32>
    %149 = vector.multi_reduction <add>, %148, %cst_68 [2] : vector<2x8x32xf32> to vector<2x8xf32>
    %150 = vector.shape_cast %149 : vector<2x8xf32> to vector<2x8x1xf32>
    %cst_69 = arith.constant 3.200000e+01 : f32
    %151 = vector.broadcast %cst_69 : f32 to vector<2x8x1xf32>
    %152 = arith.divf %150, %151 : vector<2x8x1xf32>
    %153 = vector.broadcast %145 : vector<2x8x1xf32> to vector<2x8x32xf32>
    %154 = arith.subf %137, %153 : vector<2x8x32xf32>
    %cst_70 = arith.constant 9.99999974E-6 : f32
    %155 = vector.broadcast %cst_70 : f32 to vector<2x8x1xf32>
    %156 = arith.addf %152, %155 : vector<2x8x1xf32>
    %157 = math.rsqrt %156 : vector<2x8x1xf32>
    %158 = vector.broadcast %157 : vector<2x8x1xf32> to vector<2x8x32xf32>
    %159 = arith.mulf %154, %158 : vector<2x8x32xf32>
    %160 = vector.shape_cast %139 : vector<1x32xf32> to vector<1x1x32xf32>
    %161 = vector.broadcast %160 : vector<1x1x32xf32> to vector<2x8x32xf32>
    %162 = arith.mulf %159, %161 : vector<2x8x32xf32>
    %163 = vector.shape_cast %141 : vector<1x32xf32> to vector<1x1x32xf32>
    %164 = vector.broadcast %163 : vector<1x1x32xf32> to vector<2x8x32xf32>
    %165 = arith.addf %162, %164 : vector<2x8x32xf32>
    %c0_71 = arith.constant 0 : index
    %c0_72 = arith.constant 0 : index
    %c0_73 = arith.constant 0 : index
    %166 = vector.load %arg17[%c0_71, %c0_72, %c0_73] : memref<2x8x32xf32, #tpu.memory_space<vmem>>, vector<2x8x32xf32>
    tpu.vector_store %arg17[%c0_71, %c0_72, %c0_73], %165 {strides = array<i32>} : memref<2x8x32xf32, #tpu.memory_space<vmem>>, vector<2x8x32xf32>,
    %c1_i32 = arith.constant 1 : i32
    %167 = arith.cmpi eq, %arg1, %c1_i32 : i32
    %168 = arith.extui %167 : i1 to i32
    %c0_i32_74 = arith.constant 0 : i32
    %169 = arith.cmpi ne, %168, %c0_i32_74 : i32
    scf.if %169 {
      %170 = arith.truncf %165 : vector<2x8x32xf32> to vector<2x8x32xbf16>
      %c0_75 = arith.constant 0 : index
      %c0_76 = arith.constant 0 : index
      %c0_77 = arith.constant 0 : index
      %171 = vector.load %arg16[%c0_75, %c0_76, %c0_77] : memref<2x8x32xbf16, #tpu.memory_space<vmem>>, vector<2x8x32xbf16>
      tpu.vector_store %arg16[%c0_75, %c0_76, %c0_77], %170 {strides = array<i32>} : memref<2x8x32xbf16, #tpu.memory_space<vmem>>, vector<2x8x32xbf16>,
    } else {
    }
    return
  }
  func.func @transform_0(%arg0: i32, %arg1: i32) -> (i32, i32, i32) {
    %c0_i32 = arith.constant 0 : i32
    %c0_i32_0 = arith.constant 0 : i32
    %c0_i32_1 = arith.constant 0 : i32
    return %arg0, %c0_i32, %c0_i32_0 : i32, i32, i32
  }
  func.func @transform_1(%arg0: i32, %arg1: i32) -> (i32, i32, i32) {
    %c0_i32 = arith.constant 0 : i32
    %c0_i32_0 = arith.constant 0 : i32
    %c0_i32_1 = arith.constant 0 : i32
    return %arg0, %c0_i32, %c0_i32_0 : i32, i32, i32
  }
  func.func @transform_2(%arg0: i32, %arg1: i32) -> (i32, i32, i32) {
    %c0_i32 = arith.constant 0 : i32
    %c0_i32_0 = arith.constant 0 : i32
    %c0_i32_1 = arith.constant 0 : i32
    return %arg1, %c0_i32, %c0_i32_0 : i32, i32, i32
  }
  func.func @transform_3(%arg0: i32, %arg1: i32) -> (i32, i32, i32) {
    %c0_i32 = arith.constant 0 : i32
    %c0_i32_0 = arith.constant 0 : i32
    %c0_i32_1 = arith.constant 0 : i32
    return %arg1, %c0_i32, %c0_i32_0 : i32, i32, i32
  }
  func.func @transform_4(%arg0: i32, %arg1: i32) -> (i32, i32, i32) {
    %c0_i32 = arith.constant 0 : i32
    %c0_i32_0 = arith.constant 0 : i32
    %c0_i32_1 = arith.constant 0 : i32
    return %arg1, %c0_i32, %c0_i32_0 : i32, i32, i32
  }
  func.func @transform_5(%arg0: i32, %arg1: i32) -> (i32, i32, i32) {
    %c0_i32 = arith.constant 0 : i32
    %c0_i32_0 = arith.constant 0 : i32
    %c0_i32_1 = arith.constant 0 : i32
    return %arg1, %c0_i32, %c0_i32_0 : i32, i32, i32
  }
  func.func @transform_6(%arg0: i32, %arg1: i32) -> (i32, i32, i32) {
    %c0_i32 = arith.constant 0 : i32
    %c0_i32_0 = arith.constant 0 : i32
    %c0_i32_1 = arith.constant 0 : i32
    return %arg1, %c0_i32, %c0_i32_0 : i32, i32, i32
  }
  func.func @transform_7(%arg0: i32, %arg1: i32) -> (i32, i32, i32) {
    %c0_i32 = arith.constant 0 : i32
    %c0_i32_0 = arith.constant 0 : i32
    %c0_i32_1 = arith.constant 0 : i32
    return %arg1, %c0_i32, %c0_i32_0 : i32, i32, i32
  }
  func.func @transform_8(%arg0: i32, %arg1: i32) -> (i32, i32, i32) {
    %c0_i32 = arith.constant 0 : i32
    %c0_i32_0 = arith.constant 0 : i32
    %c0_i32_1 = arith.constant 0 : i32
    return %arg1, %c0_i32, %c0_i32_0 : i32, i32, i32
  }
  func.func @transform_9(%arg0: i32, %arg1: i32) -> (i32, i32, i32) {
    %c0_i32 = arith.constant 0 : i32
    %c0_i32_0 = arith.constant 0 : i32
    %c0_i32_1 = arith.constant 0 : i32
    return %arg1, %c0_i32, %c0_i32_0 : i32, i32, i32
  }
  func.func @transform_10(%arg0: i32, %arg1: i32) -> (i32, i32, i32) {
    %c0_i32 = arith.constant 0 : i32
    %c0_i32_0 = arith.constant 0 : i32
    %c0_i32_1 = arith.constant 0 : i32
    return %arg1, %c0_i32, %c0_i32_0 : i32, i32, i32
  }
  func.func @transform_11(%arg0: i32, %arg1: i32) -> (i32, i32, i32) {
    %c0_i32 = arith.constant 0 : i32
    %c0_i32_0 = arith.constant 0 : i32
    %c0_i32_1 = arith.constant 0 : i32
    return %arg1, %c0_i32, %c0_i32_0 : i32, i32, i32
  }
  func.func @transform_12(%arg0: i32, %arg1: i32) -> (i32, i32, i32) {
    %c0_i32 = arith.constant 0 : i32
    %c0_i32_0 = arith.constant 0 : i32
    %c0_i32_1 = arith.constant 0 : i32
    return %arg1, %c0_i32, %c0_i32_0 : i32, i32, i32
  }
  func.func @transform_13(%arg0: i32, %arg1: i32) -> (i32, i32, i32) {
    %c0_i32 = arith.constant 0 : i32
    %c0_i32_0 = arith.constant 0 : i32
    %c0_i32_1 = arith.constant 0 : i32
    return %arg1, %c0_i32, %c0_i32_0 : i32, i32, i32
  }
  func.func @transform_14(%arg0: i32, %arg1: i32) -> (i32, i32, i32) {
    %c0_i32 = arith.constant 0 : i32
    %c0_i32_0 = arith.constant 0 : i32
    %c0_i32_1 = arith.constant 0 : i32
    return %arg0, %c0_i32, %c0_i32_0 : i32, i32, i32
  }
}

module attributes {stable_mosaic.version = 11 : i64} {
  func.func @_proj_kernel(%arg0: i32, %arg1: memref<2x8x32xbf16, #tpu.memory_space<vmem>>, %arg2: memref<32x16xbf16, #tpu.memory_space<vmem>>, %arg3: memref<1x16xf32, #tpu.memory_space<vmem>>, %arg4: memref<2x8x16xf32, #tpu.memory_space<vmem>>) attributes {dimension_semantics = [#tpu.dimension_semantics<parallel>], iteration_bounds = array<i64: 1>, scalar_prefetch = 0 : i64, scratch_operands = 0 : i64, tpu.core_type = #tpu.core_type<tc>, window_params = [{transform_indices = @transform_0, window_bounds = array<i64: 2, 8, 32>}, {pipeline_mode = #tpu.pipeline_mode<synchronous>, transform_indices = @transform_1, window_bounds = array<i64: 32, 16>}, {pipeline_mode = #tpu.pipeline_mode<synchronous>, transform_indices = @transform_2, window_bounds = array<i64: 1, 16>}, {transform_indices = @transform_3, window_bounds = array<i64: 2, 8, 16>}]} {
    %c0 = arith.constant 0 : index
    %c0_0 = arith.constant 0 : index
    %c0_1 = arith.constant 0 : index
    %0 = vector.load %arg1[%c0, %c0_0, %c0_1] : memref<2x8x32xbf16, #tpu.memory_space<vmem>>, vector<2x8x32xbf16>
    %1 = vector.shape_cast %0 : vector<2x8x32xbf16> to vector<16x32xbf16>
    %c0_2 = arith.constant 0 : index
    %c0_3 = arith.constant 0 : index
    %2 = vector.load %arg2[%c0_2, %c0_3] : memref<32x16xbf16, #tpu.memory_space<vmem>>, vector<32x16xbf16>
    %cst = arith.constant dense<0.000000e+00> : vector<16x16xf32>
    %3 = tpu.matmul %1, %2, %cst {dimension_numbers = #tpu.dot_dimension_numbers<[1], [0], [0], [1], [0, 0, 1, 1], [], []>} : vector<16x32xbf16>, vector<32x16xbf16>, vector<16x16xf32> -> vector<16x16xf32>
    %c0_4 = arith.constant 0 : index
    %c0_5 = arith.constant 0 : index
    %4 = vector.load %arg3[%c0_4, %c0_5] : memref<1x16xf32, #tpu.memory_space<vmem>>, vector<1x16xf32>
    %5 = vector.broadcast %4 : vector<1x16xf32> to vector<16x16xf32>
    %6 = arith.addf %3, %5 : vector<16x16xf32>
    %7 = vector.shape_cast %6 : vector<16x16xf32> to vector<2x8x16xf32>
    %c0_6 = arith.constant 0 : index
    %c0_7 = arith.constant 0 : index
    %c0_8 = arith.constant 0 : index
    %8 = vector.load %arg4[%c0_6, %c0_7, %c0_8] : memref<2x8x16xf32, #tpu.memory_space<vmem>>, vector<2x8x16xf32>
    tpu.vector_store %arg4[%c0_6, %c0_7, %c0_8], %7 {strides = array<i32>} : memref<2x8x16xf32, #tpu.memory_space<vmem>>, vector<2x8x16xf32>,
    return
  }
  func.func @transform_0(%arg0: i32) -> (i32, i32, i32) {
    %c0_i32 = arith.constant 0 : i32
    %c0_i32_0 = arith.constant 0 : i32
    %c0_i32_1 = arith.constant 0 : i32
    return %arg0, %c0_i32, %c0_i32_0 : i32, i32, i32
  }
  func.func @transform_1(%arg0: i32) -> (i32, i32) {
    %c0_i32 = arith.constant 0 : i32
    %c0_i32_0 = arith.constant 0 : i32
    %c0_i32_1 = arith.constant 0 : i32
    return %c0_i32, %c0_i32_0 : i32, i32
  }
  func.func @transform_2(%arg0: i32) -> (i32, i32) {
    %c0_i32 = arith.constant 0 : i32
    %c0_i32_0 = arith.constant 0 : i32
    %c0_i32_1 = arith.constant 0 : i32
    return %c0_i32, %c0_i32_0 : i32, i32
  }
  func.func @transform_3(%arg0: i32) -> (i32, i32, i32) {
    %c0_i32 = arith.constant 0 : i32
    %c0_i32_0 = arith.constant 0 : i32
    %c0_i32_1 = arith.constant 0 : i32
    return %arg0, %c0_i32, %c0_i32_0 : i32, i32, i32
  }
}

module attributes {stable_mosaic.version = 11 : i64} {
  func.func @_decoder_layers_kernel(%arg0: i32, %arg1: i32, %arg2: memref<2x8x32xbf16, #tpu.memory_space<vmem>>, %arg3: memref<2x8x32xbf16, #tpu.memory_space<vmem>>, %arg4: memref<2x1x8xf32, #tpu.memory_space<vmem>>, %arg5: memref<2x1x8xf32, #tpu.memory_space<vmem>>, %arg6: memref<1x32x96xbf16, #tpu.memory_space<vmem>>, %arg7: memref<1x1x96xf32, #tpu.memory_space<vmem>>, %arg8: memref<1x32x32xbf16, #tpu.memory_space<vmem>>, %arg9: memref<1x1x32xf32, #tpu.memory_space<vmem>>, %arg10: memref<1x1x32xf32, #tpu.memory_space<vmem>>, %arg11: memref<1x1x32xf32, #tpu.memory_space<vmem>>, %arg12: memref<1x32x32xbf16, #tpu.memory_space<vmem>>, %arg13: memref<1x1x32xf32, #tpu.memory_space<vmem>>, %arg14: memref<1x32x64xbf16, #tpu.memory_space<vmem>>, %arg15: memref<1x1x64xf32, #tpu.memory_space<vmem>>, %arg16: memref<1x32x32xbf16, #tpu.memory_space<vmem>>, %arg17: memref<1x1x32xf32, #tpu.memory_space<vmem>>, %arg18: memref<1x1x32xf32, #tpu.memory_space<vmem>>, %arg19: memref<1x1x32xf32, #tpu.memory_space<vmem>>, %arg20: memref<1x32x64xbf16, #tpu.memory_space<vmem>>, %arg21: memref<1x1x64xf32, #tpu.memory_space<vmem>>, %arg22: memref<1x64x32xbf16, #tpu.memory_space<vmem>>, %arg23: memref<1x1x32xf32, #tpu.memory_space<vmem>>, %arg24: memref<1x1x32xf32, #tpu.memory_space<vmem>>, %arg25: memref<1x1x32xf32, #tpu.memory_space<vmem>>, %arg26: memref<2x8x32xbf16, #tpu.memory_space<vmem>>, %arg27: memref<2x2x8x8xf32, #tpu.memory_space<vmem>>, %arg28: memref<2x8x32xf32, #tpu.memory_space<vmem>>) attributes {dimension_semantics = [#tpu.dimension_semantics<parallel>, #tpu.dimension_semantics<arbitrary>], iteration_bounds = array<i64: 1, 2>, scalar_prefetch = 0 : i64, scratch_operands = 1 : i64, tpu.core_type = #tpu.core_type<tc>, window_params = [{transform_indices = @transform_0, window_bounds = array<i64: 2, 8, 32>}, {transform_indices = @transform_1, window_bounds = array<i64: 2, 8, 32>}, {transform_indices = @transform_2, window_bounds = array<i64: 2, 1, 8>}, {transform_indices = @transform_3, window_bounds = array<i64: 2, 1, 8>}, {transform_indices = @transform_4, window_bounds = array<i64: 1, 32, 96>}, {transform_indices = @transform_5, window_bounds = array<i64: 1, 1, 96>}, {transform_indices = @transform_6, window_bounds = array<i64: 1, 32, 32>}, {transform_indices = @transform_7, window_bounds = array<i64: 1, 1, 32>}, {transform_indices = @transform_8, window_bounds = array<i64: 1, 1, 32>}, {transform_indices = @transform_9, window_bounds = array<i64: 1, 1, 32>}, {transform_indices = @transform_10, window_bounds = array<i64: 1, 32, 32>}, {transform_indices = @transform_11, window_bounds = array<i64: 1, 1, 32>}, {transform_indices = @transform_12, window_bounds = array<i64: 1, 32, 64>}, {transform_indices = @transform_13, window_bounds = array<i64: 1, 1, 64>}, {transform_indices = @transform_14, window_bounds = array<i64: 1, 32, 32>}, {transform_indices = @transform_15, window_bounds = array<i64: 1, 1, 32>}, {transform_indices = @transform_16, window_bounds = array<i64: 1, 1, 32>}, {transform_indices = @transform_17, window_bounds = array<i64: 1, 1, 32>}, {transform_indices = @transform_18, window_bounds = array<i64: 1, 32, 64>}, {transform_indices = @transform_19, window_bounds = array<i64: 1, 1, 64>}, {transform_indices = @transform_20, window_bounds = array<i64: 1, 64, 32>}, {transform_indices = @transform_21, window_bounds = array<i64: 1, 1, 32>}, {transform_indices = @transform_22, window_bounds = array<i64: 1, 1, 32>}, {transform_indices = @transform_23, window_bounds = array<i64: 1, 1, 32>}, {transform_indices = @transform_24, window_bounds = array<i64: 2, 8, 32>}, {transform_indices = @transform_25, window_bounds = array<i64: 2, 2, 8, 8>}]} {
    %c0_i32 = arith.constant 0 : i32
    %0 = arith.cmpi eq, %arg1, %c0_i32 : i32
    %1 = arith.extui %0 : i1 to i32
    %c0_i32_0 = arith.constant 0 : i32
    %2 = arith.cmpi ne, %1, %c0_i32_0 : i32
    scf.if %2 {
      %c0_137 = arith.constant 0 : index
      %c0_138 = arith.constant 0 : index
      %c0_139 = arith.constant 0 : index
      %304 = vector.load %arg2[%c0_137, %c0_138, %c0_139] : memref<2x8x32xbf16, #tpu.memory_space<vmem>>, vector<2x8x32xbf16>
      %305 = arith.extf %304 : vector<2x8x32xbf16> to vector<2x8x32xf32>
      %c0_140 = arith.constant 0 : index
      %c0_141 = arith.constant 0 : index
      %c0_142 = arith.constant 0 : index
      %306 = vector.load %arg28[%c0_140, %c0_141, %c0_142] : memref<2x8x32xf32, #tpu.memory_space<vmem>>, vector<2x8x32xf32>
      tpu.vector_store %arg28[%c0_140, %c0_141, %c0_142], %305 {strides = array<i32>} : memref<2x8x32xf32, #tpu.memory_space<vmem>>, vector<2x8x32xf32>,
    } else {
    }
    %c0 = arith.constant 0 : index
    %c0_1 = arith.constant 0 : index
    %c0_2 = arith.constant 0 : index
    %3 = vector.load %arg28[%c0, %c0_1, %c0_2] : memref<2x8x32xf32, #tpu.memory_space<vmem>>, vector<2x8x32xf32>
    %c0_3 = arith.constant 0 : index
    %c0_4 = arith.constant 0 : index
    %c0_5 = arith.constant 0 : index
    %4 = vector.load %arg4[%c0_3, %c0_4, %c0_5] : memref<2x1x8xf32, #tpu.memory_space<vmem>>, vector<2x1x8xf32>
    %cst = arith.constant 0.000000e+00 : f32
    %5 = vector.broadcast %cst : f32 to vector<2x1x8xf32>
    %6 = arith.cmpf ogt, %4, %5 : vector<2x1x8xf32>
    %cst_6 = arith.constant 0.000000e+00 : f32
    %cst_7 = arith.constant -1.000000e+10 : f32
    %7 = vector.broadcast %cst_6 : f32 to vector<2x1x8xf32>
    %8 = vector.broadcast %cst_7 : f32 to vector<2x1x8xf32>
    %9 = arith.select %6, %7, %8 : vector<2x1x8xi1>, vector<2x1x8xf32>
    %c0_8 = arith.constant 0 : index
    %c0_9 = arith.constant 0 : index
    %c0_10 = arith.constant 0 : index
    %10 = vector.load %arg5[%c0_8, %c0_9, %c0_10] : memref<2x1x8xf32, #tpu.memory_space<vmem>>, vector<2x1x8xf32>
    %cst_11 = arith.constant 0.000000e+00 : f32
    %11 = vector.broadcast %cst_11 : f32 to vector<2x1x8xf32>
    %12 = arith.cmpf ogt, %10, %11 : vector<2x1x8xf32>
    %cst_12 = arith.constant 0.000000e+00 : f32
    %cst_13 = arith.constant -1.000000e+10 : f32
    %13 = vector.broadcast %cst_12 : f32 to vector<2x1x8xf32>
    %14 = vector.broadcast %cst_13 : f32 to vector<2x1x8xf32>
    %15 = arith.select %12, %13, %14 : vector<2x1x8xi1>, vector<2x1x8xf32>
    %16 = vector.shape_cast %3 : vector<2x8x32xf32> to vector<16x32xf32>
    %17 = arith.truncf %16 : vector<16x32xf32> to vector<16x32xbf16>
    %c0_14 = arith.constant 0 : index
    %c0_15 = arith.constant 0 : index
    %c0_16 = arith.constant 0 : index
    %18 = vector.load %arg6[%c0_14, %c0_15, %c0_16] : memref<1x32x96xbf16, #tpu.memory_space<vmem>>, vector<1x32x96xbf16>
    %19 = vector.shape_cast %18 : vector<1x32x96xbf16> to vector<32x96xbf16>
    %cst_17 = arith.constant dense<0.000000e+00> : vector<16x96xf32>
    %20 = tpu.matmul %17, %19, %cst_17 {dimension_numbers = #tpu.dot_dimension_numbers<[1], [0], [0], [1], [0, 0, 1, 1], [], []>} : vector<16x32xbf16>, vector<32x96xbf16>, vector<16x96xf32> -> vector<16x96xf32>
    %c0_18 = arith.constant 0 : index
    %c0_19 = arith.constant 0 : index
    %c0_20 = arith.constant 0 : index
    %21 = vector.load %arg7[%c0_18, %c0_19, %c0_20] : memref<1x1x96xf32, #tpu.memory_space<vmem>>, vector<1x1x96xf32>
    %22 = vector.shape_cast %21 : vector<1x1x96xf32> to vector<1x96xf32>
    %23 = vector.broadcast %22 : vector<1x96xf32> to vector<16x96xf32>
    %24 = arith.addf %20, %23 : vector<16x96xf32>
    %25 = vector.shape_cast %24 : vector<16x96xf32> to vector<2x8x96xf32>
    %26 = vector.extract_strided_slice %25 {offsets = [0, 0, 0], sizes = [2, 8, 32], strides = [1, 1, 1]} : vector<2x8x96xf32> to vector<2x8x32xf32>
    %27 = vector.extract_strided_slice %25 {offsets = [0, 0, 32], sizes = [2, 8, 32], strides = [1, 1, 1]} : vector<2x8x96xf32> to vector<2x8x32xf32>
    %28 = vector.extract_strided_slice %25 {offsets = [0, 0, 64], sizes = [2, 8, 32], strides = [1, 1, 1]} : vector<2x8x96xf32> to vector<2x8x32xf32>
    %c0_21 = arith.constant 0 : index
    %c0_22 = arith.constant 0 : index
    %c0_23 = arith.constant 0 : index
    %29 = vector.load %arg8[%c0_21, %c0_22, %c0_23] : memref<1x32x32xbf16, #tpu.memory_space<vmem>>, vector<1x32x32xbf16>
    %30 = vector.shape_cast %29 : vector<1x32x32xbf16> to vector<32x32xbf16>
    %31 = tpu.iota {dimensions = array<i32: 0>} : vector<8x8xi32>
    %32 = tpu.iota {dimensions = array<i32: 1>} : vector<8x8xi32>
    %33 = arith.cmpi sge, %31, %32 : vector<8x8xi32>
    %cst_24 = arith.constant 0.000000e+00 : f32
    %cst_25 = arith.constant -1.000000e+10 : f32
    %34 = vector.broadcast %cst_24 : f32 to vector<8x8xf32>
    %35 = vector.broadcast %cst_25 : f32 to vector<8x8xf32>
    %36 = arith.select %33, %34, %35 : vector<8x8xi1>, vector<8x8xf32>
    %37 = vector.shape_cast %36 : vector<8x8xf32> to vector<1x8x8xf32>
    %38 = vector.broadcast %9 : vector<2x1x8xf32> to vector<2x8x8xf32>
    %39 = vector.broadcast %37 : vector<1x8x8xf32> to vector<2x8x8xf32>
    %40 = arith.addf %38, %39 : vector<2x8x8xf32>
    %cst_26 = arith.constant 0.000000e+00 : f32
    %41 = vector.broadcast %cst_26 : f32 to vector<16x32xf32>
    %42 = vector.extract_strided_slice %26 {offsets = [0, 0, 0], sizes = [2, 8, 16], strides = [1, 1, 1]} : vector<2x8x32xf32> to vector<2x8x16xf32>
    %43 = arith.truncf %42 : vector<2x8x16xf32> to vector<2x8x16xbf16>
    %44 = vector.extract_strided_slice %27 {offsets = [0, 0, 0], sizes = [2, 8, 16], strides = [1, 1, 1]} : vector<2x8x32xf32> to vector<2x8x16xf32>
    %45 = arith.truncf %44 : vector<2x8x16xf32> to vector<2x8x16xbf16>
    %46 = vector.extract_strided_slice %28 {offsets = [0, 0, 0], sizes = [2, 8, 16], strides = [1, 1, 1]} : vector<2x8x32xf32> to vector<2x8x16xf32>
    %47 = arith.truncf %46 : vector<2x8x16xf32> to vector<2x8x16xbf16>
    "tpu.trace_start"() <{level = 10 : i32, message = "bqd,bkd->bqk"}> : () -> ()
    %cst_27 = arith.constant dense<0.000000e+00> : vector<2x8x8xf32>
    %48 = tpu.matmul %43, %45, %cst_27 {dimension_numbers = #tpu.dot_dimension_numbers<[2], [2], [1], [1], [0, 0, 0, 1, 1, 1], [0], [0]>} : vector<2x8x16xbf16>, vector<2x8x16xbf16>, vector<2x8x8xf32> -> vector<2x8x8xf32>
    "tpu.trace_stop"() : () -> ()
    %cst_28 = arith.constant 2.500000e-01 : f32
    %49 = vector.broadcast %cst_28 : f32 to vector<2x8x8xf32>
    %50 = arith.mulf %48, %49 : vector<2x8x8xf32>
    %51 = arith.addf %50, %40 : vector<2x8x8xf32>
    %cst_29 = arith.constant dense<0xFF800000> : vector<2x8xf32>
    %52 = vector.multi_reduction <maximumf>, %51, %cst_29 [2] : vector<2x8x8xf32> to vector<2x8xf32>
    %53 = vector.shape_cast %52 : vector<2x8xf32> to vector<2x8x1xf32>
    %54 = vector.broadcast %53 : vector<2x8x1xf32> to vector<2x8x8xf32>
    %55 = arith.subf %51, %54 : vector<2x8x8xf32>
    %56 = math.exp %55 : vector<2x8x8xf32>
    %cst_30 = arith.constant dense<0.000000e+00> : vector<2x8xf32>
    %57 = vector.multi_reduction <add>, %56, %cst_30 [2] : vector<2x8x8xf32> to vector<2x8xf32>
    %58 = vector.shape_cast %57 : vector<2x8xf32> to vector<2x8x1xf32>
    %59 = tpu.reciprocal %58 {approx = true} : vector<2x8x1xf32> -> vector<2x8x1xf32>
    %60 = vector.broadcast %59 : vector<2x8x1xf32> to vector<2x8x8xf32>
    %61 = arith.mulf %56, %60 : vector<2x8x8xf32>
    %62 = arith.truncf %61 : vector<2x8x8xf32> to vector<2x8x8xbf16>
    "tpu.trace_start"() <{level = 10 : i32, message = "bqk,bkd->bqd"}> : () -> ()
    %cst_31 = arith.constant dense<0.000000e+00> : vector<2x8x16xf32>
    %63 = tpu.matmul %62, %47, %cst_31 {dimension_numbers = #tpu.dot_dimension_numbers<[2], [1], [1], [2], [0, 0, 0, 1, 1, 2], [0], [0]>} : vector<2x8x8xbf16>, vector<2x8x16xbf16>, vector<2x8x16xf32> -> vector<2x8x16xf32>
    "tpu.trace_stop"() : () -> ()
    %64 = vector.shape_cast %63 : vector<2x8x16xf32> to vector<16x16xf32>
    %65 = arith.truncf %64 : vector<16x16xf32> to vector<16x16xbf16>
    %66 = vector.extract_strided_slice %30 {offsets = [0, 0], sizes = [16, 32], strides = [1, 1]} : vector<32x32xbf16> to vector<16x32xbf16>
    %cst_32 = arith.constant dense<0.000000e+00> : vector<16x32xf32>
    %67 = tpu.matmul %65, %66, %cst_32 {dimension_numbers = #tpu.dot_dimension_numbers<[1], [0], [0], [1], [0, 0, 1, 1], [], []>} : vector<16x16xbf16>, vector<16x32xbf16>, vector<16x32xf32> -> vector<16x32xf32>
    %68 = arith.addf %41, %67 : vector<16x32xf32>
    %69 = vector.extract_strided_slice %26 {offsets = [0, 0, 16], sizes = [2, 8, 16], strides = [1, 1, 1]} : vector<2x8x32xf32> to vector<2x8x16xf32>
    %70 = arith.truncf %69 : vector<2x8x16xf32> to vector<2x8x16xbf16>
    %71 = vector.extract_strided_slice %27 {offsets = [0, 0, 16], sizes = [2, 8, 16], strides = [1, 1, 1]} : vector<2x8x32xf32> to vector<2x8x16xf32>
    %72 = arith.truncf %71 : vector<2x8x16xf32> to vector<2x8x16xbf16>
    %73 = vector.extract_strided_slice %28 {offsets = [0, 0, 16], sizes = [2, 8, 16], strides = [1, 1, 1]} : vector<2x8x32xf32> to vector<2x8x16xf32>
    %74 = arith.truncf %73 : vector<2x8x16xf32> to vector<2x8x16xbf16>
    "tpu.trace_start"() <{level = 10 : i32, message = "bqd,bkd->bqk"}> : () -> ()
    %cst_33 = arith.constant dense<0.000000e+00> : vector<2x8x8xf32>
    %75 = tpu.matmul %70, %72, %cst_33 {dimension_numbers = #tpu.dot_dimension_numbers<[2], [2], [1], [1], [0, 0, 0, 1, 1, 1], [0], [0]>} : vector<2x8x16xbf16>, vector<2x8x16xbf16>, vector<2x8x8xf32> -> vector<2x8x8xf32>
    "tpu.trace_stop"() : () -> ()
    %cst_34 = arith.constant 2.500000e-01 : f32
    %76 = vector.broadcast %cst_34 : f32 to vector<2x8x8xf32>
    %77 = arith.mulf %75, %76 : vector<2x8x8xf32>
    %78 = arith.addf %77, %40 : vector<2x8x8xf32>
    %cst_35 = arith.constant dense<0xFF800000> : vector<2x8xf32>
    %79 = vector.multi_reduction <maximumf>, %78, %cst_35 [2] : vector<2x8x8xf32> to vector<2x8xf32>
    %80 = vector.shape_cast %79 : vector<2x8xf32> to vector<2x8x1xf32>
    %81 = vector.broadcast %80 : vector<2x8x1xf32> to vector<2x8x8xf32>
    %82 = arith.subf %78, %81 : vector<2x8x8xf32>
    %83 = math.exp %82 : vector<2x8x8xf32>
    %cst_36 = arith.constant dense<0.000000e+00> : vector<2x8xf32>
    %84 = vector.multi_reduction <add>, %83, %cst_36 [2] : vector<2x8x8xf32> to vector<2x8xf32>
    %85 = vector.shape_cast %84 : vector<2x8xf32> to vector<2x8x1xf32>
    %86 = tpu.reciprocal %85 {approx = true} : vector<2x8x1xf32> -> vector<2x8x1xf32>
    %87 = vector.broadcast %86 : vector<2x8x1xf32> to vector<2x8x8xf32>
    %88 = arith.mulf %83, %87 : vector<2x8x8xf32>
    %89 = arith.truncf %88 : vector<2x8x8xf32> to vector<2x8x8xbf16>
    "tpu.trace_start"() <{level = 10 : i32, message = "bqk,bkd->bqd"}> : () -> ()
    %cst_37 = arith.constant dense<0.000000e+00> : vector<2x8x16xf32>
    %90 = tpu.matmul %89, %74, %cst_37 {dimension_numbers = #tpu.dot_dimension_numbers<[2], [1], [1], [2], [0, 0, 0, 1, 1, 2], [0], [0]>} : vector<2x8x8xbf16>, vector<2x8x16xbf16>, vector<2x8x16xf32> -> vector<2x8x16xf32>
    "tpu.trace_stop"() : () -> ()
    %91 = vector.shape_cast %90 : vector<2x8x16xf32> to vector<16x16xf32>
    %92 = arith.truncf %91 : vector<16x16xf32> to vector<16x16xbf16>
    %93 = vector.extract_strided_slice %30 {offsets = [16, 0], sizes = [16, 32], strides = [1, 1]} : vector<32x32xbf16> to vector<16x32xbf16>
    %cst_38 = arith.constant dense<0.000000e+00> : vector<16x32xf32>
    %94 = tpu.matmul %92, %93, %cst_38 {dimension_numbers = #tpu.dot_dimension_numbers<[1], [0], [0], [1], [0, 0, 1, 1], [], []>} : vector<16x16xbf16>, vector<16x32xbf16>, vector<16x32xf32> -> vector<16x32xf32>
    %95 = arith.addf %68, %94 : vector<16x32xf32>
    %96 = vector.shape_cast %95 : vector<16x32xf32> to vector<2x8x32xf32>
    %c0_39 = arith.constant 0 : index
    %c0_40 = arith.constant 0 : index
    %c0_41 = arith.constant 0 : index
    %97 = vector.load %arg9[%c0_39, %c0_40, %c0_41] : memref<1x1x32xf32, #tpu.memory_space<vmem>>, vector<1x1x32xf32>
    %98 = vector.shape_cast %97 : vector<1x1x32xf32> to vector<1x32xf32>
    %99 = vector.shape_cast %98 : vector<1x32xf32> to vector<1x1x32xf32>
    %100 = vector.broadcast %99 : vector<1x1x32xf32> to vector<2x8x32xf32>
    %101 = arith.addf %96, %100 : vector<2x8x32xf32>
    %102 = arith.addf %101, %3 : vector<2x8x32xf32>
    %c0_42 = arith.constant 0 : index
    %c0_43 = arith.constant 0 : index
    %c0_44 = arith.constant 0 : index
    %103 = vector.load %arg10[%c0_42, %c0_43, %c0_44] : memref<1x1x32xf32, #tpu.memory_space<vmem>>, vector<1x1x32xf32>
    %104 = vector.shape_cast %103 : vector<1x1x32xf32> to vector<1x32xf32>
    %c0_45 = arith.constant 0 : index
    %c0_46 = arith.constant 0 : index
    %c0_47 = arith.constant 0 : index
    %105 = vector.load %arg11[%c0_45, %c0_46, %c0_47] : memref<1x1x32xf32, #tpu.memory_space<vmem>>, vector<1x1x32xf32>
    %106 = vector.shape_cast %105 : vector<1x1x32xf32> to vector<1x32xf32>
    %cst_48 = arith.constant dense<0.000000e+00> : vector<2x8xf32>
    %107 = vector.multi_reduction <add>, %102, %cst_48 [2] : vector<2x8x32xf32> to vector<2x8xf32>
    %108 = vector.shape_cast %107 : vector<2x8xf32> to vector<2x8x1xf32>
    %cst_49 = arith.constant 3.200000e+01 : f32
    %109 = vector.broadcast %cst_49 : f32 to vector<2x8x1xf32>
    %110 = arith.divf %108, %109 : vector<2x8x1xf32>
    %111 = vector.broadcast %110 : vector<2x8x1xf32> to vector<2x8x32xf32>
    %112 = arith.subf %102, %111 : vector<2x8x32xf32>
    %113 = arith.mulf %112, %112 : vector<2x8x32xf32>
    %cst_50 = arith.constant dense<0.000000e+00> : vector<2x8xf32>
    %114 = vector.multi_reduction <add>, %113, %cst_50 [2] : vector<2x8x32xf32> to vector<2x8xf32>
    %115 = vector.shape_cast %114 : vector<2x8xf32> to vector<2x8x1xf32>
    %cst_51 = arith.constant 3.200000e+01 : f32
    %116 = vector.broadcast %cst_51 : f32 to vector<2x8x1xf32>
    %117 = arith.divf %115, %116 : vector<2x8x1xf32>
    %118 = vector.broadcast %110 : vector<2x8x1xf32> to vector<2x8x32xf32>
    %119 = arith.subf %102, %118 : vector<2x8x32xf32>
    %cst_52 = arith.constant 9.99999974E-6 : f32
    %120 = vector.broadcast %cst_52 : f32 to vector<2x8x1xf32>
    %121 = arith.addf %117, %120 : vector<2x8x1xf32>
    %122 = math.rsqrt %121 : vector<2x8x1xf32>
    %123 = vector.broadcast %122 : vector<2x8x1xf32> to vector<2x8x32xf32>
    %124 = arith.mulf %119, %123 : vector<2x8x32xf32>
    %125 = vector.shape_cast %104 : vector<1x32xf32> to vector<1x1x32xf32>
    %126 = vector.broadcast %125 : vector<1x1x32xf32> to vector<2x8x32xf32>
    %127 = arith.mulf %124, %126 : vector<2x8x32xf32>
    %128 = vector.shape_cast %106 : vector<1x32xf32> to vector<1x1x32xf32>
    %129 = vector.broadcast %128 : vector<1x1x32xf32> to vector<2x8x32xf32>
    %130 = arith.addf %127, %129 : vector<2x8x32xf32>
    %131 = vector.shape_cast %130 : vector<2x8x32xf32> to vector<16x32xf32>
    %132 = arith.truncf %131 : vector<16x32xf32> to vector<16x32xbf16>
    %c0_53 = arith.constant 0 : index
    %c0_54 = arith.constant 0 : index
    %c0_55 = arith.constant 0 : index
    %133 = vector.load %arg12[%c0_53, %c0_54, %c0_55] : memref<1x32x32xbf16, #tpu.memory_space<vmem>>, vector<1x32x32xbf16>
    %134 = vector.shape_cast %133 : vector<1x32x32xbf16> to vector<32x32xbf16>
    %cst_56 = arith.constant dense<0.000000e+00> : vector<16x32xf32>
    %135 = tpu.matmul %132, %134, %cst_56 {dimension_numbers = #tpu.dot_dimension_numbers<[1], [0], [0], [1], [0, 0, 1, 1], [], []>} : vector<16x32xbf16>, vector<32x32xbf16>, vector<16x32xf32> -> vector<16x32xf32>
    %c0_57 = arith.constant 0 : index
    %c0_58 = arith.constant 0 : index
    %c0_59 = arith.constant 0 : index
    %136 = vector.load %arg13[%c0_57, %c0_58, %c0_59] : memref<1x1x32xf32, #tpu.memory_space<vmem>>, vector<1x1x32xf32>
    %137 = vector.shape_cast %136 : vector<1x1x32xf32> to vector<1x32xf32>
    %138 = vector.broadcast %137 : vector<1x32xf32> to vector<16x32xf32>
    %139 = arith.addf %135, %138 : vector<16x32xf32>
    %140 = vector.shape_cast %139 : vector<16x32xf32> to vector<2x8x32xf32>
    %c0_60 = arith.constant 0 : index
    %c0_61 = arith.constant 0 : index
    %c0_62 = arith.constant 0 : index
    %141 = vector.load %arg3[%c0_60, %c0_61, %c0_62] : memref<2x8x32xbf16, #tpu.memory_space<vmem>>, vector<2x8x32xbf16>
    %142 = vector.shape_cast %141 : vector<2x8x32xbf16> to vector<16x32xbf16>
    %c0_63 = arith.constant 0 : index
    %c0_64 = arith.constant 0 : index
    %c0_65 = arith.constant 0 : index
    %143 = vector.load %arg14[%c0_63, %c0_64, %c0_65] : memref<1x32x64xbf16, #tpu.memory_space<vmem>>, vector<1x32x64xbf16>
    %144 = vector.shape_cast %143 : vector<1x32x64xbf16> to vector<32x64xbf16>
    %cst_66 = arith.constant dense<0.000000e+00> : vector<16x64xf32>
    %145 = tpu.matmul %142, %144, %cst_66 {dimension_numbers = #tpu.dot_dimension_numbers<[1], [0], [0], [1], [0, 0, 1, 1], [], []>} : vector<16x32xbf16>, vector<32x64xbf16>, vector<16x64xf32> -> vector<16x64xf32>
    %c0_67 = arith.constant 0 : index
    %c0_68 = arith.constant 0 : index
    %c0_69 = arith.constant 0 : index
    %146 = vector.load %arg15[%c0_67, %c0_68, %c0_69] : memref<1x1x64xf32, #tpu.memory_space<vmem>>, vector<1x1x64xf32>
    %147 = vector.shape_cast %146 : vector<1x1x64xf32> to vector<1x64xf32>
    %148 = vector.broadcast %147 : vector<1x64xf32> to vector<16x64xf32>
    %149 = arith.addf %145, %148 : vector<16x64xf32>
    %150 = vector.shape_cast %149 : vector<16x64xf32> to vector<2x8x64xf32>
    %151 = vector.extract_strided_slice %150 {offsets = [0, 0, 0], sizes = [2, 8, 32], strides = [1, 1, 1]} : vector<2x8x64xf32> to vector<2x8x32xf32>
    %152 = vector.extract_strided_slice %150 {offsets = [0, 0, 32], sizes = [2, 8, 32], strides = [1, 1, 1]} : vector<2x8x64xf32> to vector<2x8x32xf32>
    %c0_70 = arith.constant 0 : index
    %c0_71 = arith.constant 0 : index
    %c0_72 = arith.constant 0 : index
    %153 = vector.load %arg16[%c0_70, %c0_71, %c0_72] : memref<1x32x32xbf16, #tpu.memory_space<vmem>>, vector<1x32x32xbf16>
    %154 = vector.shape_cast %153 : vector<1x32x32xbf16> to vector<32x32xbf16>
    %cst_73 = arith.constant 0.000000e+00 : f32
    %155 = vector.broadcast %cst_73 : f32 to vector<16x32xf32>
    %156 = vector.extract_strided_slice %140 {offsets = [0, 0, 0], sizes = [2, 8, 16], strides = [1, 1, 1]} : vector<2x8x32xf32> to vector<2x8x16xf32>
    %157 = arith.truncf %156 : vector<2x8x16xf32> to vector<2x8x16xbf16>
    %158 = vector.extract_strided_slice %151 {offsets = [0, 0, 0], sizes = [2, 8, 16], strides = [1, 1, 1]} : vector<2x8x32xf32> to vector<2x8x16xf32>
    %159 = arith.truncf %158 : vector<2x8x16xf32> to vector<2x8x16xbf16>
    %160 = vector.extract_strided_slice %152 {offsets = [0, 0, 0], sizes = [2, 8, 16], strides = [1, 1, 1]} : vector<2x8x32xf32> to vector<2x8x16xf32>
    %161 = arith.truncf %160 : vector<2x8x16xf32> to vector<2x8x16xbf16>
    "tpu.trace_start"() <{level = 10 : i32, message = "bqd,bkd->bqk"}> : () -> ()
    %cst_74 = arith.constant dense<0.000000e+00> : vector<2x8x8xf32>
    %162 = tpu.matmul %157, %159, %cst_74 {dimension_numbers = #tpu.dot_dimension_numbers<[2], [2], [1], [1], [0, 0, 0, 1, 1, 1], [0], [0]>} : vector<2x8x16xbf16>, vector<2x8x16xbf16>, vector<2x8x8xf32> -> vector<2x8x8xf32>
    "tpu.trace_stop"() : () -> ()
    %cst_75 = arith.constant 2.500000e-01 : f32
    %163 = vector.broadcast %cst_75 : f32 to vector<2x8x8xf32>
    %164 = arith.mulf %162, %163 : vector<2x8x8xf32>
    %165 = vector.broadcast %15 : vector<2x1x8xf32> to vector<2x8x8xf32>
    %166 = arith.addf %164, %165 : vector<2x8x8xf32>
    %cst_76 = arith.constant dense<0xFF800000> : vector<2x8xf32>
    %167 = vector.multi_reduction <maximumf>, %166, %cst_76 [2] : vector<2x8x8xf32> to vector<2x8xf32>
    %168 = vector.shape_cast %167 : vector<2x8xf32> to vector<2x8x1xf32>
    %169 = vector.broadcast %168 : vector<2x8x1xf32> to vector<2x8x8xf32>
    %170 = arith.subf %166, %169 : vector<2x8x8xf32>
    %171 = math.exp %170 : vector<2x8x8xf32>
    %cst_77 = arith.constant dense<0.000000e+00> : vector<2x8xf32>
    %172 = vector.multi_reduction <add>, %171, %cst_77 [2] : vector<2x8x8xf32> to vector<2x8xf32>
    %173 = vector.shape_cast %172 : vector<2x8xf32> to vector<2x8x1xf32>
    %174 = vector.broadcast %173 : vector<2x8x1xf32> to vector<2x8x8xf32>
    %175 = arith.divf %171, %174 : vector<2x8x8xf32>
    %c0_78 = arith.constant 0 : index
    %c0_79 = arith.constant 0 : index
    %c0_80 = arith.constant 0 : index
    %c0_81 = arith.constant 0 : index
    %176 = vector.load %arg27[%c0_78, %c0_79, %c0_80, %c0_81] : memref<2x2x8x8xf32, #tpu.memory_space<vmem>>, vector<2x1x8x8xf32>
    %177 = vector.shape_cast %176 : vector<2x1x8x8xf32> to vector<2x8x8xf32>
    %178 = vector.shape_cast %175 : vector<2x8x8xf32> to vector<2x1x8x8xf32>
    tpu.vector_store %arg27[%c0_78, %c0_79, %c0_80, %c0_81], %178 {strides = array<i32>} : memref<2x2x8x8xf32, #tpu.memory_space<vmem>>, vector<2x1x8x8xf32>,
    %179 = arith.truncf %175 : vector<2x8x8xf32> to vector<2x8x8xbf16>
    "tpu.trace_start"() <{level = 10 : i32, message = "bqk,bkd->bqd"}> : () -> ()
    %cst_82 = arith.constant dense<0.000000e+00> : vector<2x8x16xf32>
    %180 = tpu.matmul %179, %161, %cst_82 {dimension_numbers = #tpu.dot_dimension_numbers<[2], [1], [1], [2], [0, 0, 0, 1, 1, 2], [0], [0]>} : vector<2x8x8xbf16>, vector<2x8x16xbf16>, vector<2x8x16xf32> -> vector<2x8x16xf32>
    "tpu.trace_stop"() : () -> ()
    %181 = vector.shape_cast %180 : vector<2x8x16xf32> to vector<16x16xf32>
    %182 = arith.truncf %181 : vector<16x16xf32> to vector<16x16xbf16>
    %183 = vector.extract_strided_slice %154 {offsets = [0, 0], sizes = [16, 32], strides = [1, 1]} : vector<32x32xbf16> to vector<16x32xbf16>
    %cst_83 = arith.constant dense<0.000000e+00> : vector<16x32xf32>
    %184 = tpu.matmul %182, %183, %cst_83 {dimension_numbers = #tpu.dot_dimension_numbers<[1], [0], [0], [1], [0, 0, 1, 1], [], []>} : vector<16x16xbf16>, vector<16x32xbf16>, vector<16x32xf32> -> vector<16x32xf32>
    %185 = arith.addf %155, %184 : vector<16x32xf32>
    %186 = vector.extract_strided_slice %140 {offsets = [0, 0, 16], sizes = [2, 8, 16], strides = [1, 1, 1]} : vector<2x8x32xf32> to vector<2x8x16xf32>
    %187 = arith.truncf %186 : vector<2x8x16xf32> to vector<2x8x16xbf16>
    %188 = vector.extract_strided_slice %151 {offsets = [0, 0, 16], sizes = [2, 8, 16], strides = [1, 1, 1]} : vector<2x8x32xf32> to vector<2x8x16xf32>
    %189 = arith.truncf %188 : vector<2x8x16xf32> to vector<2x8x16xbf16>
    %190 = vector.extract_strided_slice %152 {offsets = [0, 0, 16], sizes = [2, 8, 16], strides = [1, 1, 1]} : vector<2x8x32xf32> to vector<2x8x16xf32>
    %191 = arith.truncf %190 : vector<2x8x16xf32> to vector<2x8x16xbf16>
    "tpu.trace_start"() <{level = 10 : i32, message = "bqd,bkd->bqk"}> : () -> ()
    %cst_84 = arith.constant dense<0.000000e+00> : vector<2x8x8xf32>
    %192 = tpu.matmul %187, %189, %cst_84 {dimension_numbers = #tpu.dot_dimension_numbers<[2], [2], [1], [1], [0, 0, 0, 1, 1, 1], [0], [0]>} : vector<2x8x16xbf16>, vector<2x8x16xbf16>, vector<2x8x8xf32> -> vector<2x8x8xf32>
    "tpu.trace_stop"() : () -> ()
    %cst_85 = arith.constant 2.500000e-01 : f32
    %193 = vector.broadcast %cst_85 : f32 to vector<2x8x8xf32>
    %194 = arith.mulf %192, %193 : vector<2x8x8xf32>
    %195 = vector.broadcast %15 : vector<2x1x8xf32> to vector<2x8x8xf32>
    %196 = arith.addf %194, %195 : vector<2x8x8xf32>
    %cst_86 = arith.constant dense<0xFF800000> : vector<2x8xf32>
    %197 = vector.multi_reduction <maximumf>, %196, %cst_86 [2] : vector<2x8x8xf32> to vector<2x8xf32>
    %198 = vector.shape_cast %197 : vector<2x8xf32> to vector<2x8x1xf32>
    %199 = vector.broadcast %198 : vector<2x8x1xf32> to vector<2x8x8xf32>
    %200 = arith.subf %196, %199 : vector<2x8x8xf32>
    %201 = math.exp %200 : vector<2x8x8xf32>
    %cst_87 = arith.constant dense<0.000000e+00> : vector<2x8xf32>
    %202 = vector.multi_reduction <add>, %201, %cst_87 [2] : vector<2x8x8xf32> to vector<2x8xf32>
    %203 = vector.shape_cast %202 : vector<2x8xf32> to vector<2x8x1xf32>
    %204 = vector.broadcast %203 : vector<2x8x1xf32> to vector<2x8x8xf32>
    %205 = arith.divf %201, %204 : vector<2x8x8xf32>
    %c0_88 = arith.constant 0 : index
    %c1 = arith.constant 1 : index
    %c0_89 = arith.constant 0 : index
    %c0_90 = arith.constant 0 : index
    %206 = vector.load %arg27[%c0_88, %c1, %c0_89, %c0_90] : memref<2x2x8x8xf32, #tpu.memory_space<vmem>>, vector<2x1x8x8xf32>
    %207 = vector.shape_cast %206 : vector<2x1x8x8xf32> to vector<2x8x8xf32>
    %208 = vector.shape_cast %205 : vector<2x8x8xf32> to vector<2x1x8x8xf32>
    tpu.vector_store %arg27[%c0_88, %c1, %c0_89, %c0_90], %208 {strides = array<i32>} : memref<2x2x8x8xf32, #tpu.memory_space<vmem>>, vector<2x1x8x8xf32>,
    %209 = arith.truncf %205 : vector<2x8x8xf32> to vector<2x8x8xbf16>
    "tpu.trace_start"() <{level = 10 : i32, message = "bqk,bkd->bqd"}> : () -> ()
    %cst_91 = arith.constant dense<0.000000e+00> : vector<2x8x16xf32>
    %210 = tpu.matmul %209, %191, %cst_91 {dimension_numbers = #tpu.dot_dimension_numbers<[2], [1], [1], [2], [0, 0, 0, 1, 1, 2], [0], [0]>} : vector<2x8x8xbf16>, vector<2x8x16xbf16>, vector<2x8x16xf32> -> vector<2x8x16xf32>
    "tpu.trace_stop"() : () -> ()
    %211 = vector.shape_cast %210 : vector<2x8x16xf32> to vector<16x16xf32>
    %212 = arith.truncf %211 : vector<16x16xf32> to vector<16x16xbf16>
    %213 = vector.extract_strided_slice %154 {offsets = [16, 0], sizes = [16, 32], strides = [1, 1]} : vector<32x32xbf16> to vector<16x32xbf16>
    %cst_92 = arith.constant dense<0.000000e+00> : vector<16x32xf32>
    %214 = tpu.matmul %212, %213, %cst_92 {dimension_numbers = #tpu.dot_dimension_numbers<[1], [0], [0], [1], [0, 0, 1, 1], [], []>} : vector<16x16xbf16>, vector<16x32xbf16>, vector<16x32xf32> -> vector<16x32xf32>
    %215 = arith.addf %185, %214 : vector<16x32xf32>
    %216 = vector.shape_cast %215 : vector<16x32xf32> to vector<2x8x32xf32>
    %c0_93 = arith.constant 0 : index
    %c0_94 = arith.constant 0 : index
    %c0_95 = arith.constant 0 : index
    %217 = vector.load %arg17[%c0_93, %c0_94, %c0_95] : memref<1x1x32xf32, #tpu.memory_space<vmem>>, vector<1x1x32xf32>
    %218 = vector.shape_cast %217 : vector<1x1x32xf32> to vector<1x32xf32>
    %219 = vector.shape_cast %218 : vector<1x32xf32> to vector<1x1x32xf32>
    %220 = vector.broadcast %219 : vector<1x1x32xf32> to vector<2x8x32xf32>
    %221 = arith.addf %216, %220 : vector<2x8x32xf32>
    %222 = arith.addf %221, %130 : vector<2x8x32xf32>
    %c0_96 = arith.constant 0 : index
    %c0_97 = arith.constant 0 : index
    %c0_98 = arith.constant 0 : index
    %223 = vector.load %arg18[%c0_96, %c0_97, %c0_98] : memref<1x1x32xf32, #tpu.memory_space<vmem>>, vector<1x1x32xf32>
    %224 = vector.shape_cast %223 : vector<1x1x32xf32> to vector<1x32xf32>
    %c0_99 = arith.constant 0 : index
    %c0_100 = arith.constant 0 : index
    %c0_101 = arith.constant 0 : index
    %225 = vector.load %arg19[%c0_99, %c0_100, %c0_101] : memref<1x1x32xf32, #tpu.memory_space<vmem>>, vector<1x1x32xf32>
    %226 = vector.shape_cast %225 : vector<1x1x32xf32> to vector<1x32xf32>
    %cst_102 = arith.constant dense<0.000000e+00> : vector<2x8xf32>
    %227 = vector.multi_reduction <add>, %222, %cst_102 [2] : vector<2x8x32xf32> to vector<2x8xf32>
    %228 = vector.shape_cast %227 : vector<2x8xf32> to vector<2x8x1xf32>
    %cst_103 = arith.constant 3.200000e+01 : f32
    %229 = vector.broadcast %cst_103 : f32 to vector<2x8x1xf32>
    %230 = arith.divf %228, %229 : vector<2x8x1xf32>
    %231 = vector.broadcast %230 : vector<2x8x1xf32> to vector<2x8x32xf32>
    %232 = arith.subf %222, %231 : vector<2x8x32xf32>
    %233 = arith.mulf %232, %232 : vector<2x8x32xf32>
    %cst_104 = arith.constant dense<0.000000e+00> : vector<2x8xf32>
    %234 = vector.multi_reduction <add>, %233, %cst_104 [2] : vector<2x8x32xf32> to vector<2x8xf32>
    %235 = vector.shape_cast %234 : vector<2x8xf32> to vector<2x8x1xf32>
    %cst_105 = arith.constant 3.200000e+01 : f32
    %236 = vector.broadcast %cst_105 : f32 to vector<2x8x1xf32>
    %237 = arith.divf %235, %236 : vector<2x8x1xf32>
    %238 = vector.broadcast %230 : vector<2x8x1xf32> to vector<2x8x32xf32>
    %239 = arith.subf %222, %238 : vector<2x8x32xf32>
    %cst_106 = arith.constant 9.99999974E-6 : f32
    %240 = vector.broadcast %cst_106 : f32 to vector<2x8x1xf32>
    %241 = arith.addf %237, %240 : vector<2x8x1xf32>
    %242 = math.rsqrt %241 : vector<2x8x1xf32>
    %243 = vector.broadcast %242 : vector<2x8x1xf32> to vector<2x8x32xf32>
    %244 = arith.mulf %239, %243 : vector<2x8x32xf32>
    %245 = vector.shape_cast %224 : vector<1x32xf32> to vector<1x1x32xf32>
    %246 = vector.broadcast %245 : vector<1x1x32xf32> to vector<2x8x32xf32>
    %247 = arith.mulf %244, %246 : vector<2x8x32xf32>
    %248 = vector.shape_cast %226 : vector<1x32xf32> to vector<1x1x32xf32>
    %249 = vector.broadcast %248 : vector<1x1x32xf32> to vector<2x8x32xf32>
    %250 = arith.addf %247, %249 : vector<2x8x32xf32>
    %251 = vector.shape_cast %250 : vector<2x8x32xf32> to vector<16x32xf32>
    %252 = arith.truncf %251 : vector<16x32xf32> to vector<16x32xbf16>
    %c0_107 = arith.constant 0 : index
    %c0_108 = arith.constant 0 : index
    %c0_109 = arith.constant 0 : index
    %253 = vector.load %arg20[%c0_107, %c0_108, %c0_109] : memref<1x32x64xbf16, #tpu.memory_space<vmem>>, vector<1x32x64xbf16>
    %254 = vector.shape_cast %253 : vector<1x32x64xbf16> to vector<32x64xbf16>
    %cst_110 = arith.constant dense<0.000000e+00> : vector<16x64xf32>
    %255 = tpu.matmul %252, %254, %cst_110 {dimension_numbers = #tpu.dot_dimension_numbers<[1], [0], [0], [1], [0, 0, 1, 1], [], []>} : vector<16x32xbf16>, vector<32x64xbf16>, vector<16x64xf32> -> vector<16x64xf32>
    %c0_111 = arith.constant 0 : index
    %c0_112 = arith.constant 0 : index
    %c0_113 = arith.constant 0 : index
    %256 = vector.load %arg21[%c0_111, %c0_112, %c0_113] : memref<1x1x64xf32, #tpu.memory_space<vmem>>, vector<1x1x64xf32>
    %257 = vector.shape_cast %256 : vector<1x1x64xf32> to vector<1x64xf32>
    %258 = vector.broadcast %257 : vector<1x64xf32> to vector<16x64xf32>
    %259 = arith.addf %255, %258 : vector<16x64xf32>
    %cst_114 = arith.constant 0.000000e+00 : f32
    %260 = vector.broadcast %cst_114 : f32 to vector<16x64xf32>
    %261 = arith.maximumf %259, %260 : vector<16x64xf32>
    %262 = arith.truncf %261 : vector<16x64xf32> to vector<16x64xbf16>
    %c0_115 = arith.constant 0 : index
    %c0_116 = arith.constant 0 : index
    %c0_117 = arith.constant 0 : index
    %263 = vector.load %arg22[%c0_115, %c0_116, %c0_117] : memref<1x64x32xbf16, #tpu.memory_space<vmem>>, vector<1x64x32xbf16>
    %264 = vector.shape_cast %263 : vector<1x64x32xbf16> to vector<64x32xbf16>
    %cst_118 = arith.constant dense<0.000000e+00> : vector<16x32xf32>
    %265 = tpu.matmul %262, %264, %cst_118 {dimension_numbers = #tpu.dot_dimension_numbers<[1], [0], [0], [1], [0, 0, 1, 1], [], []>} : vector<16x64xbf16>, vector<64x32xbf16>, vector<16x32xf32> -> vector<16x32xf32>
    %c0_119 = arith.constant 0 : index
    %c0_120 = arith.constant 0 : index
    %c0_121 = arith.constant 0 : index
    %266 = vector.load %arg23[%c0_119, %c0_120, %c0_121] : memref<1x1x32xf32, #tpu.memory_space<vmem>>, vector<1x1x32xf32>
    %267 = vector.shape_cast %266 : vector<1x1x32xf32> to vector<1x32xf32>
    %268 = vector.broadcast %267 : vector<1x32xf32> to vector<16x32xf32>
    %269 = arith.addf %265, %268 : vector<16x32xf32>
    %270 = vector.shape_cast %269 : vector<16x32xf32> to vector<2x8x32xf32>
    %271 = arith.addf %270, %250 : vector<2x8x32xf32>
    %c0_122 = arith.constant 0 : index
    %c0_123 = arith.constant 0 : index
    %c0_124 = arith.constant 0 : index
    %272 = vector.load %arg24[%c0_122, %c0_123, %c0_124] : memref<1x1x32xf32, #tpu.memory_space<vmem>>, vector<1x1x32xf32>
    %273 = vector.shape_cast %272 : vector<1x1x32xf32> to vector<1x32xf32>
    %c0_125 = arith.constant 0 : index
    %c0_126 = arith.constant 0 : index
    %c0_127 = arith.constant 0 : index
    %274 = vector.load %arg25[%c0_125, %c0_126, %c0_127] : memref<1x1x32xf32, #tpu.memory_space<vmem>>, vector<1x1x32xf32>
    %275 = vector.shape_cast %274 : vector<1x1x32xf32> to vector<1x32xf32>
    %cst_128 = arith.constant dense<0.000000e+00> : vector<2x8xf32>
    %276 = vector.multi_reduction <add>, %271, %cst_128 [2] : vector<2x8x32xf32> to vector<2x8xf32>
    %277 = vector.shape_cast %276 : vector<2x8xf32> to vector<2x8x1xf32>
    %cst_129 = arith.constant 3.200000e+01 : f32
    %278 = vector.broadcast %cst_129 : f32 to vector<2x8x1xf32>
    %279 = arith.divf %277, %278 : vector<2x8x1xf32>
    %280 = vector.broadcast %279 : vector<2x8x1xf32> to vector<2x8x32xf32>
    %281 = arith.subf %271, %280 : vector<2x8x32xf32>
    %282 = arith.mulf %281, %281 : vector<2x8x32xf32>
    %cst_130 = arith.constant dense<0.000000e+00> : vector<2x8xf32>
    %283 = vector.multi_reduction <add>, %282, %cst_130 [2] : vector<2x8x32xf32> to vector<2x8xf32>
    %284 = vector.shape_cast %283 : vector<2x8xf32> to vector<2x8x1xf32>
    %cst_131 = arith.constant 3.200000e+01 : f32
    %285 = vector.broadcast %cst_131 : f32 to vector<2x8x1xf32>
    %286 = arith.divf %284, %285 : vector<2x8x1xf32>
    %287 = vector.broadcast %279 : vector<2x8x1xf32> to vector<2x8x32xf32>
    %288 = arith.subf %271, %287 : vector<2x8x32xf32>
    %cst_132 = arith.constant 9.99999974E-6 : f32
    %289 = vector.broadcast %cst_132 : f32 to vector<2x8x1xf32>
    %290 = arith.addf %286, %289 : vector<2x8x1xf32>
    %291 = math.rsqrt %290 : vector<2x8x1xf32>
    %292 = vector.broadcast %291 : vector<2x8x1xf32> to vector<2x8x32xf32>
    %293 = arith.mulf %288, %292 : vector<2x8x32xf32>
    %294 = vector.shape_cast %273 : vector<1x32xf32> to vector<1x1x32xf32>
    %295 = vector.broadcast %294 : vector<1x1x32xf32> to vector<2x8x32xf32>
    %296 = arith.mulf %293, %295 : vector<2x8x32xf32>
    %297 = vector.shape_cast %275 : vector<1x32xf32> to vector<1x1x32xf32>
    %298 = vector.broadcast %297 : vector<1x1x32xf32> to vector<2x8x32xf32>
    %299 = arith.addf %296, %298 : vector<2x8x32xf32>
    %c0_133 = arith.constant 0 : index
    %c0_134 = arith.constant 0 : index
    %c0_135 = arith.constant 0 : index
    %300 = vector.load %arg28[%c0_133, %c0_134, %c0_135] : memref<2x8x32xf32, #tpu.memory_space<vmem>>, vector<2x8x32xf32>
    tpu.vector_store %arg28[%c0_133, %c0_134, %c0_135], %299 {strides = array<i32>} : memref<2x8x32xf32, #tpu.memory_space<vmem>>, vector<2x8x32xf32>,
    %c1_i32 = arith.constant 1 : i32
    %301 = arith.cmpi eq, %arg1, %c1_i32 : i32
    %302 = arith.extui %301 : i1 to i32
    %c0_i32_136 = arith.constant 0 : i32
    %303 = arith.cmpi ne, %302, %c0_i32_136 : i32
    scf.if %303 {
      %304 = arith.truncf %299 : vector<2x8x32xf32> to vector<2x8x32xbf16>
      %c0_137 = arith.constant 0 : index
      %c0_138 = arith.constant 0 : index
      %c0_139 = arith.constant 0 : index
      %305 = vector.load %arg26[%c0_137, %c0_138, %c0_139] : memref<2x8x32xbf16, #tpu.memory_space<vmem>>, vector<2x8x32xbf16>
      tpu.vector_store %arg26[%c0_137, %c0_138, %c0_139], %304 {strides = array<i32>} : memref<2x8x32xbf16, #tpu.memory_space<vmem>>, vector<2x8x32xbf16>,
    } else {
    }
    return
  }
  func.func @transform_0(%arg0: i32, %arg1: i32) -> (i32, i32, i32) {
    %c0_i32 = arith.constant 0 : i32
    %c0_i32_0 = arith.constant 0 : i32
    %c0_i32_1 = arith.constant 0 : i32
    return %arg0, %c0_i32, %c0_i32_0 : i32, i32, i32
  }
  func.func @transform_1(%arg0: i32, %arg1: i32) -> (i32, i32, i32) {
    %c0_i32 = arith.constant 0 : i32
    %c0_i32_0 = arith.constant 0 : i32
    %c0_i32_1 = arith.constant 0 : i32
    return %arg0, %c0_i32, %c0_i32_0 : i32, i32, i32
  }
  func.func @transform_2(%arg0: i32, %arg1: i32) -> (i32, i32, i32) {
    %c0_i32 = arith.constant 0 : i32
    %c0_i32_0 = arith.constant 0 : i32
    %c0_i32_1 = arith.constant 0 : i32
    return %arg0, %c0_i32, %c0_i32_0 : i32, i32, i32
  }
  func.func @transform_3(%arg0: i32, %arg1: i32) -> (i32, i32, i32) {
    %c0_i32 = arith.constant 0 : i32
    %c0_i32_0 = arith.constant 0 : i32
    %c0_i32_1 = arith.constant 0 : i32
    return %arg0, %c0_i32, %c0_i32_0 : i32, i32, i32
  }
  func.func @transform_4(%arg0: i32, %arg1: i32) -> (i32, i32, i32) {
    %c0_i32 = arith.constant 0 : i32
    %c0_i32_0 = arith.constant 0 : i32
    %c0_i32_1 = arith.constant 0 : i32
    return %arg1, %c0_i32, %c0_i32_0 : i32, i32, i32
  }
  func.func @transform_5(%arg0: i32, %arg1: i32) -> (i32, i32, i32) {
    %c0_i32 = arith.constant 0 : i32
    %c0_i32_0 = arith.constant 0 : i32
    %c0_i32_1 = arith.constant 0 : i32
    return %arg1, %c0_i32, %c0_i32_0 : i32, i32, i32
  }
  func.func @transform_6(%arg0: i32, %arg1: i32) -> (i32, i32, i32) {
    %c0_i32 = arith.constant 0 : i32
    %c0_i32_0 = arith.constant 0 : i32
    %c0_i32_1 = arith.constant 0 : i32
    return %arg1, %c0_i32, %c0_i32_0 : i32, i32, i32
  }
  func.func @transform_7(%arg0: i32, %arg1: i32) -> (i32, i32, i32) {
    %c0_i32 = arith.constant 0 : i32
    %c0_i32_0 = arith.constant 0 : i32
    %c0_i32_1 = arith.constant 0 : i32
    return %arg1, %c0_i32, %c0_i32_0 : i32, i32, i32
  }
  func.func @transform_8(%arg0: i32, %arg1: i32) -> (i32, i32, i32) {
    %c0_i32 = arith.constant 0 : i32
    %c0_i32_0 = arith.constant 0 : i32
    %c0_i32_1 = arith.constant 0 : i32
    return %arg1, %c0_i32, %c0_i32_0 : i32, i32, i32
  }
  func.func @transform_9(%arg0: i32, %arg1: i32) -> (i32, i32, i32) {
    %c0_i32 = arith.constant 0 : i32
    %c0_i32_0 = arith.constant 0 : i32
    %c0_i32_1 = arith.constant 0 : i32
    return %arg1, %c0_i32, %c0_i32_0 : i32, i32, i32
  }
  func.func @transform_10(%arg0: i32, %arg1: i32) -> (i32, i32, i32) {
    %c0_i32 = arith.constant 0 : i32
    %c0_i32_0 = arith.constant 0 : i32
    %c0_i32_1 = arith.constant 0 : i32
    return %arg1, %c0_i32, %c0_i32_0 : i32, i32, i32
  }
  func.func @transform_11(%arg0: i32, %arg1: i32) -> (i32, i32, i32) {
    %c0_i32 = arith.constant 0 : i32
    %c0_i32_0 = arith.constant 0 : i32
    %c0_i32_1 = arith.constant 0 : i32
    return %arg1, %c0_i32, %c0_i32_0 : i32, i32, i32
  }
  func.func @transform_12(%arg0: i32, %arg1: i32) -> (i32, i32, i32) {
    %c0_i32 = arith.constant 0 : i32
    %c0_i32_0 = arith.constant 0 : i32
    %c0_i32_1 = arith.constant 0 : i32
    return %arg1, %c0_i32, %c0_i32_0 : i32, i32, i32
  }
  func.func @transform_13(%arg0: i32, %arg1: i32) -> (i32, i32, i32) {
    %c0_i32 = arith.constant 0 : i32
    %c0_i32_0 = arith.constant 0 : i32
    %c0_i32_1 = arith.constant 0 : i32
    return %arg1, %c0_i32, %c0_i32_0 : i32, i32, i32
  }
  func.func @transform_14(%arg0: i32, %arg1: i32) -> (i32, i32, i32) {
    %c0_i32 = arith.constant 0 : i32
    %c0_i32_0 = arith.constant 0 : i32
    %c0_i32_1 = arith.constant 0 : i32
    return %arg1, %c0_i32, %c0_i32_0 : i32, i32, i32
  }
  func.func @transform_15(%arg0: i32, %arg1: i32) -> (i32, i32, i32) {
    %c0_i32 = arith.constant 0 : i32
    %c0_i32_0 = arith.constant 0 : i32
    %c0_i32_1 = arith.constant 0 : i32
    return %arg1, %c0_i32, %c0_i32_0 : i32, i32, i32
  }
  func.func @transform_16(%arg0: i32, %arg1: i32) -> (i32, i32, i32) {
    %c0_i32 = arith.constant 0 : i32
    %c0_i32_0 = arith.constant 0 : i32
    %c0_i32_1 = arith.constant 0 : i32
    return %arg1, %c0_i32, %c0_i32_0 : i32, i32, i32
  }
  func.func @transform_17(%arg0: i32, %arg1: i32) -> (i32, i32, i32) {
    %c0_i32 = arith.constant 0 : i32
    %c0_i32_0 = arith.constant 0 : i32
    %c0_i32_1 = arith.constant 0 : i32
    return %arg1, %c0_i32, %c0_i32_0 : i32, i32, i32
  }
  func.func @transform_18(%arg0: i32, %arg1: i32) -> (i32, i32, i32) {
    %c0_i32 = arith.constant 0 : i32
    %c0_i32_0 = arith.constant 0 : i32
    %c0_i32_1 = arith.constant 0 : i32
    return %arg1, %c0_i32, %c0_i32_0 : i32, i32, i32
  }
  func.func @transform_19(%arg0: i32, %arg1: i32) -> (i32, i32, i32) {
    %c0_i32 = arith.constant 0 : i32
    %c0_i32_0 = arith.constant 0 : i32
    %c0_i32_1 = arith.constant 0 : i32
    return %arg1, %c0_i32, %c0_i32_0 : i32, i32, i32
  }
  func.func @transform_20(%arg0: i32, %arg1: i32) -> (i32, i32, i32) {
    %c0_i32 = arith.constant 0 : i32
    %c0_i32_0 = arith.constant 0 : i32
    %c0_i32_1 = arith.constant 0 : i32
    return %arg1, %c0_i32, %c0_i32_0 : i32, i32, i32
  }
  func.func @transform_21(%arg0: i32, %arg1: i32) -> (i32, i32, i32) {
    %c0_i32 = arith.constant 0 : i32
    %c0_i32_0 = arith.constant 0 : i32
    %c0_i32_1 = arith.constant 0 : i32
    return %arg1, %c0_i32, %c0_i32_0 : i32, i32, i32
  }
  func.func @transform_22(%arg0: i32, %arg1: i32) -> (i32, i32, i32) {
    %c0_i32 = arith.constant 0 : i32
    %c0_i32_0 = arith.constant 0 : i32
    %c0_i32_1 = arith.constant 0 : i32
    return %arg1, %c0_i32, %c0_i32_0 : i32, i32, i32
  }
  func.func @transform_23(%arg0: i32, %arg1: i32) -> (i32, i32, i32) {
    %c0_i32 = arith.constant 0 : i32
    %c0_i32_0 = arith.constant 0 : i32
    %c0_i32_1 = arith.constant 0 : i32
    return %arg1, %c0_i32, %c0_i32_0 : i32, i32, i32
  }
  func.func @transform_24(%arg0: i32, %arg1: i32) -> (i32, i32, i32) {
    %c0_i32 = arith.constant 0 : i32
    %c0_i32_0 = arith.constant 0 : i32
    %c0_i32_1 = arith.constant 0 : i32
    return %arg0, %c0_i32, %c0_i32_0 : i32, i32, i32
  }
  func.func @transform_25(%arg0: i32, %arg1: i32) -> (i32, i32, i32, i32) {
    %c0_i32 = arith.constant 0 : i32
    %c0_i32_0 = arith.constant 0 : i32
    %c0_i32_1 = arith.constant 0 : i32
    %c0_i32_2 = arith.constant 0 : i32
    return %arg0, %c0_i32, %c0_i32_0, %c0_i32_1 : i32, i32, i32, i32
  }
}

</mosaic_0001>

<bundles_post_ra>
// kernel: seq2seq_forward.5
= control target key start
LH: loop header
LB: loop body
LE: loop exit
PB: predicated region body
PF: predicated region fallthrough
CT: control target
= control target key end

     0   :  { %v158_v1 = vmov 0.0   ;;  %vm159_vm0 = vmmov 0   ;;  %s207_s0 = inlined_call_operand.vmem [shape: bf16[2,8,32], index: 0, kind: input, shape index: {}]   ;;  %s208_s1 = inlined_call_operand.vmem [shape: bf16[32,16], index: 1, kind: input, shape index: {}]   ;;  %s209_s2 = inlined_call_operand.vmem [shape: f32[1,16], index: 2, kind: input, shape index: {}]   ;;  %s210_s3 = inlined_call_operand.hbm [shape: f32[2,8,16], index: 3, kind: output, shape index: {}]  }
   0x1   :  { %v131_v0 = vld [vmem:[%s208_s1] sm:$0xff]   ;;  %118 = vmatprep.subr.bf16.mxu0 %v158_v1  ;;  %v132_v2 = vld [vmem:[%s208_s1 + $0x8] sm:$0xff]   ;;  %122 = vmatprep.mubr.msk.bf16.mxu0 %vm159_vm0, %v158_v1 }
   0x2   :  { %119 = vmatpush3.bf16.msra.mxu0 %v131_v0 }
   0x3   :  { %120 = vmatprep.subr.bf16.mxu0 %v158_v1 }
   0x4   :  { %8 = vsyncpa [#allocation3], 0  ;;  %v133_v3 = vld [vmem:[%s207_s0] sm:$0xff]   ;;  %vm46_vm1 = vcmask 261120   ;;  %s160_s20 = smov [#allocation2]   ;;  %vm91_vm2 = vcmask 130048  }
   0x5   :  { %v110_v4 = vld [vmem:[%s209_s2] ss:$0 sm:$0xff]  ;;  %s99_s21 = sshll.u32 %s160_s20, 4  ;;  %s100_s21 = int_to_ptr.vmem [resolvable:$true] %s99_s21 }
   0x6   :  { %121 = vmatpush3.bf16.msra.mxu0 %v132_v2  ;;  %s134_s0 = scalar_lea.vmem %s100_s21, 256  ;;  %p139_p1 = scmp.lt.s32.totalorder %s100_s21, %s100_s21 }
   0x7   :  { %p135_p0 = scmp.ne.s32.totalorder %s100_s21, %s134_s0  ;;  %p140_p2 = scmp.lt.s32.totalorder %s134_s0, %s134_s0 }
   0x9   :  { %123 = vmatmul.mubr.msk.bf16.vlgmr.msra.gmra.mrb[0].mxu0 %vm46_vm1, %v133_v3  ;;  %p141_p3 = por %p140_p2, %p139_p1 }
   0xb   :  { %p142_p4 = pnand %p141_p3, %p135_p0 }
  0xdc   :  { %v84_v5 = vpop.f32.mrb[0].mxu0 }
  0xdd   :  { %v85_v6 = vadd.f32 %v110_v4, %v84_v5  ;;  %v124_v7 = vpop.f32.mrb[1].mxu0 }
  0xde   :  { %v87_v8 = vpop.f32.mrb[2].mxu0 }
  0xdf   :  { %92 = vst.msk [vmem:[#allocation2] sm:$0xff] %vm91_vm2, %v85_v6  ;;  %v88_v9 = vadd.f32 %v110_v4, %v87_v8  ;;  %v125_v10 = vpop.f32.mrb[3].mxu0 }
  0xe1   :  { %93 = vst.msk [vmem:[#allocation2 + $0x8] sm:$0xff] %vm91_vm2, %v88_v9 }
  0xe2   :  { %145 = shalt.err (!%p142_p4)
}
  0xe3   :  { %s146_s22 = scalar_lea.hbm %s210_s3, 256 }
  0xe4   :  { %p147_p5 = scmp.ne.s32.totalorder %s210_s3, %s146_s22  ;;  %p150_p6 = scmp.lt.u32.totalorder %s146_s22, %s210_s3 }
  0xe6   :  { %p152_p7 = pnand %p150_p6, %p147_p5 }
  0xe8   :  { %155 = shalt.err (!%p152_p7)
}
  0xe9   :  { %s161_s27 = smov 128   ;;  %s162_s28 = smov 8  }
  0xea   :  { %105 = dma.vmem_to_hbm [thread:$0]  %s100_s21, 256, %s210_s3, [#allocation3], %s161_s27, %s161_s27, %s162_s28  }
  0xeb   :  { %156 = dma.done.wait [#allocation3], 256  }
  0xec   :  { %157 = vsyncadd [#allocation3], 4294967040 }
  0xed   :  { %109 = vsyncpa [#allocation3], 1 }

// kernel: seq2seq_forward.3
= control target key start
LH: loop header
LB: loop body
LE: loop exit
PB: predicated region body
PF: predicated region fallthrough
CT: control target
= control target key end

     0   :  { %s2168_s29 = smov 0   ;;  %s2170_s30 = smov 0   ;;  %s2438_s0 = inlined_call_operand.vmem [shape: bf16[2,8,32], index: 0, kind: input, shape index: {}]   ;;  %s2439_s1 = inlined_call_operand.vmem [shape: f32[2,1,8], index: 1, kind: input, shape index: {}]   ;;  %s2440_s2 = inlined_call_operand.vmem [shape: bf16[2,32,96], index: 2, kind: input, shape index: {}]   ;;  %s2441_s3 = inlined_call_operand.vmem [shape: f32[2,1,96], index: 3, kind: input, shape index: {}]   ;;  %s2442_s4 = inlined_call_operand.vmem [shape: bf16[2,32,32], index: 4, kind: input, shape index: {}]   ;;  %s2443_s5 = inlined_call_operand.vmem [shape: f32[2,1,32], index: 5, kind: input, shape index: {}]   ;;  %s2444_s6 = inlined_call_operand.vmem [shape: f32[2,1,32], index: 6, kind: input, shape index: {}]   ;;  %s2445_s7 = inlined_call_operand.vmem [shape: f32[2,1,32], index: 7, kind: input, shape index: {}]   ;;  %s2446_s8 = inlined_call_operand.vmem [shape: bf16[2,32,64], index: 8, kind: input, shape index: {}]   ;;  %s2447_s9 = inlined_call_operand.vmem [shape: f32[2,1,64], index: 9, kind: input, shape index: {}]   ;;  %s2448_s10 = inlined_call_operand.vmem [shape: bf16[2,64,32], index: 10, kind: input, shape index: {}]   ;;  %s2449_s11 = inlined_call_operand.vmem [shape: f32[2,1,32], index: 11, kind: input, shape index: {}]   ;;  %s2450_s12 = inlined_call_operand.vmem [shape: f32[2,1,32], index: 12, kind: input, shape index: {}]   ;;  %s2451_s13 = inlined_call_operand.vmem [shape: f32[2,1,32], index: 13, kind: input, shape index: {}]   ;;  %s2452_s14 = inlined_call_operand.vmem [shape: bf16[2,8,32], index: 14, kind: output, shape index: {}]  }
   0x1   :  { %2457 = sst [smem:[#allocation6_spill]] %s2438_s0  ;;  %s2172_s15 = smov 0  }
   0x2   :  { %2458 = sst [smem:[#allocation7_spill]] %s2439_s1 }
   0x3   :  { %2459 = sst [smem:[#allocation8_spill]] %s2440_s2 }
   0x4   :  { %2460 = sst [smem:[#allocation9_spill]] %s2442_s4 }
   0x5   :  { %2461 = sst [smem:[#allocation10_spill]] %s2452_s14 }
   0x6 LB: > { %2462 = sst [smem:[#allocation3_spill]] %s2079_s30  ;;  %s33_s16 = sadd.s32 1, %s2079_s30  ;;  %s2083_s15 = sphi %s2172_s15, %s24_s15   ;;  %s2079_s30 = sphi %s2170_s30, %s2476_s30   ;;  %s2075_s29 = sphi %s2168_s29, %s2475_s29  }
   0x7   : > { %2463 = sst [smem:[#allocation4_spill]] %s2083_s15  ;;  %p1822_p0 = scmp.ge.s32.totalorder %s2083_s15, 1 }
   0x8   : > { %p34_p1 = scmp.ge.s32.totalorder %s33_s16, 2  ;;  %p539_p2 = scmp.lt.s32.totalorder %s2083_s15, 3 }
   0xa   : > { %s2478_s16 = smov (%p34_p1, %s33_s16), 0  ;;  %p540_p3 = pnand %p1822_p0, %p539_p2 }
   0xb   : > { %2464 = sst [smem:[#allocation5_spill]] %s2478_s16  ;;  %p644_p4 = scmp.lt.s32.totalorder (!%p540_p3), %s2075_s29, 1 }
   0xc   : > { %543 = sbr.rel (%p540_p3) target bundleno = 2957 (0xb8d), region = 76  ;;  %s2465_s2 = sld [smem:[#allocation8_spill]] (!%p540_p3) }
   0xd   : > { %s2466_s4 = sld [smem:[#allocation9_spill]] (!%p540_p3)  ;;  %p1831_p5 = scmp.ne.s32.totalorder (!%p540_p3), %s2075_s29, 0 }
  0x13   : > { %s2190_s17 = scalar_select %p644_p4, %s2075_s29, 1 }
  0x14   : > { %698 = sbr.rel (%p1831_p5) target bundleno = 30 (0x1e), region = 80  ;;  %s2467_s16 = sld [smem:[#allocation6_spill]] (!%p1831_p5)  ;;  %vm703_vm0 = vcmask (!%p1831_p5), 261120  }
  0x15   : > { %s1868_s18 = sshll.u32 %s2190_s17, 4  ;;  %s681_s0 = scalar_lea.vmem %s2449_s11, %s2190_s17 }
  0x16   : > { %s648_s24 = scalar_lea.vmem %s2465_s2, %s1868_s18  ;;  %s2203_s27 = scalar_lea.vmem %s2466_s4, %s1868_s18 }
  0x17   : > { %s2220_s23 = scalar_lea.vmem %s2446_s8, %s1868_s18  ;;  %s673_s2 = scalar_lea.vmem %s2447_s9, %s2190_s17 }
  0x18   : > { %s1871_s4 = sshll.u32 %s2190_s17, 5  ;;  %s684_s21 = scalar_lea.vmem %s2450_s12, %s2190_s17 }
  0x19   : > { %s2230_s30 = scalar_lea.vmem %s2448_s10, %s1871_s4  ;;  %s687_s1 = scalar_lea.vmem %s2451_s13, %s2190_s17 }
  0x1a   : > { %v1873_v0 = vld [vmem:[%s2467_s16] sm:$0xff] (!%p1831_p5)  }
  0x1b   : > { %v1874_v1 = vunpack.c.l.bf16 %v1873_v0  ;;  %v1875_v2 = vunpack.c.h.bf16 %v1873_v0 }
  0x1d   : > { %704 = vst.msk [vmem:[#allocation2] sm:$0xff] %vm703_vm0, %v1874_v1  ;;  %705 = vst.msk [vmem:[#allocation2 + $0x8] sm:$0xff] %vm703_vm0, %v1875_v2 }
  0x1e PF: > { %v2027_v3 = vld [vmem:[%s648_s24] sm:$0xff]   ;;  %v2085_v4 = vmov 0.0   ;;  %v2028_v5 = vld [vmem:[%s648_s24 + $0x8] sm:$0xff]   ;;  %vm2086_vm1 = vmmov 0   ;;  %vm738_vm2 = vcmask 261120   ;;  %s2468_s20 = scalar_lea.vmem %s2441_s3, %s2190_s17  ;;  %s2087_s28 = smov 96   ;;  %v892_v22 = vlaneseq }
  0x1f   : > { %1907 = vmatprep.subr.bf16.mxu1 %v2085_v4  ;;  %1921 = vmatprep.subr.bf16.mxu0 %v2085_v4  ;;  %v1832_v9 = vld [vmem:[%s2468_s20] ss:$0 sm:$0xff]  ;;  %vm792_vm3 = vcmask 130048   ;;  %s2469_s19 = sld [smem:[#allocation7_spill]]  ;;  %v2088_v27 = vmov -1e+10   ;;  %s2470_s20 = scalar_lea.vmem %s2443_s5, %s2190_s17 }
  0x20   : > { %1908 = vmatpush3.bf16.msra.mxu1 %v2027_v3  ;;  %1911 = vmatprep.mubr.msk.bf16.mxu1 %vm2086_vm1, %v2085_v4  ;;  %v893_v24 = vshrl.u32 %v892_v22, 7  ;;  %vm904_vm6 = vcmask 64512   ;;  %s2089_s25 = smov 64   ;;  %s2090_s26 = smov 80   ;;  %vm934_vm7 = vcmask 1043456   ;;  %vm1518_vm8 = vcmask 523264  }
  0x21   : > { %1909 = vmatprep.subr.bf16.mxu1 %v2085_v4  ;;  %1923 = vmatprep.mubr.msk.bf16.mxu0 %vm2086_vm1, %v2085_v4  ;;  %s2091_s16 = smov 112   ;;  %s2092_s4 = smov 48  }
  0x22   : > { %v894_v26 = vsub.s32 0, %v893_v24  ;;  %s2471_s14 = scalar_lea.vmem %s2444_s6, %s2190_s17  ;;  %s2472_s22 = scalar_lea.vmem %s2445_s7, %s2190_s17 }
  0x23   : > { %p1863_p6 = scmp.ne.s32.totalorder %s2075_s29, 1 }
  0x24   : > { %v2252_v6 = vld [vmem:[#allocation2] sm:$0xff]  ;;  %v2254_v7 = vld [vmem:[#allocation2 + $0x8] sm:$0xff]  ;;  %1910 = vmatpush3.bf16.msra.mxu1 %v2028_v5  ;;  %vm1617_vm9 = vcmask (!%p1863_p6), 257024  }
  0x25   : > { %v714_v8 = vpack.c.bf16 %v2254_v7, %v2252_v6  ;;  %1915 = vmatprep.subr.bf16.mxu1 %v2085_v4  ;;  %v708_v23 = vld [vmem:[%s2469_s19] sm:$0x1]  ;;  %v709_v25 = vld [vmem:[%s2469_s19 + $0x1] sm:$0x1] }
  0x26   : > { %vm710_vm4 = vcmp.gt.f32.partialorder %v708_v23, 0.0  ;;  %vm711_vm5 = vcmp.gt.f32.partialorder %v709_v25, 0.0 }
  0x27   : > { %1912 = vmatmul.mubr.msk.bf16.vlgmr.msra.gmra.mrb[0].mxu1 %vm738_vm2, %v714_v8  ;;  %v712_v28 = vsel %vm710_vm4, 0.0, %v2088_v27  ;;  %v713_v31 = vsel %vm711_vm5, 0.0, %v2088_v27 }
  0x28   : > { %1917 = vmatprep.mubr.msk.bf16.mxu1 %vm2086_vm1, %v2085_v4  ;;  %v2294_v29 = vrot.slane %v712_v28, %v894_v26  ;;  %v2297_v37 = vrot.slane %v713_v31, %v894_v26 }
  0xfa   : > { %v776_v10 = vpop.f32.mrb[0].mxu1 }
  0xfb   : > { %v777_v11 = vadd.f32 %v1832_v9, %v776_v10  ;;  %v1913_v12 = vpop.f32.mrb[1].mxu1 }
  0xfc   : > { %v779_v13 = vpop.f32.mrb[2].mxu1 }
  0xfd   : > { %v2270_v14 = vpack.c.bf16 %v777_v11, %v777_v11  ;;  %v780_v15 = vadd.f32 %v1832_v9, %v779_v13  ;;  %v1914_v16 = vpop.f32.mrb[3].mxu1 }
  0xff   : > { %790 = vrot.lane.b32.xlu0 %v2270_v14, %s2087_s28  ;;  %v2273_v17 = vpack.c.bf16 %v780_v15, %v780_v15 }
 0x103   : > { %840 = vrot.lane.b32.xlu0 %v2273_v17, %s2087_s28 }
 0x171   : > { %v791_v18 = vpop.permute.xlu0 %790 }
 0x172   : > { %v797_v19 = vsel %vm792_vm3, %v791_v18, 0 }
 0x173   : > { %1916 = vmatpush3.bf16.xpose.msra.mxu1 %v797_v19 }
 0x174   : > { %1927 = vmatprep.subr.bf16.mxu1 %v2085_v4 }
 0x175   : > { %v841_v20 = vpop.permute.xlu0 %840 }
 0x176   : > { %v846_v21 = vsel %vm792_vm3, %v841_v20, 0 }
 0x177   : > { %1922 = vmatpush3.bf16.xpose.msra.mxu0 %v846_v21 }
 0x178   : > { %1933 = vmatprep.subr.bf16.mxu0 %v2085_v4 }
 0x17a   : > { %1918 = vmatmul.mubr.msk.bf16.vlgmr.msra.gmra.mrb[4].mxu1 %vm792_vm3, %v2270_v14 }
 0x17b   : > { %1929 = vmatprep.mubr.msk.bf16.mxu1 %vm2086_vm1, %v2085_v4 }
 0x17e   : > { %1924 = vmatmul.mubr.msk.bf16.vlgmr.msra.gmra.mrb[0].mxu0 %vm792_vm3, %v2273_v17 }
 0x17f   : > { %1935 = vmatprep.mubr.msk.bf16.mxu0 %vm2086_vm1, %v2085_v4 }
 0x24d   : > { %v833_v30 = vpop.f32.mrb[4].mxu1 }
 0x24e   : > { %v888_v32 = vmul.f32 0.25, %v833_v30  ;;  %v1919_v33 = vpop.f32.mrb[5].mxu1 }
 0x24f   : > { %v836_v34 = vpop.f32.mrb[6].mxu1 }
 0x250   : > { %v1920_v35 = vpop.f32.mrb[7].mxu1  ;;  %v902_v36 = vadd.f32 %v2294_v29, %v888_v32 }
 0x251   : > { %v882_v38 = vpop.f32.mrb[0].mxu0 }
 0x252   : > { %v889_v39 = vmul.f32 0.25, %v882_v38  ;;  %v1925_v40 = vpop.f32.mrb[1].mxu0  ;;  %v905_v41 = vsel %vm904_vm6, %v902_v36, -inf }
 0x253   : > { %v885_v42 = vpop.f32.mrb[2].mxu0  ;;  %906 = vmax.xlane.f32.xlu1 %v905_v41 }
 0x254   : > { %v1926_v43 = vpop.f32.mrb[3].mxu0  ;;  %v903_v44 = vadd.f32 %v2297_v37, %v889_v39 }
 0x256   : > { %v908_v45 = vsel %vm904_vm6, %v903_v44, -inf }
 0x257   : > { %909 = vmax.xlane.f32.xlu1 %v908_v45 }
 0x268   : > { %929 = vrot.lane.b32.xlu1 %v2270_v14, %s2089_s25 }
 0x26c   : > { %978 = vrot.lane.b32.xlu1 %v2273_v17, %s2089_s25 }
 0x270   : > { %1029 = vrot.lane.b32.xlu1 %v2270_v14, %s2090_s26 }
 0x2e0   : > { %v907_v46 = vpop.xlane.xlu1 %906 }
 0x2e1   : > { %v911_v47 = vsub.f32 %v902_v36, %v907_v46 }
 0x2e3   : > { %v913_v48 = vmul.f32 1.442695, %v911_v47 }
 0x2e4   : > { %v910_v49 = vpop.xlane.xlu1 %909 }
 0x2e5   : > { %2037 = vpow2.f32 %v913_v48  ;;  %v912_v50 = vsub.f32 %v903_v44, %v910_v49 }
 0x2e7   : > { %v915_v51 = vmul.f32 1.442695, %v912_v50 }
 0x2e8   : > { %v930_v52 = vpop.permute.xlu1 %929 }
 0x2e9   : > { %2039 = vpow2.f32 %v915_v51  ;;  %v936_v53 = vsel %vm934_vm7, %v930_v52, 0 }
 0x2ea   : > { %1928 = vmatpush3.bf16.msra.mxu1 %v936_v53 }
 0x2eb   : > { %1939 = vmatprep.subr.bf16.mxu1 %v2085_v4 }
 0x2ec   : > { %v979_v54 = vpop.permute.xlu1 %978 }
 0x2ed   : > { %v984_v55 = vsel %vm934_vm7, %v979_v54, 0 }
 0x2ee   : > { %1934 = vmatpush3.bf16.msra.mxu0 %v984_v55 }
 0x2ef   : > { %v2038_v56 = vpop.eup %2037  ;;  %1945 = vmatprep.subr.bf16.mxu0 %v2085_v4 }
 0x2f0   : > { %v917_v57 = vsel %vm904_vm6, %v2038_v56, 0.0  ;;  %v1030_v60 = vpop.permute.xlu1 %1029 }
 0x2f1   : > { %918 = vadd.xlane.f32.xlu0 %v917_v57  ;;  %v1035_v3 = vsel %vm792_vm3, %v1030_v60, 0 }
 0x2f3   : > { %v2040_v58 = vpop.eup %2039 }
 0x2f4   : > { %v920_v59 = vsel %vm904_vm6, %v2040_v58, 0.0 }
 0x2f5   : > { %921 = vadd.xlane.f32.xlu1 %v920_v59  ;;  %v2030_v59 = vld [vmem:[%s2203_s27 + $0x8] sm:$0xff]  }
 0x306   : > { %1079 = vrot.lane.b32.xlu1 %v2273_v17, %s2090_s26 }
 0x307   : > { %1027 = vrot.lane.b32.xlu0 %v2270_v14, %s2091_s16 }
 0x30a   : > { %1077 = vrot.lane.b32.xlu1 %v2273_v17, %s2091_s16 }
 0x37e   : > { %v919_v61 = vpop.xlane.xlu0 %918 }
 0x37f   : > { %2041 = vrcp.f32 %v919_v61 }
 0x382   : > { %v922_v62 = vpop.xlane.xlu1 %921  ;;  %v1028_v11 = vpop.permute.xlu0 %1027 }
 0x383   : > { %2043 = vrcp.f32 %v922_v62 }
 0x386   : > { %v1080_v8 = vpop.permute.xlu1 %1079 }
 0x387   : > { %v1085_v10 = vsel %vm792_vm3, %v1080_v8, 0 }
 0x389   : > { %v2042_v63 = vpop.eup %2041 }
 0x38a   : > { %v925_v0 = vmul.f32 %v2042_v63, %v2038_v56  ;;  %v1078_v12 = vpop.permute.xlu1 %1077 }
 0x38c   : > { %v927_v1 = vpack.c.bf16 %v925_v0, %v925_v0 }
 0x38d   : > { %v2044_v2 = vpop.eup %2043 }
 0x38e   : > { %v926_v5 = vmul.f32 %v2044_v2, %v2040_v58  ;;  %1930 = vmatmul.mubr.msk.bf16.vlgmr.msra.gmra.mrb[8].mxu1 %vm904_vm6, %v927_v1  ;;  %v2029_v58 = vld [vmem:[%s2203_s27] sm:$0xff]  }
 0x38f   : > { %1940 = vmatpush3.bf16.xpose.msra.mxu1 %v1035_v3  ;;  %1941 = vmatprep.mubr.msk.bf16.mxu1 %vm2086_vm1, %v2085_v4 }
 0x390   : > { %v928_v9 = vpack.c.bf16 %v926_v5, %v926_v5  ;;  %1951 = vmatprep.subr.bf16.mxu1 %v2085_v4 }
 0x392   : > { %1936 = vmatmul.mubr.msk.bf16.vlgmr.msra.gmra.mrb[4].mxu0 %vm904_vm6, %v928_v9 }
 0x393   : > { %1946 = vmatpush3.bf16.xpose.msra.mxu0 %v1085_v10  ;;  %1947 = vmatprep.mubr.msk.bf16.mxu0 %vm2086_vm1, %v2085_v4 }
 0x394   : > { %1957 = vmatprep.subr.bf16.mxu0 %v2085_v4 }
 0x396   : > { %1942 = vmatmul.mubr.msk.bf16.vlgmr.msra.gmra.mrb[12].mxu1 %vm792_vm3, %v1028_v11 }
 0x397   : > { %1953 = vmatprep.mubr.msk.bf16.mxu1 %vm2086_vm1, %v2085_v4 }
 0x39a   : > { %1948 = vmatmul.mubr.msk.bf16.vlgmr.msra.gmra.mrb[8].mxu0 %vm792_vm3, %v1078_v12 }
 0x39b   : > { %1959 = vmatprep.mubr.msk.bf16.mxu0 %vm2086_vm1, %v2085_v4 }
 0x461   : > { %v2330_v13 = vpop.f32.mrb[8].mxu1 }
 0x462   : > { %v1931_v15 = vpop.f32.mrb[9].mxu1 }
 0x463   : > { %v975_v16 = vpop.f32.mrb[10].mxu1 }
 0x464   : > { %v1932_v18 = vpop.f32.mrb[11].mxu1 }
 0x465   : > { %v2332_v19 = vpop.f32.mrb[4].mxu0 }
 0x466   : > { %v1026_v20 = vpack.c.bf16 %v2332_v19, %v2330_v13  ;;  %v1937_v21 = vpop.f32.mrb[5].mxu0  ;;  %v1848_v13 = vld [vmem:[%s2470_s20] ss:$0 sm:$0xff]  ;;  %s2473_s20 = sld [smem:[#allocation10_spill]] (!%p1863_p6) }
 0x467   : > { %v1023_v22 = vpop.f32.mrb[6].mxu0 }
 0x468   : > { %v1938_v23 = vpop.f32.mrb[7].mxu0 }
 0x469   : > { %v1071_v24 = vpop.f32.mrb[12].mxu1 }
 0x46a   : > { %v1127_v25 = vmul.f32 0.25, %v1071_v24  ;;  %v1943_v26 = vpop.f32.mrb[13].mxu1 }
 0x46b   : > { %v1074_v27 = vpop.f32.mrb[14].mxu1 }
 0x46c   : > { %v1944_v28 = vpop.f32.mrb[15].mxu1  ;;  %v1129_v30 = vadd.f32 %v1127_v25, %v2294_v29 }
 0x46d   : > { %v1121_v31 = vpop.f32.mrb[8].mxu0 }
 0x46e   : > { %v1128_v32 = vmul.f32 0.25, %v1121_v31  ;;  %v1949_v33 = vpop.f32.mrb[9].mxu0  ;;  %v1131_v34 = vsel %vm904_vm6, %v1129_v30, -inf }
 0x46f   : > { %v1124_v35 = vpop.f32.mrb[10].mxu0  ;;  %1132 = vmax.xlane.f32.xlu1 %v1131_v34 }
 0x470   : > { %v1950_v36 = vpop.f32.mrb[11].mxu0  ;;  %v1130_v38 = vadd.f32 %v1128_v32, %v2297_v37 }
 0x471   : > { %v2031_v36 = vld [vmem:[%s2220_s23] sm:$0xff]  }
 0x472   : > { %v1134_v39 = vsel %vm904_vm6, %v1130_v38, -inf }
 0x473   : > { %1135 = vmax.xlane.f32.xlu0 %v1134_v39  ;;  %v2033_v39 = vld [vmem:[%s2230_s30] sm:$0xff]  }
 0x489   : > { %1203 = vrot.lane.b32.xlu0 %v2273_v17, %s2092_s4 }
 0x4fc   : > { %v1133_v40 = vpop.xlane.xlu1 %1132 }
 0x4fd   : > { %v1137_v41 = vsub.f32 %v1129_v30, %v1133_v40  ;;  %v2034_v40 = vld [vmem:[%s2230_s30 + $0x8] sm:$0xff]  }
 0x4ff   : > { %v1139_v42 = vmul.f32 1.442695, %v1137_v41 }
 0x500   : > { %v1136_v29 = vpop.xlane.xlu0 %1135 }
 0x501   : > { %2045 = vpow2.f32 %v1139_v42  ;;  %v1138_v43 = vsub.f32 %v1130_v38, %v1136_v29  ;;  %v2032_v38 = vld [vmem:[%s2220_s23 + $0x8] sm:$0xff]  }
 0x503   : > { %v1141_v44 = vmul.f32 1.442695, %v1138_v43 }
 0x504   : > { %v1204_v45 = vpop.permute.xlu0 %1203 }
 0x505   : > { %2047 = vpow2.f32 %v1141_v44  ;;  %v1209_v46 = vsel %vm934_vm7, %v1204_v45, 0 }
 0x506   : > { %1958 = vmatpush3.bf16.msra.mxu0 %v1209_v46 }
 0x507   : > { %1969 = vmatprep.subr.bf16.mxu0 %v2085_v4 }
 0x50b   : > { %v2046_v37 = vpop.eup %2045 }
 0x50c   : > { %v1143_v47 = vsel %vm904_vm6, %v2046_v37, 0.0 }
 0x50d   : > { %1144 = vadd.xlane.f32.xlu1 %v1143_v47 }
 0x50f   : > { %v2048_v48 = vpop.eup %2047 }
 0x510   : > { %v1146_v17 = vsel %vm904_vm6, %v2048_v48, 0.0 }
 0x511   : > { %1147 = vadd.xlane.f32.xlu1 %v1146_v17 }
 0x522   : > { %1155 = vrot.lane.b32.xlu1 %v2270_v14, %s2092_s4 }
 0x59a   : > { %v1145_v49 = vpop.xlane.xlu1 %1144 }
 0x59b   : > { %2049 = vrcp.f32 %v1145_v49 }
 0x59e   : > { %v1148_v50 = vpop.xlane.xlu1 %1147 }
 0x59f   : > { %2051 = vrcp.f32 %v1148_v50  ;;  %v1850_v50 = vld [vmem:[%s2472_s22] ss:$0 sm:$0xff] }
 0x5a2   : > { %v1156_v51 = vpop.permute.xlu1 %1155 }
 0x5a3   : > { %v1161_v52 = vsel %vm934_vm7, %v1156_v51, 0 }
 0x5a4   : > { %1952 = vmatpush3.bf16.msra.mxu1 %v1161_v52 }
 0x5a5   : > { %v2050_v53 = vpop.eup %2049  ;;  %1963 = vmatprep.subr.bf16.mxu1 %v2085_v4 }
 0x5a6   : > { %v1151_v54 = vmul.f32 %v2050_v53, %v2046_v37  ;;  %v1849_v37 = vld [vmem:[%s2471_s14] ss:$0 sm:$0xff] }
 0x5a8   : > { %v1153_v55 = vpack.c.bf16 %v1151_v54, %v1151_v54 }
 0x5a9   : > { %v2052_v56 = vpop.eup %2051 }
 0x5aa   : > { %v1152_v57 = vmul.f32 %v2052_v56, %v2048_v48  ;;  %1954 = vmatmul.mubr.msk.bf16.vlgmr.msra.gmra.mrb[16].mxu1 %vm904_vm6, %v1153_v55  ;;  %v2035_v55 = vld [vmem:[%s2230_s30 + $0x10] sm:$0xff]   ;;  %v2036_v56 = vld [vmem:[%s2230_s30 + $0x18] sm:$0xff]  }
 0x5ab   : > { %1965 = vmatprep.mubr.msk.bf16.mxu1 %vm2086_vm1, %v2085_v4  ;;  %1964 = vmatpush3.bf16.msra.mxu1 %v2030_v59 }
 0x5ac   : > { %v1154_v14 = vpack.c.bf16 %v1152_v57, %v1152_v57  ;;  %1975 = vmatprep.subr.bf16.mxu1 %v2085_v4  ;;  %v1851_v57 = vld [vmem:[%s673_s2] ss:$0 sm:$0xff] }
 0x5ae   : > { %1960 = vmatmul.mubr.msk.bf16.vlgmr.msra.gmra.mrb[12].mxu0 %vm904_vm6, %v1154_v14 }
 0x5af   : > { %1970 = vmatpush3.bf16.msra.mxu0 %v2029_v58  ;;  %1971 = vmatprep.mubr.msk.bf16.mxu0 %vm2086_vm1, %v2085_v4 }
 0x5b0   : > { %1983 = vmatprep.subr.bf16.mxu0 %v2085_v4 }
 0x5b6   : > { %1972 = vmatmul.mubr.msk.bf16.vlgmr.msra.gmra.mrb[16].mxu0 %vm792_vm3, %v1026_v20 }
 0x5b7   : > { %1991 = vmatprep.mubr.msk.bf16.mxu0 %vm2086_vm1, %v2085_v4  ;;  %1984 = vmatpush3.bf16.msra.mxu0 %v2033_v39 }
 0x5b8   : > { %1985 = vmatprep.subr.bf16.mxu0 %v2085_v4 }
 0x5bb   : > { %1986 = vmatpush3.bf16.msra.mxu0 %v2034_v40 }
 0x5bc   : > { %1987 = vmatprep.subr.bf16.mxu0 %v2085_v4 }
 0x5bf   : > { %1988 = vmatpush3.bf16.msra.mxu0 %v2035_v55 }
 0x5c0   : > { %1989 = vmatprep.subr.bf16.mxu0 %v2085_v4 }
 0x5c3   : > { %1990 = vmatpush3.bf16.msra.mxu0 %v2036_v56 }
 0x67d   : > { %v1197_v60 = vpop.f32.mrb[16].mxu1 }
 0x67e   : > { %v1955_v61 = vpop.f32.mrb[17].mxu1 }
 0x67f   : > { %v1200_v62 = vpop.f32.mrb[18].mxu1 }
 0x680   : > { %v1956_v63 = vpop.f32.mrb[19].mxu1 }
 0x681   : > { %v1245_v0 = vpop.f32.mrb[12].mxu0 }
 0x682   : > { %v1251_v1 = vpack.c.bf16 %v1245_v0, %v1197_v60  ;;  %v1961_v2 = vpop.f32.mrb[13].mxu0 }
 0x683   : > { %v1248_v3 = vpop.f32.mrb[14].mxu0 }
 0x684   : > { %v1962_v5 = vpop.f32.mrb[15].mxu0  ;;  %1966 = vmatmul.mubr.msk.bf16.vlgmr.msra.gmra.mrb[20].mxu1 %vm792_vm3, %v1251_v1 }
 0x685   : > { %1979 = vmatprep.mubr.msk.bf16.mxu1 %vm2086_vm1, %v2085_v4  ;;  %1976 = vmatpush3.bf16.msra.mxu1 %v2031_v36  ;;  %v1862_v36 = vld [vmem:[%s687_s1] ss:$0 sm:$0xff] }
 0x686   : > { %1977 = vmatprep.subr.bf16.mxu1 %v2085_v4  ;;  %v1855_v4 = vld [vmem:[%s681_s0] ss:$0 sm:$0xff] }
 0x689   : > { %v1345_v8 = vpop.f32.mrb[16].mxu0  ;;  %1978 = vmatpush3.bf16.msra.mxu1 %v2032_v38 }
 0x68a   : > { %v1973_v9 = vpop.f32.mrb[17].mxu0 }
 0x68b   : > { %v1348_v10 = vpop.f32.mrb[18].mxu0 }
 0x68c   : > { %v1974_v11 = vpop.f32.mrb[19].mxu0 }
 0x757   : > { %v1295_v12 = vpop.f32.mrb[20].mxu1 }
 0x758   : > { %v1346_v15 = vadd.f32 %v1345_v8, %v1295_v12  ;;  %v1967_v16 = vpop.f32.mrb[21].mxu1 }
 0x759   : > { %v1298_v18 = vpop.f32.mrb[22].mxu1 }
 0x75a   : > { %v1359_v19 = vadd.f32 %v1848_v13, %v1346_v15  ;;  %v1349_v20 = vadd.f32 %v1348_v10, %v1298_v18  ;;  %v1968_v21 = vpop.f32.mrb[23].mxu1 }
 0x75c   : > { %v1360_v22 = vadd.f32 %v1848_v13, %v1349_v20  ;;  %v1361_v23 = vadd.f32 %v1359_v19, %v2252_v6 }
 0x75e   : > { %v1365_v24 = vsel %vm738_vm2, %v1361_v23, 0.0  ;;  %v1362_v25 = vadd.f32 %v1360_v22, %v2254_v7 }
 0x75f   : > { %1366 = vadd.xlane.f32.xlu1 %v1365_v24 }
 0x760   : > { %v1368_v26 = vsel %vm738_vm2, %v1362_v25, 0.0 }
 0x761   : > { %1369 = vadd.xlane.f32.xlu0 %v1368_v26 }
 0x7ec   : > { %v1367_v27 = vpop.xlane.xlu1 %1366 }
 0x7ed   : > { %v1372_v28 = vmul.f32 0.03125, %v1367_v27 }
 0x7ee   : > { %v1370_v30 = vpop.xlane.xlu0 %1369 }
 0x7ef   : > { %v1374_v31 = vsub.f32 %v1361_v23, %v1372_v28  ;;  %v1373_v32 = vmul.f32 0.03125, %v1370_v30 }
 0x7f1   : > { %v1375_v33 = vsub.f32 %v1362_v25, %v1373_v32  ;;  %v1376_v34 = vmul.f32 %v1374_v31, %v1374_v31 }
 0x7f3   : > { %v1378_v6 = vsel %vm738_vm2, %v1376_v34, 0.0  ;;  %v1377_v35 = vmul.f32 %v1375_v33, %v1375_v33 }
 0x7f4   : > { %1379 = vadd.xlane.f32.xlu1 %v1378_v6  ;;  %v1861_v6 = vld [vmem:[%s684_s21] ss:$0 sm:$0xff] }
 0x7f5   : > { %v1381_v7 = vsel %vm738_vm2, %v1377_v35, 0.0 }
 0x7f6   : > { %1382 = vadd.xlane.f32.xlu0 %v1381_v7 }
 0x881   : > { %v1380_v41 = vpop.xlane.xlu1 %1379 }
 0x882   : > { %v1384_v42 = vmul.f32 0.03125, %v1380_v41 }
 0x883   : > { %v1383_v29 = vpop.xlane.xlu0 %1382 }
 0x884   : > { %v1386_v43 = vadd.f32 1e-05, %v1384_v42  ;;  %v1385_v44 = vmul.f32 0.03125, %v1383_v29 }
 0x886   : > { %2053 = vrsqrt.f32 %v1386_v43  ;;  %v1387_v45 = vadd.f32 1e-05, %v1385_v44 }
 0x888   : > { %2055 = vrsqrt.f32 %v1387_v45 }
 0x890   : > { %v2054_v46 = vpop.eup %2053 }
 0x891   : > { %v1390_v47 = vmul.f32 %v2054_v46, %v1374_v31 }
 0x892   : > { %v2056_v48 = vpop.eup %2055 }
 0x893   : > { %v1398_v17 = vmul.f32 %v1849_v37, %v1390_v47  ;;  %v1391_v49 = vmul.f32 %v2056_v48, %v1375_v33 }
 0x895   : > { %v1399_v51 = vmul.f32 %v1849_v37, %v1391_v49  ;;  %v1406_v52 = vadd.f32 %v1850_v50, %v1398_v17 }
 0x897   : > { %v1407_v53 = vadd.f32 %v1850_v50, %v1399_v51 }
 0x899   : > { %v1408_v54 = vpack.c.bf16 %v1407_v53, %v1406_v52 }
 0x89b   : > { %1980 = vmatmul.mubr.msk.bf16.vlgmr.msra.gmra.mrb[24].mxu1 %vm738_vm2, %v1408_v54 }
 0x96e   : > { %v1469_v58 = vpop.f32.mrb[24].mxu1 }
 0x96f   : > { %v1470_v14 = vadd.f32 %v1851_v57, %v1469_v58  ;;  %v1981_v59 = vpop.f32.mrb[25].mxu1 }
 0x970   : > { %v1472_v60 = vpop.f32.mrb[26].mxu1 }
 0x971   : > { %v1473_v61 = vadd.f32 %v1851_v57, %v1472_v60  ;;  %v1982_v62 = vpop.f32.mrb[27].mxu1  ;;  %v1476_v63 = vmax.f32 %v1470_v14, 0.0 }
 0x973   : > { %v1477_v0 = vmax.f32 %v1473_v61, 0.0 }
 0x975   : > { %v1478_v1 = vpack.c.bf16 %v1477_v0, %v1476_v63 }
 0x977   : > { %1992 = vmatmul.mubr.msk.bf16.vlgmr.msra.gmra.mrb[20].mxu0 %vm1518_vm8, %v1478_v1 }
 0xa4a   : > { %v1556_v2 = vpop.f32.mrb[20].mxu0 }
 0xa4b   : > { %v1557_v3 = vadd.f32 %v1855_v4, %v1556_v2  ;;  %v1993_v5 = vpop.f32.mrb[21].mxu0 }
 0xa4c   : > { %v1559_v8 = vpop.f32.mrb[22].mxu0 }
 0xa4d   : > { %v1560_v9 = vadd.f32 %v1855_v4, %v1559_v8  ;;  %v1994_v10 = vpop.f32.mrb[23].mxu0  ;;  %v1563_v11 = vadd.f32 %v1557_v3, %v1406_v52 }
 0xa4f   : > { %v1567_v12 = vsel %vm738_vm2, %v1563_v11, 0.0  ;;  %v1564_v13 = vadd.f32 %v1560_v9, %v1407_v53 }
 0xa50   : > { %1568 = vadd.xlane.f32.xlu1 %v1567_v12 }
 0xa51   : > { %v1570_v15 = vsel %vm738_vm2, %v1564_v13, 0.0 }
 0xa52   : > { %1571 = vadd.xlane.f32.xlu0 %v1570_v15 }
 0xadd   : > { %v1569_v16 = vpop.xlane.xlu1 %1568 }
 0xade   : > { %v1573_v18 = vmul.f32 0.03125, %v1569_v16 }
 0xadf   : > { %v1572_v19 = vpop.xlane.xlu0 %1571 }
 0xae0   : > { %v1575_v20 = vsub.f32 %v1563_v11, %v1573_v18  ;;  %v1574_v21 = vmul.f32 0.03125, %v1572_v19 }
 0xae2   : > { %v1576_v22 = vsub.f32 %v1564_v13, %v1574_v21  ;;  %v1577_v23 = vmul.f32 %v1575_v20, %v1575_v20 }
 0xae4   : > { %v1579_v24 = vsel %vm738_vm2, %v1577_v23, 0.0  ;;  %v1578_v25 = vmul.f32 %v1576_v22, %v1576_v22 }
 0xae5   : > { %1580 = vadd.xlane.f32.xlu1 %v1579_v24 }
 0xae6   : > { %v1582_v26 = vsel %vm738_vm2, %v1578_v25, 0.0 }
 0xae7   : > { %1583 = vadd.xlane.f32.xlu0 %v1582_v26 }
 0xb72   : > { %v1581_v27 = vpop.xlane.xlu1 %1580 }
 0xb73   : > { %v1585_v28 = vmul.f32 0.03125, %v1581_v27 }
 0xb74   : > { %v1584_v30 = vpop.xlane.xlu0 %1583 }
 0xb75   : > { %v1587_v31 = vadd.f32 1e-05, %v1585_v28  ;;  %v1586_v32 = vmul.f32 0.03125, %v1584_v30 }
 0xb77   : > { %2057 = vrsqrt.f32 %v1587_v31  ;;  %v1588_v33 = vadd.f32 1e-05, %v1586_v32 }
 0xb79   : > { %2059 = vrsqrt.f32 %v1588_v33 }
 0xb81   : > { %v2058_v34 = vpop.eup %2057 }
 0xb82   : > { %v1591_v35 = vmul.f32 %v2058_v34, %v1575_v20 }
 0xb83   : > { %v2060_v7 = vpop.eup %2059 }
 0xb84   : > { %v1599_v38 = vmul.f32 %v1861_v6, %v1591_v35  ;;  %v1592_v39 = vmul.f32 %v2060_v7, %v1576_v22  ;;  %1614 = sbr.rel (%p1863_p6) target bundleno = 2957 (0xb8d), region = 84 }
 0xb86   : > { %v1607_v40 = vadd.f32 %v1862_v36, %v1599_v38  ;;  %v1600_v41 = vmul.f32 %v1861_v6, %v1592_v39 }
 0xb88   : > { %1609 = vst.msk [vmem:[#allocation2] sm:$0xff] %vm738_vm2, %v1607_v40  ;;  %v1608_v42 = vadd.f32 %v1862_v36, %v1600_v41  ;;  %v1615_v29 = vpack.c.bf16 (!%p1863_p6), %v1607_v40, %v1607_v40 }
 0xb8a   : > { %1610 = vst.msk [vmem:[#allocation2 + $0x8] sm:$0xff] %vm738_vm2, %v1608_v42  ;;  %v1616_v43 = vpack.c.bf16 (!%p1863_p6), %v1608_v42, %v1608_v42 }
 0xb8b   : > { %1618 = vst.msk [vmem:[%s2473_s20] sm:$0xf] %vm1617_vm9, %v1615_v29 }
 0xb8c   : > { %1619 = vst.msk [vmem:[%s2473_s20 + $0x4] sm:$0xf] %vm1617_vm9, %v1616_v43 }
 0xb8d PF: > { %s2474_s23 = sld [smem:[#allocation4_spill]]  ;;  %s2475_s29 = sld [smem:[#allocation3_spill]] }
 0xb8e   : > { %s2476_s30 = sld [smem:[#allocation5_spill]] }
 0xb93   : > { %s24_s15 = sadd.s32 1, %s2474_s23  }
 0xb94   : > { %p21_p7 = scmp.ge.s32.totalorder %s24_s15, 4  }
 0xb96   :  { %23 = sbr.rel (!%p21_p7) target bundleno = 6 (0x6), region = 153 }

// kernel: seq2seq_forward.4
= control target key start
LH: loop header
LB: loop body
LE: loop exit
PB: predicated region body
PF: predicated region fallthrough
CT: control target
= control target key end

     0   :  { %s4340_s0 = inlined_call_operand.vmem [shape: bf16[2,8,32], index: 0, kind: input, shape index: {}]   ;;  %s4341_s1 = inlined_call_operand.vmem [shape: bf16[2,8,32], index: 1, kind: input, shape index: {}]   ;;  %s4342_s2 = inlined_call_operand.vmem [shape: f32[2,1,8], index: 2, kind: input, shape index: {}]   ;;  %s4343_s3 = inlined_call_operand.vmem [shape: f32[2,1,8], index: 3, kind: input, shape index: {}]   ;;  %s4344_s4 = inlined_call_operand.vmem [shape: bf16[2,32,96], index: 4, kind: input, shape index: {}]   ;;  %s4345_s5 = inlined_call_operand.vmem [shape: f32[2,1,96], index: 5, kind: input, shape index: {}]   ;;  %s4346_s6 = inlined_call_operand.vmem [shape: bf16[2,32,32], index: 6, kind: input, shape index: {}]   ;;  %s4347_s7 = inlined_call_operand.vmem [shape: f32[2,1,32], index: 7, kind: input, shape index: {}]   ;;  %s4348_s8 = inlined_call_operand.vmem [shape: f32[2,1,32], index: 8, kind: input, shape index: {}]   ;;  %s4349_s9 = inlined_call_operand.vmem [shape: f32[2,1,32], index: 9, kind: input, shape index: {}]   ;;  %s4350_s10 = inlined_call_operand.vmem [shape: bf16[2,32,32], index: 10, kind: input, shape index: {}]   ;;  %s4351_s11 = inlined_call_operand.vmem [shape: f32[2,1,32], index: 11, kind: input, shape index: {}]   ;;  %s4352_s12 = inlined_call_operand.vmem [shape: bf16[2,32,64], index: 12, kind: input, shape index: {}]   ;;  %s4353_s13 = inlined_call_operand.vmem [shape: f32[2,1,64], index: 13, kind: input, shape index: {}]   ;;  %s4354_s14 = inlined_call_operand.vmem [shape: bf16[2,32,32], index: 14, kind: input, shape index: {}]   ;;  %s4355_s15 = inlined_call_operand.vmem [shape: f32[2,1,32], index: 15, kind: input, shape index: {}]   ;;  %s4356_s16 = inlined_call_operand.vmem [shape: f32[2,1,32], index: 16, kind: input, shape index: {}]   ;;  %s4357_s17 = inlined_call_operand.vmem [shape: f32[2,1,32], index: 17, kind: input, shape index: {}]   ;;  %s4358_s18 = inlined_call_operand.vmem [shape: bf16[2,32,64], index: 18, kind: input, shape index: {}]   ;;  %s4359_s19 = inlined_call_operand.vmem [shape: f32[2,1,64], index: 19, kind: input, shape index: {}]   ;;  %s4360_s20 = inlined_call_operand.vmem [shape: bf16[2,64,32], index: 20, kind: input, shape index: {}]   ;;  %s4361_s21 = inlined_call_operand.vmem [shape: f32[2,1,32], index: 21, kind: input, shape index: {}]   ;;  %s4362_s22 = inlined_call_operand.vmem [shape: f32[2,1,32], index: 22, kind: input, shape index: {}]   ;;  %s4363_s23 = inlined_call_operand.vmem [shape: f32[2,1,32], index: 23, kind: input, shape index: {}]   ;;  %s4364_s24 = inlined_call_operand.vmem [shape: bf16[2,8,32], index: 24, kind: output, shape index: {0}]   ;;  %s4365_s25 = inlined_call_operand.hbm [shape: f32[2,2,8,8], index: 25, kind: output, shape index: {1}]  }
   0x1   :  { %4374 = sst [smem:[#allocation11_spill]] %s4340_s0 }
   0x2   :  { %4375 = sst [smem:[#allocation12_spill]] %s4341_s1 }
   0x3   :  { %4376 = sst [smem:[#allocation13_spill]] %s4342_s2 }
   0x4   :  { %4377 = sst [smem:[#allocation14_spill]] %s4343_s3 }
   0x5   :  { %4378 = sst [smem:[#allocation15_spill]] %s4344_s4 }
   0x6   :  { %4379 = sst [smem:[#allocation16_spill]] %s4345_s5 }
   0x7   :  { %4380 = sst [smem:[#allocation17_spill]] %s4346_s6 }
   0x8   :  { %4381 = sst [smem:[#allocation18_spill]] %s4347_s7 }
   0x9   :  { %4382 = sst [smem:[#allocation19_spill]] %s4348_s8 }
   0xa   :  { %4383 = sst [smem:[#allocation20_spill]] %s4349_s9 }
   0xb   :  { %4384 = sst [smem:[#allocation21_spill]] %s4350_s10 }
   0xc   :  { %4385 = sst [smem:[#allocation22_spill]] %s4352_s12 }
   0xd   :  { %4386 = sst [smem:[#allocation23_spill]] %s4354_s14 }
   0xe   :  { %4387 = sst [smem:[#allocation24_spill]] %s4357_s17 }
   0xf   :  { %4388 = sst [smem:[#allocation25_spill]] %s4358_s18 }
  0x10   :  { %4389 = sst [smem:[#allocation26_spill]] %s4361_s21 }
  0x11   :  { %4390 = sst [smem:[#allocation27_spill]] %s4362_s22 }
  0x12   :  { %4391 = sst [smem:[#allocation28_spill]] %s4363_s23 }
  0x13   :  { %4392 = sst [smem:[#allocation29_spill]] %s4364_s24 }
  0x14   :  { %4393 = sst [smem:[#allocation30_spill]] %s4365_s25 }
  0x15   :  { %31 = vsyncpa [#allocation4], 0  ;;  %s3826_s29 = smov 0   ;;  %s3828_s2 = smov 0  }
  0x16   :  { %s3830_s6 = smov 0  }
  0x17 LB: > { %4394 = sst [smem:[#allocation6_spill]] %s3675_s29  ;;  %s46_s7 = sadd.s32 1, %s3679_s2  ;;  %s3683_s6 = sphi %s3830_s6, %s37_s6   ;;  %s3679_s2 = sphi %s3828_s2, %s4446_s2   ;;  %s3675_s29 = sphi %s3826_s29, %s4445_s29  }
  0x18   : > { %4395 = sst [smem:[#allocation7_spill]] %s3679_s2  ;;  %p47_p0 = scmp.ge.s32.totalorder %s46_s7, 2 }
  0x19   : > { %4396 = sst [smem:[#allocation8_spill]] %s3683_s6  ;;  %p3219_p1 = scmp.ge.s32.totalorder %s3683_s6, 1 }
  0x1a   : > { %p909_p2 = scmp.lt.s32.totalorder %s3683_s6, 3  ;;  %s4448_s7 = smov (%p47_p0, %s46_s7), 0 }
  0x1b   : > { %4397 = sst [smem:[#allocation9_spill]] %s4448_s7 }
  0x1c   : > { %p910_p3 = pnand %p3219_p1, %p909_p2 }
  0x1e   : > { %913 = sbr.rel (%p910_p3) target bundleno = 5070 (0x13ce), region = 116 }
  0x25   : > { %p1086_p4 = scmp.lt.s32.totalorder %s3675_s29, 1  ;;  %s4399_s5 = sld [smem:[#allocation15_spill]] }
  0x26   : > { %s4401_s2 = sld [smem:[#allocation17_spill]]  ;;  %s4405_s10 = sld [smem:[#allocation21_spill]] }
  0x27   : > { %s3849_s3 = scalar_select %p1086_p4, %s3675_s29, 1 }
  0x28   : > { %s4406_s12 = sld [smem:[#allocation22_spill]]  ;;  %s4407_s14 = sld [smem:[#allocation23_spill]] }
  0x29   : > { %s3297_s26 = sshll.u32 %s3849_s3, 4  ;;  %s4409_s18 = sld [smem:[#allocation25_spill]] }
  0x2a   : > { %s4410_s24 = sld [smem:[#allocation26_spill]] }
  0x2b   : > { %s3859_s0 = scalar_lea.vmem %s4399_s5, %s3297_s26  ;;  %s4413_s28 = sld [smem:[#allocation6_spill]] }
  0x2c   : > { %4400 = sst [smem:[#allocation10_spill]] %s3859_s0  ;;  %s3864_s25 = scalar_lea.vmem %s4401_s2, %s3297_s26 }
  0x2d   : > { %s3881_s2 = scalar_lea.vmem %s4405_s10, %s3297_s26 }
  0x2e   : > { %s3890_s22 = scalar_lea.vmem %s4406_s12, %s3297_s26  ;;  %s3899_s5 = scalar_lea.vmem %s4407_s14, %s3297_s26 }
  0x2f   : > { %s3916_s8 = scalar_lea.vmem %s4409_s18, %s3297_s26  ;;  %s3303_s12 = sshll.u32 %s3849_s3, 5 }
  0x30   : > { %s3926_s27 = scalar_lea.vmem %s4360_s20, %s3303_s12  ;;  %s1153_s29 = scalar_lea.vmem %s4410_s24, %s3849_s3 }
  0x31   : > { %s4411_s14 = sld [smem:[#allocation27_spill]]  ;;  %s4412_s18 = sld [smem:[#allocation28_spill]] }
  0x32   : > { %p3234_p5 = scmp.ne.s32.totalorder %s4413_s28, 0 }
  0x33   : > { %s4414_s21 = sld [smem:[#allocation11_spill]] (!%p3234_p5)  ;;  %vm1176_vm0 = vcmask (!%p3234_p5), 261120  }
  0x34   : > { %1171 = sbr.rel (%p3234_p5) target bundleno = 61 (0x3d), region = 120 }
  0x37   : > { %s1156_s10 = scalar_lea.vmem %s4411_s14, %s3849_s3  ;;  %s1159_s17 = scalar_lea.vmem %s4412_s18, %s3849_s3 }
  0x39   : > { %v3305_v0 = vld [vmem:[%s4414_s21] sm:$0xff] (!%p3234_p5)  }
  0x3a   : > { %v3306_v1 = vunpack.c.l.bf16 (!%p3234_p5), %v3305_v0  ;;  %v3307_v2 = vunpack.c.h.bf16 (!%p3234_p5), %v3305_v0 }
  0x3c   : > { %1177 = vst.msk [vmem:[#allocation2] sm:$0xff] %vm1176_vm0, %v3306_v1  ;;  %1178 = vst.msk [vmem:[#allocation2 + $0x8] sm:$0xff] %vm1176_vm0, %v3307_v2 }
  0x3d PF: > { %s4415_s12 = sld [smem:[#allocation10_spill]]  ;;  %v3685_v4 = vmov 0.0   ;;  %vm3686_vm1 = vmmov 0   ;;  %vm1217_vm2 = vcmask 261120   ;;  %s4416_s23 = sld [smem:[#allocation16_spill]]  ;;  %vm1291_vm3 = vcmask 130048  }
  0x3e   : > { %3365 = vmatprep.subr.bf16.mxu1 %v3685_v4  ;;  %3379 = vmatprep.subr.bf16.mxu0 %v3685_v4  ;;  %s3687_s4 = smov 96   ;;  %v1266_v22 = vlaneseq  ;;  %s4418_s7 = sld [smem:[#allocation13_spill]]  ;;  %v3688_v28 = vmov -1e+10   ;;  %vm1391_vm7 = vcmask 64512   ;;  %vm1421_vm8 = vcmask 1043456  }
  0x3f   : > { %3369 = vmatprep.mubr.msk.bf16.mxu1 %vm3686_vm1, %v3685_v4  ;;  %3381 = vmatprep.mubr.msk.bf16.mxu0 %vm3686_vm1, %v3685_v4  ;;  %s3689_s1 = smov 64   ;;  %s3690_s28 = smov 80   ;;  %vm2773_vm11 = vcmask 523264  }
  0x40   : > { %v1267_v24 = vshrl.u32 %v1266_v22, 7  ;;  %v1269_v25 = vand.u32 127, %v1266_v22  ;;  %s3691_s9 = smov 112   ;;  %s3692_s21 = smov 48  }
  0x41   : > { %s4419_s14 = sld [smem:[#allocation18_spill]]  ;;  %s4421_s0 = sld [smem:[#allocation12_spill]] }
  0x42   : > { %v3994_v27 = vsub.s32 0, %v1267_v24  ;;  %vm1270_vm5 = vcmp.ge.s32.totalorder %v1267_v24, %v1269_v25  ;;  %s4422_s6 = sld [smem:[#allocation19_spill]] }
  0x43   : > { %v3570_v3 = vld [vmem:[%s4415_s12] sm:$0xff]   ;;  %v3571_v5 = vld [vmem:[%s4415_s12 + $0x8] sm:$0xff]   ;;  %s4417_s24 = scalar_lea.vmem %s4416_s23, %s3849_s3  ;;  %v1271_v31 = vsel %vm1270_vm5, 0.0, %v3688_v28 }
  0x44   : > { %3366 = vmatpush3.bf16.msra.mxu1 %v3570_v3  ;;  %v3950_v6 = vld [vmem:[#allocation2] sm:$0xff]  ;;  %v3952_v7 = vld [vmem:[#allocation2 + $0x8] sm:$0xff] }
  0x45   : > { %3367 = vmatprep.subr.bf16.mxu1 %v3685_v4  ;;  %v1193_v8 = vpack.c.bf16 %v3952_v7, %v3950_v6  ;;  %v3235_v9 = vld [vmem:[%s4417_s24] ss:$0 sm:$0xff]  ;;  %v1182_v26 = vld [vmem:[%s4418_s7 + $0x1] sm:$0x1] }
  0x46   : > { %v1181_v23 = vld [vmem:[%s4418_s7] sm:$0x1]  ;;  %vm1184_vm6 = vcmp.gt.f32.partialorder %v1182_v26, 0.0 }
  0x47   : > { %vm1183_vm4 = vcmp.gt.f32.partialorder %v1181_v23, 0.0  ;;  %v1186_v32 = vsel %vm1184_vm6, 0.0, %v3688_v28  ;;  %s4420_s18 = scalar_lea.vmem %s4419_s14, %s3849_s3  ;;  %s4432_s14 = sld [smem:[#allocation24_spill]] }
  0x48   : > { %3368 = vmatpush3.bf16.msra.mxu1 %v3571_v5  ;;  %v1185_v29 = vsel %vm1183_vm4, 0.0, %v3688_v28  ;;  %v1281_v34 = vrot.slane %v1186_v32, %v3994_v27 }
  0x49   : > { %3373 = vmatprep.subr.bf16.mxu1 %v3685_v4  ;;  %v1277_v30 = vrot.slane %v1185_v29, %v3994_v27 }
  0x4a   : > { %v4004_v41 = vadd.f32 %v1281_v34, %v1271_v31 }
  0x4b   : > { %3370 = vmatmul.mubr.msk.bf16.vlgmr.msra.gmra.mrb[0].mxu1 %vm1217_vm2, %v1193_v8  ;;  %v4000_v33 = vadd.f32 %v1277_v30, %v1271_v31 }
  0x4c   : > { %3375 = vmatprep.mubr.msk.bf16.mxu1 %vm3686_vm1, %v3685_v4 }
 0x11e   : > { %v1255_v10 = vpop.f32.mrb[0].mxu1 }
 0x11f   : > { %v1256_v11 = vadd.f32 %v3235_v9, %v1255_v10  ;;  %v3371_v12 = vpop.f32.mrb[1].mxu1 }
 0x120   : > { %v1258_v13 = vpop.f32.mrb[2].mxu1 }
 0x121   : > { %v3968_v14 = vpack.c.bf16 %v1256_v11, %v1256_v11  ;;  %v1259_v15 = vadd.f32 %v3235_v9, %v1258_v13  ;;  %v3372_v16 = vpop.f32.mrb[3].mxu1 }
 0x123   : > { %1289 = vrot.lane.b32.xlu0 %v3968_v14, %s3687_s4  ;;  %v3972_v17 = vpack.c.bf16 %v1259_v15, %v1259_v15 }
 0x127   : > { %1339 = vrot.lane.b32.xlu0 %v3972_v17, %s3687_s4 }
 0x195   : > { %v1290_v18 = vpop.permute.xlu0 %1289 }
 0x196   : > { %v1296_v19 = vsel %vm1291_vm3, %v1290_v18, 0 }
 0x197   : > { %3374 = vmatpush3.bf16.xpose.msra.mxu1 %v1296_v19 }
 0x198   : > { %3385 = vmatprep.subr.bf16.mxu1 %v3685_v4 }
 0x199   : > { %v1340_v20 = vpop.permute.xlu0 %1339 }
 0x19a   : > { %v1345_v21 = vsel %vm1291_vm3, %v1340_v20, 0 }
 0x19b   : > { %3380 = vmatpush3.bf16.xpose.msra.mxu0 %v1345_v21 }
 0x19c   : > { %3391 = vmatprep.subr.bf16.mxu0 %v3685_v4 }
 0x19e   : > { %3376 = vmatmul.mubr.msk.bf16.vlgmr.msra.gmra.mrb[4].mxu1 %vm1291_vm3, %v3968_v14 }
 0x19f   : > { %3387 = vmatprep.mubr.msk.bf16.mxu1 %vm3686_vm1, %v3685_v4 }
 0x1a2   : > { %3382 = vmatmul.mubr.msk.bf16.vlgmr.msra.gmra.mrb[0].mxu0 %vm1291_vm3, %v3972_v17 }
 0x1a3   : > { %3393 = vmatprep.mubr.msk.bf16.mxu0 %vm3686_vm1, %v3685_v4 }
 0x271   : > { %v1332_v35 = vpop.f32.mrb[4].mxu1 }
 0x272   : > { %v1387_v36 = vmul.f32 0.25, %v1332_v35  ;;  %v3377_v37 = vpop.f32.mrb[5].mxu1 }
 0x273   : > { %v1335_v38 = vpop.f32.mrb[6].mxu1 }
 0x274   : > { %v3378_v39 = vpop.f32.mrb[7].mxu1  ;;  %v1389_v40 = vadd.f32 %v1387_v36, %v4000_v33 }
 0x275   : > { %v1381_v42 = vpop.f32.mrb[0].mxu0 }
 0x276   : > { %v1388_v43 = vmul.f32 0.25, %v1381_v42  ;;  %v3383_v44 = vpop.f32.mrb[1].mxu0  ;;  %v1392_v45 = vsel %vm1391_vm7, %v1389_v40, -inf }
 0x277   : > { %v1384_v46 = vpop.f32.mrb[2].mxu0  ;;  %1393 = vmax.xlane.f32.xlu1 %v1392_v45 }
 0x278   : > { %v3384_v47 = vpop.f32.mrb[3].mxu0  ;;  %v1390_v48 = vadd.f32 %v1388_v43, %v4004_v41 }
 0x27a   : > { %v1395_v49 = vsel %vm1391_vm7, %v1390_v48, -inf }
 0x27b   : > { %1396 = vmax.xlane.f32.xlu1 %v1395_v49 }
 0x28c   : > { %1416 = vrot.lane.b32.xlu1 %v3968_v14, %s3689_s1 }
 0x290   : > { %1465 = vrot.lane.b32.xlu1 %v3972_v17, %s3689_s1 }
 0x294   : > { %1516 = vrot.lane.b32.xlu1 %v3968_v14, %s3690_s28 }
 0x304   : > { %v1394_v50 = vpop.xlane.xlu1 %1393 }
 0x305   : > { %v1398_v51 = vsub.f32 %v1389_v40, %v1394_v50 }
 0x307   : > { %v1400_v52 = vmul.f32 1.442695, %v1398_v51 }
 0x308   : > { %v1397_v53 = vpop.xlane.xlu1 %1396 }
 0x309   : > { %3587 = vpow2.f32 %v1400_v52  ;;  %v1399_v54 = vsub.f32 %v1390_v48, %v1397_v53 }
 0x30b   : > { %v1402_v55 = vmul.f32 1.442695, %v1399_v54 }
 0x30c   : > { %v1417_v56 = vpop.permute.xlu1 %1416 }
 0x30d   : > { %3589 = vpow2.f32 %v1402_v55  ;;  %v1423_v57 = vsel %vm1421_vm8, %v1417_v56, 0 }
 0x30e   : > { %3386 = vmatpush3.bf16.msra.mxu1 %v1423_v57 }
 0x30f   : > { %3397 = vmatprep.subr.bf16.mxu1 %v3685_v4 }
 0x310   : > { %v1466_v58 = vpop.permute.xlu1 %1465 }
 0x311   : > { %v1471_v59 = vsel %vm1421_vm8, %v1466_v58, 0 }
 0x312   : > { %3392 = vmatpush3.bf16.msra.mxu0 %v1471_v59 }
 0x313   : > { %v3588_v60 = vpop.eup %3587  ;;  %3403 = vmatprep.subr.bf16.mxu0 %v3685_v4 }
 0x314   : > { %v1404_v61 = vsel %vm1391_vm7, %v3588_v60, 0.0  ;;  %v1517_v0 = vpop.permute.xlu1 %1516 }
 0x315   : > { %1405 = vadd.xlane.f32.xlu0 %v1404_v61  ;;  %v1522_v10 = vsel %vm1291_vm3, %v1517_v0, 0  ;;  %v3572_v0 = vld [vmem:[%s3864_s25] sm:$0xff]  }
 0x317   : > { %v3590_v62 = vpop.eup %3589 }
 0x318   : > { %v1407_v63 = vsel %vm1391_vm7, %v3590_v62, 0.0 }
 0x319   : > { %1408 = vadd.xlane.f32.xlu1 %v1407_v63 }
 0x32a   : > { %1566 = vrot.lane.b32.xlu1 %v3972_v17, %s3690_s28 }
 0x32b   : > { %1514 = vrot.lane.b32.xlu0 %v3968_v14, %s3691_s9 }
 0x32e   : > { %1564 = vrot.lane.b32.xlu1 %v3972_v17, %s3691_s9 }
 0x3a2   : > { %v1406_v1 = vpop.xlane.xlu0 %1405 }
 0x3a3   : > { %3591 = vrcp.f32 %v1406_v1  ;;  %v3573_v1 = vld [vmem:[%s3864_s25 + $0x8] sm:$0xff]  }
 0x3a6   : > { %v1409_v2 = vpop.xlane.xlu1 %1408  ;;  %v1515_v16 = vpop.permute.xlu0 %1514 }
 0x3a7   : > { %3593 = vrcp.f32 %v1409_v2 }
 0x3aa   : > { %v1567_v12 = vpop.permute.xlu1 %1566 }
 0x3ab   : > { %v1572_v15 = vsel %vm1291_vm3, %v1567_v12, 0 }
 0x3ad   : > { %v3592_v3 = vpop.eup %3591 }
 0x3ae   : > { %v1412_v5 = vmul.f32 %v3592_v3, %v3588_v60  ;;  %v1565_v18 = vpop.permute.xlu1 %1564 }
 0x3b0   : > { %v1414_v8 = vpack.c.bf16 %v1412_v5, %v1412_v5 }
 0x3b1   : > { %v3594_v9 = vpop.eup %3593 }
 0x3b2   : > { %v1413_v11 = vmul.f32 %v3594_v9, %v3590_v62  ;;  %3388 = vmatmul.mubr.msk.bf16.vlgmr.msra.gmra.mrb[8].mxu1 %vm1391_vm7, %v1414_v8 }
 0x3b3   : > { %3398 = vmatpush3.bf16.xpose.msra.mxu1 %v1522_v10  ;;  %3399 = vmatprep.mubr.msk.bf16.mxu1 %vm3686_vm1, %v3685_v4 }
 0x3b4   : > { %v1415_v13 = vpack.c.bf16 %v1413_v11, %v1413_v11  ;;  %3409 = vmatprep.subr.bf16.mxu1 %v3685_v4 }
 0x3b6   : > { %3394 = vmatmul.mubr.msk.bf16.vlgmr.msra.gmra.mrb[4].mxu0 %vm1391_vm7, %v1415_v13 }
 0x3b7   : > { %3404 = vmatpush3.bf16.xpose.msra.mxu0 %v1572_v15  ;;  %3405 = vmatprep.mubr.msk.bf16.mxu0 %vm3686_vm1, %v3685_v4 }
 0x3b8   : > { %3415 = vmatprep.subr.bf16.mxu0 %v3685_v4 }
 0x3ba   : > { %3400 = vmatmul.mubr.msk.bf16.vlgmr.msra.gmra.mrb[12].mxu1 %vm1291_vm3, %v1515_v16 }
 0x3bb   : > { %3411 = vmatprep.mubr.msk.bf16.mxu1 %vm3686_vm1, %v3685_v4 }
 0x3be   : > { %3406 = vmatmul.mubr.msk.bf16.vlgmr.msra.gmra.mrb[8].mxu0 %vm1291_vm3, %v1565_v18 }
 0x3bf   : > { %3417 = vmatprep.mubr.msk.bf16.mxu0 %vm3686_vm1, %v3685_v4 }
 0x485   : > { %v4041_v19 = vpop.f32.mrb[8].mxu1 }
 0x486   : > { %v3389_v20 = vpop.f32.mrb[9].mxu1 }
 0x487   : > { %v1462_v21 = vpop.f32.mrb[10].mxu1 }
 0x488   : > { %v3390_v22 = vpop.f32.mrb[11].mxu1  ;;  %v3251_v21 = vld [vmem:[%s4420_s18] ss:$0 sm:$0xff]  ;;  %s4426_s18 = scalar_lea.vmem %s4353_s13, %s3849_s3 }
 0x489   : > { %v4043_v23 = vpop.f32.mrb[4].mxu0 }
 0x48a   : > { %v1513_v24 = vpack.c.bf16 %v4043_v23, %v4041_v19  ;;  %v3395_v25 = vpop.f32.mrb[5].mxu0 }
 0x48b   : > { %v1510_v26 = vpop.f32.mrb[6].mxu0 }
 0x48c   : > { %v3396_v29 = vpop.f32.mrb[7].mxu0 }
 0x48d   : > { %v1558_v30 = vpop.f32.mrb[12].mxu1 }
 0x48e   : > { %v1614_v31 = vmul.f32 0.25, %v1558_v30  ;;  %v3401_v32 = vpop.f32.mrb[13].mxu1 }
 0x48f   : > { %v1561_v34 = vpop.f32.mrb[14].mxu1 }
 0x490   : > { %v3402_v35 = vpop.f32.mrb[15].mxu1  ;;  %v1616_v36 = vadd.f32 %v1614_v31, %v4000_v33 }
 0x491   : > { %v1608_v37 = vpop.f32.mrb[8].mxu0 }
 0x492   : > { %v1615_v38 = vmul.f32 0.25, %v1608_v37  ;;  %v3407_v39 = vpop.f32.mrb[9].mxu0  ;;  %v1618_v40 = vsel %vm1391_vm7, %v1616_v36, -inf }
 0x493   : > { %v1611_v42 = vpop.f32.mrb[10].mxu0  ;;  %1619 = vmax.xlane.f32.xlu1 %v1618_v40 }
 0x494   : > { %v3408_v43 = vpop.f32.mrb[11].mxu0  ;;  %v1617_v44 = vadd.f32 %v1615_v38, %v4004_v41 }
 0x496   : > { %v1621_v45 = vsel %vm1391_vm7, %v1617_v44, -inf }
 0x497   : > { %1622 = vmax.xlane.f32.xlu0 %v1621_v45  ;;  %v3574_v45 = vld [vmem:[%s3890_s22] sm:$0xff]  }
 0x4ad   : > { %1690 = vrot.lane.b32.xlu0 %v3972_v17, %s3692_s21 }
 0x520   : > { %v1620_v46 = vpop.xlane.xlu1 %1619 }
 0x521   : > { %v1624_v47 = vsub.f32 %v1616_v36, %v1620_v46  ;;  %v3575_v46 = vld [vmem:[%s3890_s22 + $0x8] sm:$0xff]  }
 0x523   : > { %v1626_v48 = vmul.f32 1.442695, %v1624_v47  ;;  %v3576_v47 = vld [vmem:[%s4421_s0] sm:$0xff]   ;;  %s4427_s0 = scalar_lea.vmem %s4351_s11, %s3849_s3 }
 0x524   : > { %v1623_v33 = vpop.xlane.xlu0 %1622 }
 0x525   : > { %3595 = vpow2.f32 %v1626_v48  ;;  %v1625_v49 = vsub.f32 %v1617_v44, %v1623_v33  ;;  %v3577_v48 = vld [vmem:[%s3881_s2] sm:$0xff]   ;;  %v3578_v33 = vld [vmem:[%s3881_s2 + $0x8] sm:$0xff]   ;;  %s4423_s2 = scalar_lea.vmem %s4422_s6, %s3849_s3  ;;  %s4428_s6 = sld [smem:[#allocation14_spill]] }
 0x527   : > { %v1628_v50 = vmul.f32 1.442695, %v1625_v49 }
 0x528   : > { %v1691_v51 = vpop.permute.xlu0 %1690 }
 0x529   : > { %3597 = vpow2.f32 %v1628_v50  ;;  %v1696_v52 = vsel %vm1421_vm8, %v1691_v51, 0 }
 0x52a   : > { %3416 = vmatpush3.bf16.msra.mxu0 %v1696_v52 }
 0x52b   : > { %3427 = vmatprep.subr.bf16.mxu0 %v3685_v4  ;;  %s4429_s26 = smov %s4428_s6 }
 0x52f   : > { %v3596_v41 = vpop.eup %3595 }
 0x530   : > { %v1630_v53 = vsel %vm1391_vm7, %v3596_v41, 0.0 }
 0x531   : > { %1631 = vadd.xlane.f32.xlu1 %v1630_v53 }
 0x533   : > { %v3598_v54 = vpop.eup %3597 }
 0x534   : > { %v1633_v17 = vsel %vm1391_vm7, %v3598_v54, 0.0 }
 0x535   : > { %1634 = vadd.xlane.f32.xlu1 %v1633_v17  ;;  %v3252_v17 = vld [vmem:[%s4423_s2] ss:$0 sm:$0xff] }
 0x546   : > { %1642 = vrot.lane.b32.xlu1 %v3968_v14, %s3692_s21  ;;  %s4424_s21 = sld [smem:[#allocation20_spill]] }
 0x54c   : > { %s4425_s25 = scalar_lea.vmem %s4424_s21, %s3849_s3  ;;  %s4431_s21 = scalar_lea.vmem %s4356_s16, %s3849_s3 }
 0x5be   : > { %v1632_v55 = vpop.xlane.xlu1 %1631 }
 0x5bf   : > { %3599 = vrcp.f32 %v1632_v55 }
 0x5c2   : > { %v1635_v56 = vpop.xlane.xlu1 %1634 }
 0x5c3   : > { %3601 = vrcp.f32 %v1635_v56 }
 0x5c6   : > { %v1643_v57 = vpop.permute.xlu1 %1642 }
 0x5c7   : > { %v1648_v58 = vsel %vm1421_vm8, %v1643_v57, 0 }
 0x5c8   : > { %3410 = vmatpush3.bf16.msra.mxu1 %v1648_v58 }
 0x5c9   : > { %v3600_v59 = vpop.eup %3599  ;;  %3421 = vmatprep.subr.bf16.mxu1 %v3685_v4 }
 0x5ca   : > { %v1638_v60 = vmul.f32 %v3600_v59, %v3596_v41  ;;  %v3253_v59 = vld [vmem:[%s4425_s25] ss:$0 sm:$0xff] }
 0x5cc   : > { %v1640_v61 = vpack.c.bf16 %v1638_v60, %v1638_v60 }
 0x5cd   : > { %v3602_v62 = vpop.eup %3601 }
 0x5ce   : > { %v1639_v63 = vmul.f32 %v3602_v62, %v3598_v54  ;;  %3412 = vmatmul.mubr.msk.bf16.vlgmr.msra.gmra.mrb[16].mxu1 %vm1391_vm7, %v1640_v61 }
 0x5cf   : > { %3423 = vmatprep.mubr.msk.bf16.mxu1 %vm3686_vm1, %v3685_v4  ;;  %3422 = vmatpush3.bf16.msra.mxu1 %v3573_v1 }
 0x5d0   : > { %v1641_v14 = vpack.c.bf16 %v1639_v63, %v1639_v63  ;;  %3433 = vmatprep.subr.bf16.mxu1 %v3685_v4 }
 0x5d2   : > { %3418 = vmatmul.mubr.msk.bf16.vlgmr.msra.gmra.mrb[12].mxu0 %vm1391_vm7, %v1641_v14 }
 0x5d3   : > { %3428 = vmatpush3.bf16.msra.mxu0 %v3572_v0  ;;  %3429 = vmatprep.mubr.msk.bf16.mxu0 %vm3686_vm1, %v3685_v4  ;;  %v3258_v0 = vld [vmem:[%s4426_s18] ss:$0 sm:$0xff]  ;;  %s4433_s18 = scalar_lea.vmem %s4432_s14, %s3849_s3 }
 0x5d4   : > { %3441 = vmatprep.subr.bf16.mxu0 %v3685_v4 }
 0x5da   : > { %3430 = vmatmul.mubr.msk.bf16.vlgmr.msra.gmra.mrb[16].mxu0 %vm1291_vm3, %v1513_v24 }
 0x5db   : > { %3445 = vmatprep.mubr.msk.bf16.mxu0 %vm3686_vm1, %v3685_v4  ;;  %3442 = vmatpush3.bf16.msra.mxu0 %v3574_v45 }
 0x5dc   : > { %3443 = vmatprep.subr.bf16.mxu0 %v3685_v4 }
 0x5df   : > { %3444 = vmatpush3.bf16.msra.mxu0 %v3575_v46 }
 0x5e0   : > { %3455 = vmatprep.subr.bf16.mxu0 %v3685_v4 }
 0x5e2   : > { %3446 = vmatmul.mubr.msk.bf16.vlgmr.msra.gmra.mrb[20].mxu0 %vm1217_vm2, %v3576_v47 }
 0x5e3   : > { %3457 = vmatprep.mubr.msk.bf16.mxu0 %vm3686_vm1, %v3685_v4 }
 0x6a1   : > { %v1684_v2 = vpop.f32.mrb[16].mxu1 }
 0x6a2   : > { %v3413_v3 = vpop.f32.mrb[17].mxu1 }
 0x6a3   : > { %v1687_v5 = vpop.f32.mrb[18].mxu1 }
 0x6a4   : > { %v3414_v8 = vpop.f32.mrb[19].mxu1 }
 0x6a5   : > { %v1732_v9 = vpop.f32.mrb[12].mxu0 }
 0x6a6   : > { %v1738_v10 = vpack.c.bf16 %v1732_v9, %v1684_v2  ;;  %v3419_v11 = vpop.f32.mrb[13].mxu0 }
 0x6a7   : > { %v1735_v12 = vpop.f32.mrb[14].mxu0 }
 0x6a8   : > { %v3420_v13 = vpop.f32.mrb[15].mxu0  ;;  %3424 = vmatmul.mubr.msk.bf16.vlgmr.msra.gmra.mrb[20].mxu1 %vm1291_vm3, %v1738_v10 }
 0x6a9   : > { %3437 = vmatprep.mubr.msk.bf16.mxu1 %vm3686_vm1, %v3685_v4  ;;  %3434 = vmatpush3.bf16.msra.mxu1 %v3577_v48  ;;  %v3254_v13 = vld [vmem:[%s4427_s0] ss:$0 sm:$0xff]  ;;  %s4434_s0 = scalar_lea.vmem %s4359_s19, %s3849_s3 }
 0x6aa   : > { %3435 = vmatprep.subr.bf16.mxu1 %v3685_v4 }
 0x6ad   : > { %v1832_v15 = vpop.f32.mrb[16].mxu0  ;;  %3436 = vmatpush3.bf16.msra.mxu1 %v3578_v33 }
 0x6ae   : > { %v3431_v16 = vpop.f32.mrb[17].mxu0  ;;  %3449 = vmatprep.subr.bf16.mxu1 %v3685_v4 }
 0x6af   : > { %v1835_v18 = vpop.f32.mrb[18].mxu0 }
 0x6b0   : > { %v3432_v19 = vpop.f32.mrb[19].mxu0 }
 0x6b5   : > { %v2030_v14 = vpop.f32.mrb[20].mxu0 }
 0x6b6   : > { %v2031_v1 = vadd.f32 %v3258_v0, %v2030_v14  ;;  %v3447_v2 = vpop.f32.mrb[21].mxu0 }
 0x6b7   : > { %v2033_v3 = vpop.f32.mrb[22].mxu0 }
 0x6b8   : > { %v4124_v5 = vpack.c.bf16 %v2031_v1, %v2031_v1  ;;  %v2034_v8 = vadd.f32 %v3258_v0, %v2033_v3  ;;  %v3448_v9 = vpop.f32.mrb[23].mxu0 }
 0x6ba   : > { %v4126_v10 = vpack.c.bf16 %v2034_v8, %v2034_v8  ;;  %v2049_v11 = vsel %vm1291_vm3, %v4124_v5, 0 }
 0x6bc   : > { %v2095_v12 = vsel %vm1291_vm3, %v4126_v10, 0 }
 0x6bd   : > { %3456 = vmatpush3.bf16.xpose.msra.mxu0 %v2095_v12 }
 0x6be   : > { %3467 = vmatprep.subr.bf16.mxu0 %v3685_v4 }
 0x77b   : > { %v1782_v20 = vpop.f32.mrb[20].mxu1 }
 0x77c   : > { %v1833_v22 = vadd.f32 %v1832_v15, %v1782_v20  ;;  %v3425_v23 = vpop.f32.mrb[21].mxu1 }
 0x77d   : > { %v1785_v24 = vpop.f32.mrb[22].mxu1 }
 0x77e   : > { %v1846_v25 = vadd.f32 %v3251_v21, %v1833_v22  ;;  %v1836_v26 = vadd.f32 %v1835_v18, %v1785_v24  ;;  %v3426_v29 = vpop.f32.mrb[23].mxu1  ;;  %v1187_v24 = vld [vmem:[%s4428_s6] sm:$0x1] }
 0x77f   : > { %vm1189_vm9 = vcmp.gt.f32.partialorder %v1187_v24, 0.0 }
 0x780   : > { %v1847_v30 = vadd.f32 %v3251_v21, %v1836_v26  ;;  %v1848_v31 = vadd.f32 %v1846_v25, %v3950_v6  ;;  %v1188_v25 = vld [vmem:[%s4429_s26 + $0x1] sm:$0x1]  ;;  %v1191_v26 = vsel %vm1189_vm9, 0.0, %v3688_v28 }
 0x781   : > { %vm1190_vm10 = vcmp.gt.f32.partialorder %v1188_v25, 0.0 }
 0x782   : > { %v1852_v32 = vsel %vm1217_vm2, %v1848_v31, 0.0  ;;  %v1849_v34 = vadd.f32 %v1847_v30, %v3952_v7  ;;  %v1192_v29 = vsel %vm1190_vm10, 0.0, %v3688_v28  ;;  %v4154_v30 = vrot.slane %v1191_v26, %v3994_v27 }
 0x783   : > { %1853 = vadd.xlane.f32.xlu1 %v1852_v32 }
 0x784   : > { %v1855_v35 = vsel %vm1217_vm2, %v1849_v34, 0.0 }
 0x785   : > { %1856 = vadd.xlane.f32.xlu0 %v1855_v35  ;;  %v4157_v35 = vrot.slane %v1192_v29, %v3994_v27 }
 0x810   : > { %v1854_v36 = vpop.xlane.xlu1 %1853 }
 0x811   : > { %v1859_v37 = vmul.f32 0.03125, %v1854_v36 }
 0x812   : > { %v1857_v38 = vpop.xlane.xlu0 %1856 }
 0x813   : > { %v1861_v39 = vsub.f32 %v1848_v31, %v1859_v37  ;;  %v1860_v40 = vmul.f32 0.03125, %v1857_v38 }
 0x815   : > { %v1862_v42 = vsub.f32 %v1849_v34, %v1860_v40  ;;  %v1863_v43 = vmul.f32 %v1861_v39, %v1861_v39 }
 0x817   : > { %v1865_v6 = vsel %vm1217_vm2, %v1863_v43, 0.0  ;;  %v1864_v44 = vmul.f32 %v1862_v42, %v1862_v42 }
 0x818   : > { %1866 = vadd.xlane.f32.xlu1 %v1865_v6 }
 0x819   : > { %v1868_v7 = vsel %vm1217_vm2, %v1864_v44, 0.0 }
 0x81a   : > { %1869 = vadd.xlane.f32.xlu0 %v1868_v7 }
 0x8a5   : > { %v1867_v49 = vpop.xlane.xlu1 %1866 }
 0x8a6   : > { %v1871_v50 = vmul.f32 0.03125, %v1867_v49 }
 0x8a7   : > { %v1870_v51 = vpop.xlane.xlu0 %1869 }
 0x8a8   : > { %v1873_v52 = vadd.f32 1e-05, %v1871_v50  ;;  %v1872_v41 = vmul.f32 0.03125, %v1870_v51 }
 0x8aa   : > { %3603 = vrsqrt.f32 %v1873_v52  ;;  %v1874_v53 = vadd.f32 1e-05, %v1872_v41 }
 0x8ac   : > { %3605 = vrsqrt.f32 %v1874_v53 }
 0x8b4   : > { %v3604_v54 = vpop.eup %3603 }
 0x8b5   : > { %v1877_v55 = vmul.f32 %v3604_v54, %v1861_v39 }
 0x8b6   : > { %v3606_v56 = vpop.eup %3605 }
 0x8b7   : > { %v1885_v57 = vmul.f32 %v3252_v17, %v1877_v55  ;;  %v1878_v58 = vmul.f32 %v3606_v56, %v1862_v42 }
 0x8b9   : > { %v1886_v60 = vmul.f32 %v3252_v17, %v1878_v58  ;;  %v4110_v61 = vadd.f32 %v3253_v59, %v1885_v57 }
 0x8bb   : > { %v4112_v62 = vadd.f32 %v3253_v59, %v1886_v60 }
 0x8bd   : > { %v1895_v63 = vpack.c.bf16 %v4112_v62, %v4110_v61 }
 0x8bf   : > { %3438 = vmatmul.mubr.msk.bf16.vlgmr.msra.gmra.mrb[24].mxu1 %vm1217_vm2, %v1895_v63 }
 0x8c0   : > { %3451 = vmatprep.mubr.msk.bf16.mxu1 %vm3686_vm1, %v3685_v4  ;;  %3450 = vmatpush3.bf16.xpose.msra.mxu1 %v2049_v11 }
 0x8c1   : > { %3461 = vmatprep.subr.bf16.mxu1 %v3685_v4 }
 0x992   : > { %v1956_v15 = vpop.f32.mrb[24].mxu1 }
 0x993   : > { %v1957_v16 = vadd.f32 %v3254_v13, %v1956_v15  ;;  %v3439_v18 = vpop.f32.mrb[25].mxu1 }
 0x994   : > { %v1959_v19 = vpop.f32.mrb[26].mxu1 }
 0x995   : > { %v2041_v20 = vpack.c.bf16 %v1957_v16, %v1957_v16  ;;  %v1960_v21 = vadd.f32 %v3254_v13, %v1959_v19  ;;  %v3440_v22 = vpop.f32.mrb[27].mxu1 }
 0x997   : > { %v2042_v23 = vpack.c.bf16 %v1960_v21, %v1960_v21  ;;  %3452 = vmatmul.mubr.msk.bf16.vlgmr.msra.gmra.mrb[28].mxu1 %vm1291_vm3, %v2041_v20 }
 0x998   : > { %3463 = vmatprep.mubr.msk.bf16.mxu1 %vm3686_vm1, %v3685_v4 }
 0x999   : > { %3458 = vmatmul.mubr.msk.bf16.vlgmr.msra.gmra.mrb[24].mxu0 %vm1291_vm3, %v2042_v23 }
 0x99a   : > { %3469 = vmatprep.mubr.msk.bf16.mxu0 %vm3686_vm1, %v3685_v4 }
 0xa6a   : > { %v2085_v31 = vpop.f32.mrb[28].mxu1 }
 0xa6b   : > { %v2137_v32 = vmul.f32 0.25, %v2085_v31  ;;  %v3453_v34 = vpop.f32.mrb[29].mxu1 }
 0xa6c   : > { %v2088_v36 = vpop.f32.mrb[30].mxu1  ;;  %v2131_v37 = vpop.f32.mrb[24].mxu0 }
 0xa6d   : > { %v2138_v38 = vmul.f32 0.25, %v2131_v37  ;;  %v3454_v39 = vpop.f32.mrb[31].mxu1  ;;  %v3459_v40 = vpop.f32.mrb[25].mxu0  ;;  %v2151_v42 = vadd.f32 %v4154_v30, %v2137_v32 }
 0xa6e   : > { %v2134_v43 = vpop.f32.mrb[26].mxu0 }
 0xa6f   : > { %v3460_v6 = vpop.f32.mrb[27].mxu0  ;;  %v2153_v28 = vsel %vm1391_vm7, %v2151_v42, -inf  ;;  %v2152_v44 = vadd.f32 %v4157_v35, %v2138_v38 }
 0xa70   : > { %2154 = vmax.xlane.f32.xlu1 %v2153_v28 }
 0xa71   : > { %v2156_v7 = vsel %vm1391_vm7, %v2152_v44, -inf }
 0xa72   : > { %2157 = vmax.xlane.f32.xlu0 %v2156_v7 }
 0xa81   : > { %2180 = vrot.lane.b32.xlu1 %v4124_v5, %s3687_s4 }
 0xafd   : > { %v2155_v27 = vpop.xlane.xlu1 %2154 }
 0xafe   : > { %v2159_v45 = vsub.f32 %v2151_v42, %v2155_v27 }
 0xaff   : > { %v2158_v46 = vpop.xlane.xlu0 %2157 }
 0xb00   : > { %v2161_v47 = vmul.f32 1.442695, %v2159_v45  ;;  %v2160_v48 = vsub.f32 %v2152_v44, %v2158_v46 }
 0xb01   : > { %v2181_v33 = vpop.permute.xlu1 %2180 }
 0xb02   : > { %3607 = vpow2.f32 %v2161_v47  ;;  %v2163_v49 = vmul.f32 1.442695, %v2160_v48  ;;  %v2186_v50 = vsel %vm1421_vm8, %v2181_v33, 0 }
 0xb03   : > { %3462 = vmatpush3.bf16.msra.mxu1 %v2186_v50 }
 0xb04   : > { %3609 = vpow2.f32 %v2163_v49  ;;  %3473 = vmatprep.subr.bf16.mxu1 %v3685_v4 }
 0xb0c   : > { %v3608_v51 = vpop.eup %3607 }
 0xb0d   : > { %v2165_v52 = vsel %vm1391_vm7, %v3608_v51, 0.0 }
 0xb0e   : > { %v3610_v41 = vpop.eup %3609  ;;  %2166 = vadd.xlane.f32.xlu1 %v2165_v52 }
 0xb0f   : > { %v2168_v53 = vsel %vm1391_vm7, %v3610_v41, 0.0 }
 0xb10   : > { %2169 = vadd.xlane.f32.xlu0 %v2168_v53 }
 0xb1f   : > { %2281 = vrot.lane.b32.xlu1 %v4124_v5, %s3691_s9 }
 0xb23   : > { %2332 = vrot.lane.b32.xlu1 %v4126_v10, %s3691_s9 }
 0xb26   : > { %2229 = vrot.lane.b32.xlu0 %v4126_v10, %s3687_s4 }
 0xb27   : > { %2330 = vrot.lane.b32.xlu1 %v2042_v23, %s3691_s9 }
 0xb2a   : > { %2279 = vrot.lane.b32.xlu0 %v2041_v20, %s3691_s9 }
 0xb9b   : > { %v2167_v54 = vpop.xlane.xlu1 %2166 }
 0xb9c   : > { %3611 = vrcp.f32 %v2167_v54 }
 0xb9d   : > { %v2170_v17 = vpop.xlane.xlu0 %2169 }
 0xb9e   : > { %3613 = vrcp.f32 %v2170_v17  ;;  %v3580_v17 = vld [vmem:[%s3899_s5 + $0x8] sm:$0xff]  }
 0xb9f   : > { %v2282_v57 = vpop.permute.xlu1 %2281 }
 0xba0   : > { %v2287_v1 = vsel %vm1291_vm3, %v2282_v57, 0 }
 0xba1   : > { %v2230_v55 = vpop.permute.xlu0 %2229 }
 0xba2   : > { %v2235_v56 = vsel %vm1421_vm8, %v2230_v55, 0 }
 0xba3   : > { %3468 = vmatpush3.bf16.msra.mxu0 %v2235_v56  ;;  %v2333_v14 = vpop.permute.xlu1 %2332 }
 0xba4   : > { %3479 = vmatprep.subr.bf16.mxu0 %v3685_v4  ;;  %v2338_v3 = vsel %vm1291_vm3, %v2333_v14, 0 }
 0xba5   : > { %v2280_v8 = vpop.permute.xlu0 %2279 }
 0xba6   : > { %v3612_v58 = vpop.eup %3611 }
 0xba7   : > { %v2172_v59 = vmul.f32 %v3612_v58, %v3608_v51  ;;  %v2331_v9 = vpop.permute.xlu1 %2330 }
 0xba8   : > { %v3614_v60 = vpop.eup %3613 }
 0xba9   : > { %2175 = vst.msk [vmem:[#allocation3] sm:$0xff] %vm1391_vm7, %v2172_v59  ;;  %v2174_v63 = vmul.f32 %v3614_v60, %v3610_v41  ;;  %v2177_v0 = vpack.c.bf16 %v2172_v59, %v2172_v59 }
 0xbab   : > { %2176 = vst.msk [vmem:[#allocation3 + $0x10] sm:$0xff] %vm1391_vm7, %v2174_v63  ;;  %3464 = vmatmul.mubr.msk.bf16.vlgmr.msra.gmra.mrb[32].mxu1 %vm1391_vm7, %v2177_v0  ;;  %v2178_v2 = vpack.c.bf16 %v2174_v63, %v2174_v63 }
 0xbac   : > { %3474 = vmatpush3.bf16.xpose.msra.mxu1 %v2287_v1  ;;  %3475 = vmatprep.mubr.msk.bf16.mxu1 %vm3686_vm1, %v3685_v4 }
 0xbad   : > { %3470 = vmatmul.mubr.msk.bf16.vlgmr.msra.gmra.mrb[28].mxu0 %vm1391_vm7, %v2178_v2  ;;  %3485 = vmatprep.subr.bf16.mxu1 %v3685_v4 }
 0xbae   : > { %3480 = vmatpush3.bf16.xpose.msra.mxu0 %v2338_v3  ;;  %3481 = vmatprep.mubr.msk.bf16.mxu0 %vm3686_vm1, %v3685_v4 }
 0xbaf   : > { %3491 = vmatprep.subr.bf16.mxu0 %v3685_v4 }
 0xbb3   : > { %3476 = vmatmul.mubr.msk.bf16.vlgmr.msra.gmra.mrb[36].mxu1 %vm1291_vm3, %v2280_v8 }
 0xbb4   : > { %3487 = vmatprep.mubr.msk.bf16.mxu1 %vm3686_vm1, %v3685_v4 }
 0xbb5   : > { %3482 = vmatmul.mubr.msk.bf16.vlgmr.msra.gmra.mrb[32].mxu0 %vm1291_vm3, %v2331_v9 }
 0xbb6   : > { %3493 = vmatprep.mubr.msk.bf16.mxu0 %vm3686_vm1, %v3685_v4 }
 0xc7e   : > { %v4197_v11 = vpop.f32.mrb[32].mxu1 }
 0xc7f   : > { %v3465_v12 = vpop.f32.mrb[33].mxu1 }
 0xc80   : > { %v2225_v13 = vpop.f32.mrb[34].mxu1  ;;  %v4199_v15 = vpop.f32.mrb[28].mxu0 }
 0xc81   : > { %v2277_v16 = vpack.c.bf16 %v4199_v15, %v4197_v11  ;;  %v3466_v18 = vpop.f32.mrb[35].mxu1  ;;  %v3471_v19 = vpop.f32.mrb[29].mxu0 }
 0xc82   : > { %v2274_v20 = vpop.f32.mrb[30].mxu0 }
 0xc83   : > { %v3472_v21 = vpop.f32.mrb[31].mxu0 }
 0xc86   : > { %v2323_v22 = vpop.f32.mrb[36].mxu1 }
 0xc87   : > { %v2380_v23 = vmul.f32 0.25, %v2323_v22  ;;  %v3477_v24 = vpop.f32.mrb[37].mxu1 }
 0xc88   : > { %v2326_v25 = vpop.f32.mrb[38].mxu1  ;;  %v2374_v26 = vpop.f32.mrb[32].mxu0 }
 0xc89   : > { %v2381_v29 = vmul.f32 0.25, %v2374_v26  ;;  %v3478_v31 = vpop.f32.mrb[39].mxu1  ;;  %v3483_v32 = vpop.f32.mrb[33].mxu0  ;;  %v2382_v34 = vadd.f32 %v2380_v23, %v4154_v30 }
 0xc8a   : > { %v2377_v36 = vpop.f32.mrb[34].mxu0 }
 0xc8b   : > { %v3484_v37 = vpop.f32.mrb[35].mxu0  ;;  %v2384_v38 = vsel %vm1391_vm7, %v2382_v34, -inf  ;;  %v2383_v39 = vadd.f32 %v2381_v29, %v4157_v35 }
 0xc8c   : > { %2385 = vmax.xlane.f32.xlu0 %v2384_v38  ;;  %v3581_v38 = vld [vmem:[%s3916_s8] sm:$0xff]  }
 0xc8d   : > { %v2387_v40 = vsel %vm1391_vm7, %v2383_v39, -inf }
 0xc8e   : > { %2388 = vmax.xlane.f32.xlu1 %v2387_v40  ;;  %v3583_v40 = vld [vmem:[%s3926_s27] sm:$0xff]  }
 0xc9f   : > { %2411 = vrot.lane.b32.xlu1 %v4124_v5, %s3690_s28 }
 0xd19   : > { %v2386_v42 = vpop.xlane.xlu0 %2385 }
 0xd1a   : > { %v2390_v43 = vsub.f32 %v2382_v34, %v2386_v42  ;;  %v3584_v42 = vld [vmem:[%s3926_s27 + $0x8] sm:$0xff]  }
 0xd1b   : > { %v2389_v6 = vpop.xlane.xlu1 %2388 }
 0xd1c   : > { %v2392_v28 = vmul.f32 1.442695, %v2390_v43  ;;  %v2391_v44 = vsub.f32 %v2383_v39, %v2389_v6  ;;  %v3582_v39 = vld [vmem:[%s3916_s8 + $0x8] sm:$0xff]  }
 0xd1e   : > { %3615 = vpow2.f32 %v2392_v28  ;;  %v2394_v30 = vmul.f32 1.442695, %v2391_v44 }
 0xd1f   : > { %v2412_v7 = vpop.permute.xlu1 %2411 }
 0xd20   : > { %3617 = vpow2.f32 %v2394_v30  ;;  %v2417_v27 = vsel %vm1421_vm8, %v2412_v7, 0 }
 0xd21   : > { %3486 = vmatpush3.bf16.msra.mxu1 %v2417_v27 }
 0xd22   : > { %3497 = vmatprep.subr.bf16.mxu1 %v3685_v4 }
 0xd28   : > { %v3616_v35 = vpop.eup %3615 }
 0xd29   : > { %v2396_v45 = vsel %vm1391_vm7, %v3616_v35, 0.0 }
 0xd2a   : > { %v3618_v46 = vpop.eup %3617  ;;  %2397 = vadd.xlane.f32.xlu0 %v2396_v45 }
 0xd2b   : > { %v2399_v5 = vsel %vm1391_vm7, %v3618_v46, 0.0 }
 0xd2e   : > { %2400 = vadd.xlane.f32.xlu0 %v2399_v5 }
 0xd44   : > { %2459 = vrot.lane.b32.xlu0 %v4126_v10, %s3690_s28  ;;  %v3579_v10 = vld [vmem:[%s3899_s5] sm:$0xff]   ;;  %s4430_s28 = scalar_lea.vmem %s4355_s15, %s3849_s3 }
 0xd45   : > { %v3275_v11 = vld [vmem:[%s4430_s28] ss:$0 sm:$0xff]  ;;  %s4438_s28 = sld [smem:[#allocation6_spill]] }
 0xd4b   : > { %p3290_p6 = scmp.ne.s32.totalorder %s4438_s28, 1 }
 0xd4c   : > { %vm2872_vm12 = vcmask (!%p3290_p6), 257024   ;;  %s4439_s9 = sld [smem:[#allocation29_spill]] (!%p3290_p6) }
 0xdb7   : > { %v2398_v47 = vpop.xlane.xlu0 %2397 }
 0xdb8   : > { %3619 = vrcp.f32 %v2398_v47 }
 0xdbb   : > { %v2401_v48 = vpop.xlane.xlu0 %2400 }
 0xdbc   : > { %3621 = vrcp.f32 %v2401_v48  ;;  %v3277_v48 = vld [vmem:[%s4433_s18] ss:$0 sm:$0xff] }
 0xdbf   : > { %v2460_v33 = vpop.permute.xlu0 %2459 }
 0xdc0   : > { %v2465_v49 = vsel %vm1421_vm8, %v2460_v33, 0 }
 0xdc1   : > { %3492 = vmatpush3.bf16.msra.mxu0 %v2465_v49 }
 0xdc2   : > { %v3620_v50 = vpop.eup %3619  ;;  %3503 = vmatprep.subr.bf16.mxu0 %v3685_v4 }
 0xdc3   : > { %v2403_v51 = vmul.f32 %v3620_v50, %v3616_v35  ;;  %v3276_v35 = vld [vmem:[%s4431_s21] ss:$0 sm:$0xff] }
 0xdc5   : > { %2407 = vst.msk [vmem:[#allocation3 + $0x8] sm:$0xff] %vm1391_vm7, %v2403_v51  ;;  %v2409_v52 = vpack.c.bf16 %v2403_v51, %v2403_v51 }
 0xdc6   : > { %v3622_v41 = vpop.eup %3621 }
 0xdc7   : > { %v2405_v53 = vmul.f32 %v3622_v41, %v3618_v46  ;;  %3488 = vmatmul.mubr.msk.bf16.vlgmr.msra.gmra.mrb[40].mxu1 %vm1391_vm7, %v2409_v52  ;;  %v3585_v52 = vld [vmem:[%s3926_s27 + $0x10] sm:$0xff]   ;;  %v3586_v41 = vld [vmem:[%s3926_s27 + $0x18] sm:$0xff]  }
 0xdc8   : > { %3499 = vmatprep.mubr.msk.bf16.mxu1 %vm3686_vm1, %v3685_v4  ;;  %3498 = vmatpush3.bf16.msra.mxu1 %v3580_v17 }
 0xdc9   : > { %2408 = vst.msk [vmem:[#allocation3 + $0x18] sm:$0xff] %vm1391_vm7, %v2405_v53  ;;  %v2410_v54 = vpack.c.bf16 %v2405_v53, %v2405_v53  ;;  %3509 = vmatprep.subr.bf16.mxu1 %v3685_v4  ;;  %v3278_v53 = vld [vmem:[%s4434_s0] ss:$0 sm:$0xff] }
 0xdcb   : > { %3494 = vmatmul.mubr.msk.bf16.vlgmr.msra.gmra.mrb[36].mxu0 %vm1391_vm7, %v2410_v54 }
 0xdcc   : > { %3504 = vmatpush3.bf16.msra.mxu0 %v3579_v10  ;;  %3505 = vmatprep.mubr.msk.bf16.mxu0 %vm3686_vm1, %v3685_v4 }
 0xdcd   : > { %3517 = vmatprep.subr.bf16.mxu0 %v3685_v4 }
 0xdd3   : > { %3506 = vmatmul.mubr.msk.bf16.vlgmr.msra.gmra.mrb[40].mxu0 %vm1291_vm3, %v2277_v16 }
 0xdd4   : > { %3525 = vmatprep.mubr.msk.bf16.mxu0 %vm3686_vm1, %v3685_v4  ;;  %3518 = vmatpush3.bf16.msra.mxu0 %v3583_v40 }
 0xdd5   : > { %3519 = vmatprep.subr.bf16.mxu0 %v3685_v4 }
 0xdd8   : > { %3520 = vmatpush3.bf16.msra.mxu0 %v3584_v42 }
 0xdd9   : > { %3521 = vmatprep.subr.bf16.mxu0 %v3685_v4 }
 0xddc   : > { %3522 = vmatpush3.bf16.msra.mxu0 %v3585_v52 }
 0xddd   : > { %3523 = vmatprep.subr.bf16.mxu0 %v3685_v4 }
 0xde0   : > { %3524 = vmatpush3.bf16.msra.mxu0 %v3586_v41 }
 0xe9a   : > { %v2453_v55 = vpop.f32.mrb[40].mxu1 }
 0xe9b   : > { %v3489_v56 = vpop.f32.mrb[41].mxu1 }
 0xe9c   : > { %v2456_v57 = vpop.f32.mrb[42].mxu1 }
 0xe9d   : > { %v3490_v58 = vpop.f32.mrb[43].mxu1 }
 0xe9e   : > { %v2501_v59 = vpop.f32.mrb[36].mxu0 }
 0xe9f   : > { %v2507_v60 = vpack.c.bf16 %v2501_v59, %v2453_v55  ;;  %v3495_v63 = vpop.f32.mrb[37].mxu0 }
 0xea0   : > { %v2504_v0 = vpop.f32.mrb[38].mxu0 }
 0xea1   : > { %v3496_v14 = vpop.f32.mrb[39].mxu0  ;;  %3500 = vmatmul.mubr.msk.bf16.vlgmr.msra.gmra.mrb[44].mxu1 %vm1291_vm3, %v2507_v60 }
 0xea2   : > { %3513 = vmatprep.mubr.msk.bf16.mxu1 %vm3686_vm1, %v3685_v4  ;;  %3510 = vmatpush3.bf16.msra.mxu1 %v3581_v38  ;;  %v3289_v38 = vld [vmem:[%s1159_s17] ss:$0 sm:$0xff] }
 0xea3   : > { %3511 = vmatprep.subr.bf16.mxu1 %v3685_v4  ;;  %v3282_v4 = vld [vmem:[%s1153_s29] ss:$0 sm:$0xff] }
 0xea6   : > { %v2601_v1 = vpop.f32.mrb[40].mxu0  ;;  %3512 = vmatpush3.bf16.msra.mxu1 %v3582_v39 }
 0xea7   : > { %v3507_v2 = vpop.f32.mrb[41].mxu0 }
 0xea8   : > { %v2604_v3 = vpop.f32.mrb[42].mxu0 }
 0xea9   : > { %v3508_v8 = vpop.f32.mrb[43].mxu0 }
 0xf74   : > { %v2551_v9 = vpop.f32.mrb[44].mxu1 }
 0xf75   : > { %v2602_v12 = vadd.f32 %v2601_v1, %v2551_v9  ;;  %v3501_v13 = vpop.f32.mrb[45].mxu1 }
 0xf76   : > { %v2554_v15 = vpop.f32.mrb[46].mxu1 }
 0xf77   : > { %v2615_v16 = vadd.f32 %v3275_v11, %v2602_v12  ;;  %v2605_v18 = vadd.f32 %v2604_v3, %v2554_v15  ;;  %v3502_v19 = vpop.f32.mrb[47].mxu1 }
 0xf79   : > { %v2616_v20 = vadd.f32 %v3275_v11, %v2605_v18  ;;  %v2617_v21 = vadd.f32 %v2615_v16, %v4110_v61 }
 0xf7b   : > { %v2621_v22 = vsel %vm1217_vm2, %v2617_v21, 0.0  ;;  %v2618_v23 = vadd.f32 %v2616_v20, %v4112_v62 }
 0xf7c   : > { %2622 = vadd.xlane.f32.xlu1 %v2621_v22 }
 0xf7d   : > { %v2624_v24 = vsel %vm1217_vm2, %v2618_v23, 0.0 }
 0xf7e   : > { %2625 = vadd.xlane.f32.xlu0 %v2624_v24 }
0x1009   : > { %v2623_v25 = vpop.xlane.xlu1 %2622 }
0x100a   : > { %v2627_v26 = vmul.f32 0.03125, %v2623_v25 }
0x100b   : > { %v2626_v29 = vpop.xlane.xlu0 %2625 }
0x100c   : > { %v2629_v31 = vsub.f32 %v2617_v21, %v2627_v26  ;;  %v2628_v32 = vmul.f32 0.03125, %v2626_v29 }
0x100e   : > { %v2630_v34 = vsub.f32 %v2618_v23, %v2628_v32  ;;  %v2631_v36 = vmul.f32 %v2629_v31, %v2629_v31 }
0x1010   : > { %v2633_v61 = vsel %vm1217_vm2, %v2631_v36, 0.0  ;;  %v2632_v37 = vmul.f32 %v2630_v34, %v2630_v34 }
0x1011   : > { %2634 = vadd.xlane.f32.xlu1 %v2633_v61  ;;  %v3288_v61 = vld [vmem:[%s1156_s10] ss:$0 sm:$0xff] }
0x1012   : > { %v2636_v62 = vsel %vm1217_vm2, %v2632_v37, 0.0 }
0x1013   : > { %2637 = vadd.xlane.f32.xlu0 %v2636_v62 }
0x109e   : > { %v2635_v43 = vpop.xlane.xlu1 %2634 }
0x109f   : > { %v2639_v6 = vmul.f32 0.03125, %v2635_v43 }
0x10a0   : > { %v2638_v28 = vpop.xlane.xlu0 %2637 }
0x10a1   : > { %v2641_v44 = vadd.f32 1e-05, %v2639_v6  ;;  %v2640_v30 = vmul.f32 0.03125, %v2638_v28 }
0x10a3   : > { %3623 = vrsqrt.f32 %v2641_v44  ;;  %v2642_v7 = vadd.f32 1e-05, %v2640_v30 }
0x10a5   : > { %3625 = vrsqrt.f32 %v2642_v7 }
0x10ad   : > { %v3624_v27 = vpop.eup %3623 }
0x10ae   : > { %v2645_v45 = vmul.f32 %v3624_v27, %v2629_v31 }
0x10af   : > { %v3626_v46 = vpop.eup %3625 }
0x10b0   : > { %v2653_v5 = vmul.f32 %v3276_v35, %v2645_v45  ;;  %v2646_v47 = vmul.f32 %v3626_v46, %v2630_v34 }
0x10b2   : > { %v2654_v33 = vmul.f32 %v3276_v35, %v2646_v47  ;;  %v2661_v49 = vadd.f32 %v3277_v48, %v2653_v5 }
0x10b4   : > { %v2662_v50 = vadd.f32 %v3277_v48, %v2654_v33 }
0x10b6   : > { %v2663_v51 = vpack.c.bf16 %v2662_v50, %v2661_v49 }
0x10b8   : > { %3514 = vmatmul.mubr.msk.bf16.vlgmr.msra.gmra.mrb[48].mxu1 %vm1217_vm2, %v2663_v51 }
0x118b   : > { %v2724_v10 = vpop.f32.mrb[48].mxu1 }
0x118c   : > { %v2725_v54 = vadd.f32 %v3278_v53, %v2724_v10  ;;  %v3515_v17 = vpop.f32.mrb[49].mxu1 }
0x118d   : > { %v2727_v55 = vpop.f32.mrb[50].mxu1 }
0x118e   : > { %v2728_v56 = vadd.f32 %v3278_v53, %v2727_v55  ;;  %v3516_v57 = vpop.f32.mrb[51].mxu1  ;;  %v2731_v58 = vmax.f32 %v2725_v54, 0.0 }
0x1190   : > { %v2732_v59 = vmax.f32 %v2728_v56, 0.0 }
0x1192   : > { %v2733_v60 = vpack.c.bf16 %v2732_v59, %v2731_v58 }
0x1194   : > { %3526 = vmatmul.mubr.msk.bf16.vlgmr.msra.gmra.mrb[44].mxu0 %vm2773_vm11, %v2733_v60 }
0x1267   : > { %v2811_v63 = vpop.f32.mrb[44].mxu0 }
0x1268   : > { %v2812_v0 = vadd.f32 %v3282_v4, %v2811_v63  ;;  %v3527_v14 = vpop.f32.mrb[45].mxu0 }
0x1269   : > { %v2814_v1 = vpop.f32.mrb[46].mxu0 }
0x126a   : > { %v2815_v2 = vadd.f32 %v3282_v4, %v2814_v1  ;;  %v3528_v3 = vpop.f32.mrb[47].mxu0  ;;  %v2818_v8 = vadd.f32 %v2812_v0, %v2661_v49 }
0x126c   : > { %v2822_v9 = vsel %vm1217_vm2, %v2818_v8, 0.0  ;;  %v2819_v11 = vadd.f32 %v2815_v2, %v2662_v50 }
0x126d   : > { %2823 = vadd.xlane.f32.xlu1 %v2822_v9 }
0x126e   : > { %v2825_v12 = vsel %vm1217_vm2, %v2819_v11, 0.0 }
0x126f   : > { %2826 = vadd.xlane.f32.xlu0 %v2825_v12 }
0x12fa   : > { %v2824_v13 = vpop.xlane.xlu1 %2823 }
0x12fb   : > { %v2828_v15 = vmul.f32 0.03125, %v2824_v13 }
0x12fc   : > { %v2827_v16 = vpop.xlane.xlu0 %2826 }
0x12fd   : > { %v2830_v18 = vsub.f32 %v2818_v8, %v2828_v15  ;;  %v2829_v19 = vmul.f32 0.03125, %v2827_v16 }
0x12ff   : > { %v2831_v20 = vsub.f32 %v2819_v11, %v2829_v19  ;;  %v2832_v21 = vmul.f32 %v2830_v18, %v2830_v18 }
0x1301   : > { %v2834_v22 = vsel %vm1217_vm2, %v2832_v21, 0.0  ;;  %v2833_v23 = vmul.f32 %v2831_v20, %v2831_v20 }
0x1302   : > { %2835 = vadd.xlane.f32.xlu1 %v2834_v22 }
0x1303   : > { %v2837_v24 = vsel %vm1217_vm2, %v2833_v23, 0.0 }
0x1304   : > { %2838 = vadd.xlane.f32.xlu0 %v2837_v24 }
0x138f   : > { %v2836_v25 = vpop.xlane.xlu1 %2835 }
0x1390   : > { %v2840_v26 = vmul.f32 0.03125, %v2836_v25 }
0x1391   : > { %v2839_v29 = vpop.xlane.xlu0 %2838 }
0x1392   : > { %v2842_v31 = vadd.f32 1e-05, %v2840_v26  ;;  %v2841_v32 = vmul.f32 0.03125, %v2839_v29 }
0x1394   : > { %3627 = vrsqrt.f32 %v2842_v31  ;;  %v2843_v34 = vadd.f32 1e-05, %v2841_v32 }
0x1396   : > { %3629 = vrsqrt.f32 %v2843_v34 }
0x139e   : > { %v3628_v36 = vpop.eup %3627 }
0x139f   : > { %v2846_v37 = vmul.f32 %v3628_v36, %v2830_v18 }
0x13a0   : > { %v3630_v62 = vpop.eup %3629 }
0x13a1   : > { %v2854_v39 = vmul.f32 %v3288_v61, %v2846_v37  ;;  %v2847_v40 = vmul.f32 %v3630_v62, %v2831_v20  ;;  %2869 = sbr.rel (%p3290_p6) target bundleno = 5034 (0x13aa), region = 124 }
0x13a3   : > { %v2862_v42 = vadd.f32 %v3289_v38, %v2854_v39  ;;  %v2855_v43 = vmul.f32 %v3288_v61, %v2847_v40 }
0x13a5   : > { %2864 = vst.msk [vmem:[#allocation2] sm:$0xff] %vm1217_vm2, %v2862_v42  ;;  %v2863_v6 = vadd.f32 %v3289_v38, %v2855_v43  ;;  %v2870_v28 = vpack.c.bf16 (!%p3290_p6), %v2862_v42, %v2862_v42 }
0x13a7   : > { %2865 = vst.msk [vmem:[#allocation2 + $0x8] sm:$0xff] %vm1217_vm2, %v2863_v6  ;;  %v2871_v44 = vpack.c.bf16 (!%p3290_p6), %v2863_v6, %v2863_v6 }
0x13a8   : > { %2873 = vst.msk [vmem:[%s4439_s9] sm:$0xf] %vm2872_vm12, %v2870_v28 }
0x13a9   : > { %2874 = vst.msk [vmem:[%s4439_s9 + $0x4] sm:$0xf] %vm2872_vm12, %v2871_v44 }
0x13aa PF: > { %s4440_s21 = sld [smem:[#allocation8_spill]]  ;;  %s3693_s14 = smov [#allocation3]  }
0x13ab   : > { %s2894_s18 = sshll.u32 %s3693_s14, 4  ;;  %s2895_s18 = int_to_ptr.vmem [resolvable:$true] %s2894_s18 }
0x13ac   : > { %s3631_s23 = scalar_lea.vmem %s2895_s18, 512  ;;  %p3638_p11 = scmp.lt.s32.totalorder %s2895_s18, %s2895_s18 }
0x13ad   : > { %p3632_p8 = scmp.ne.s32.totalorder %s2895_s18, %s3631_s23  ;;  %p3639_p12 = scmp.lt.s32.totalorder %s3631_s23, %s3631_s23 }
0x13af   : > { %p3640_p13 = por %p3639_p12, %p3638_p11 }
0x13b0   : > { %s4441_s25 = sadd.s32 4294967295, %s4440_s21  }
0x13b1   : > { %p4305_p7 = scmp.eq.s32.totalorder %s4441_s25, 1 }
0x13b3   : > { %p3633_p9 = pnand %p3632_p8, %p4305_p7 }
0x13b5   : > { %p3634_p10 = pneg %p3633_p9 }
0x13b7   : > { %p3641_p0 = pnand %p3640_p13, %p3634_p10 }
0x13b9   : > { %3644 = shalt.err (!%p3641_p0)
}
0x13ba   : > { %s4443_s22 = sld [smem:[#allocation30_spill]] }
0x13c0   : > { %s3645_s30 = scalar_lea.hbm %s4443_s22, 512 }
0x13c1   : > { %p3646_p1 = scmp.ne.s32.totalorder %s4443_s22, %s3645_s30  ;;  %p3651_p4 = scmp.lt.u32.totalorder %s3645_s30, %s4443_s22 }
0x13c3   : > { %p3647_p2 = pnand %p3646_p1, %p4305_p7 }
0x13c5   : > { %p3648_p3 = pneg %p3647_p2 }
0x13c7   : > { %p3653_p5 = pnand %p3651_p4, %p3648_p3 }
0x13c9   : > { %3656 = shalt.err (!%p3653_p5)
}
0x13ca   : > { %s3694_s1 = smov 128   ;;  %s3695_s5 = smov 8  }
0x13cb   : > { %3530 = dma.vmem_to_hbm [thread:$0]  (%p4305_p7), %s2895_s18, 512, %s4443_s22, [#allocation4], %s3694_s1, %s3694_s1, %s3695_s5  }
0x13cc   : > { %3670 = dma.done.wait (%p4305_p7), [#allocation4], 512  }
0x13cd   : > { %3672 = vsyncadd (%p4305_p7), [#allocation4], 4294966784 }
0x13ce PF: > { %s4444_s10 = sld [smem:[#allocation8_spill]]  ;;  %s4445_s29 = sld [smem:[#allocation7_spill]] }
0x13cf   : > { %s4446_s2 = sld [smem:[#allocation9_spill]] }
0x13d4   : > { %s37_s6 = sadd.s32 1, %s4444_s10  }
0x13d5   : > { %p34_p6 = scmp.ge.s32.totalorder %s37_s6, 4  }
0x13d7   :  { %36 = sbr.rel (!%p34_p6) target bundleno = 23 (0x17), region = 234 }
0x13de   :  { %2918 = vsyncpa [#allocation4], 1 }
0x13df   :  { %2920 = vsyncpa [#allocation4 + $0x1], 1 }

</bundles_post_ra>
